<compile_context>
chip_gen: v6e
topology: v6e:2x2x1
jax: 0.10.0
libtpu: 0.0.40
codegen_flags: <defaults>
</compile_context>

<pallas_src>
import jax
import jax.numpy as jnp
from jax.experimental import pallas as pl
from jax.experimental.pallas import tpu as pltpu


def _round_up(x, m):
    return (x + m - 1) // m * m


def _make_fused_gru_kernel(n_layers, S, Bp, Hp):
    """Fused multi-layer GRU kernel: single invocation, fully VMEM resident."""
    n_in = 1 + 4 * n_layers  # x + (w_ih, w_hh, b_pre, b_hn) per layer
    H3 = 3 * Hp

    def kernel(*refs):
        x_ref = refs[0]               # (S, Bp, Inp)        bf16
        out_ref = refs[n_in]          # (S, Bp, Hp)         f32  (also inter-layer act)
        hlast_ref = refs[n_in + 1]    # (n_layers, Bp, Hp)  f32
        gi_scr = refs[n_in + 2]       # (S, Bp, 3*Hp)       f32  (fused gate projections)

        for layer in range(n_layers):
            wih_ref, whh_ref, bpre_ref, bhn_ref = refs[1 + 4 * layer: 1 + 4 * (layer + 1)]

            # ---- Hoisted input projection: one big MXU matmul for all 3 gates --------
            xin = x_ref[...] if layer == 0 else out_ref[...].astype(jnp.bfloat16)
            d_in = xin.shape[-1]
            x2d = xin.reshape(S * Bp, d_in)
            gi = jnp.dot(x2d, wih_ref[...], preferred_element_type=jnp.float32)
            gi_scr[...] = (gi + bpre_ref[...]).reshape(S, Bp, H3)

            # ---- Loop-invariant reads/broadcasts hoisted off the serial path ---------
            whh = whh_ref[...]                                   # (Hp, 3*Hp) bf16, fused gates
            bhn = jnp.broadcast_to(bhn_ref[...], (Bp, Hp))       # b_hh_n, broadcast once

            # ---- Serial recurrence: ONE fused (Bp,Hp)x(Hp,3Hp) matmul per step,
            #      hidden state carried in vregs, fully unrolled for LLO scheduling ----
            def step(t, h_prev):
                gh = jnp.dot(h_prev.astype(jnp.bfloat16), whh,
                             preferred_element_type=jnp.float32)   # (Bp, 3*Hp)
                gi_t = gi_scr[t]                                    # (Bp, 3*Hp)
                # Gate order r, z, n; slices are 128-lane aligned (Hp % 128 == 0).
                r = jax.nn.sigmoid(gi_t[:, 0 * Hp:1 * Hp] + gh[:, 0 * Hp:1 * Hp])
                z = jax.nn.sigmoid(gi_t[:, 1 * Hp:2 * Hp] + gh[:, 1 * Hp:2 * Hp])
                n = jnp.tanh(gi_t[:, 2 * Hp:3 * Hp] + r * (gh[:, 2 * Hp:3 * Hp] + bhn))
                h_new = (1.0 - z) * n + z * h_prev
                out_ref[t] = h_new
                return h_new

            h0 = jnp.zeros((Bp, Hp), jnp.float32)
            h_last = jax.lax.fori_loop(0, S, step, h0, unroll=True)
            hlast_ref[layer] = h_last

    return kernel


def _gru_stack_forward(x_pad, kernel_params, n_layers, Hp):
    """Run the fused GRU stack. x_pad: (S, Bp, Inp) bf16, padded."""
    S, Bp, _ = x_pad.shape
    kernel = _make_fused_gru_kernel(n_layers, S, Bp, Hp)
    n_in = 1 + 4 * n_layers
    vmem = pltpu.MemorySpace.VMEM

    # Explicit scoped-VMEM budget (defaults: 16 MiB v5e / 32 MiB v6e,v7x).
    def _nbytes(a):
        return int(a.size) * a.dtype.itemsize

    in_bytes = _nbytes(x_pad) + sum(_nbytes(p) for p in kernel_params)
    out_bytes = (S * Bp * Hp + n_layers * Bp * Hp) * 4
    scr_bytes = S * Bp * 3 * Hp * 4
    vmem_limit = min(int(1.5 * (in_bytes + out_bytes + scr_bytes)) + (4 << 20), 100 << 20)

    out_pad, hlast_pad = pl.pallas_call(
        kernel,
        out_shape=(
            jax.ShapeDtypeStruct((S, Bp, Hp), jnp.float32),
            jax.ShapeDtypeStruct((n_layers, Bp, Hp), jnp.float32),
        ),
        in_specs=[pl.BlockSpec(memory_space=vmem)] * n_in,
        out_specs=(
            pl.BlockSpec(memory_space=vmem),
            pl.BlockSpec(memory_space=vmem),
        ),
        scratch_shapes=[
            pltpu.VMEM((S, Bp, 3 * Hp), jnp.float32),   # fused r|z|n input projections
        ],
        compiler_params=pltpu.CompilerParams(vmem_limit_bytes=vmem_limit),
    )(x_pad, *kernel_params)
    return out_pad, hlast_pad


class RecurrentNeuralNetworkPallas:
    """JAX/Pallas port of the PyTorch RecurrentNeuralNetwork (nn.GRU stack)."""

    def __init__(self, input_size, hidden_size, n_layers, key):
        self.input_size = input_size
        self.hidden_size = hidden_size
        self.n_layers = n_layers
        self.Hp = _round_up(hidden_size, 128)   # lane-dense gate slabs, unmasked stores
        self.Inp = _round_up(input_size, 8)     # sublane-aligned contraction dim
        assert self.Hp % 128 == 0

        # Deterministic init matching PyTorch GRU parameter shapes, U(-1/sqrt(H), 1/sqrt(H)):
        #   weight_ih_l{k}: (3H, in_k), weight_hh_l{k}: (3H, H), bias_*: (3H,)
        bound = 1.0 / (hidden_size ** 0.5)
        self.params = []
        for layer in range(n_layers):
            in_k = input_size if layer == 0 else hidden_size
            key, k1, k2, k3, k4 = jax.random.split(key, 5)
            w_ih = jax.random.uniform(k1, (3 * hidden_size, in_k), jnp.float32, -bound, bound)
            w_hh = jax.random.uniform(k2, (3 * hidden_size, hidden_size), jnp.float32, -bound, bound)
            b_ih = jax.random.uniform(k3, (3 * hidden_size,), jnp.float32, -bound, bound)
            b_hh = jax.random.uniform(k4, (3 * hidden_size,), jnp.float32, -bound, bound)
            self.params.append((w_ih, w_hh, b_ih, b_hh))

        # Transpose / pad / gate-fuse / bias-fold ONCE at init (not per forward call).
        self.kernel_params = []
        for layer, (w_ih, w_hh, b_ih, b_hh) in enumerate(self.params):
            in_pad = self.Inp if layer == 0 else self.Hp
            self.kernel_params.extend(self._prep_layer(w_ih, w_hh, b_ih, b_hh, in_pad))

    def _prep_layer(self, w_ih, w_hh, b_ih, b_hh, in_pad):
        H, Hp = self.hidden_size, self.Hp
        in_orig = w_ih.shape[1]
        # NOTE: all padded weight rows/cols and padded bias lanes MUST remain exactly 0.
        # With zero padding: gi = gh = 0, b = 0 => r = z = 0.5, n = tanh(0) = 0,
        # h_new = 0.5*0 + 0.5*h_prev, and h starts at 0 => padded hidden lanes stay 0.
        # Gates are concatenated along the LANE axis at 128-aligned offsets: [r | z | n].
        wih = jnp.zeros((in_pad, 3 * Hp), jnp.bfloat16)
        whh = jnp.zeros((Hp, 3 * Hp), jnp.bfloat16)
        bpre = jnp.zeros((1, 3 * Hp), jnp.float32)
        bhn = jnp.zeros((1, Hp), jnp.float32)
        for g in range(3):  # PyTorch gate order: r, z, n
            wih = wih.at[:in_orig, g * Hp:g * Hp + H].set(
                w_ih[g * H:(g + 1) * H, :].T.astype(jnp.bfloat16))
            whh = whh.at[:H, g * Hp:g * Hp + H].set(
                w_hh[g * H:(g + 1) * H, :].T.astype(jnp.bfloat16))
        # r/z biases fold into the hoisted projection; b_hh_n must stay inside
        # r * (h @ W_hn + b_hh_n) to match nn.GRU semantics.
        bpre = bpre.at[0, 0 * Hp:0 * Hp + H].set(b_ih[0:H] + b_hh[0:H])
        bpre = bpre.at[0, 1 * Hp:1 * Hp + H].set(b_ih[H:2 * H] + b_hh[H:2 * H])
        bpre = bpre.at[0, 2 * Hp:2 * Hp + H].set(b_ih[2 * H:3 * H])
        bhn = bhn.at[0, :H].set(b_hh[2 * H:3 * H])
        return [wih, whh, bpre, bhn]

    def __call__(self, x):
        # x: (seq, batch, input_size); initial hidden is zeros (as in init_hidden).
        S, B, In = x.shape
        Bp = _round_up(max(B, 8), 8)   # at least one full sublane group
        x_pad = jnp.zeros((S, Bp, self.Inp), jnp.bfloat16)
        x_pad = x_pad.at[:, :B, :In].set(x.astype(jnp.bfloat16))

        out_pad, hlast_pad = _gru_stack_forward(
            x_pad, self.kernel_params, self.n_layers, self.Hp)

        out = out_pad[:, :B, :self.hidden_size]        # (S, B, H)
        hidden = hlast_pad[:, :B, :self.hidden_size]   # (n_layers, B, H)
        return out, hidden


def _gru_reference(x, params):
    """Pure-JAX f32 reference (same math as PyTorch nn.GRU) for a sanity check."""
    S, B, _ = x.shape
    layer_in = x
    h_finals = []
    for (w_ih, w_hh, b_ih, b_hh) in params:
        H = w_hh.shape[1]
        h = jnp.zeros((B, H), jnp.float32)
        outs = []
        for t in range(S):
            gi = layer_in[t] @ w_ih.T + b_ih
            gh = h @ w_hh.T + b_hh
            i_r, i_z, i_n = jnp.split(gi, 3, axis=-1)
            h_r, h_z, h_n = jnp.split(gh, 3, axis=-1)
            r = jax.nn.sigmoid(i_r + h_r)
            z = jax.nn.sigmoid(i_z + h_z)
            n = jnp.tanh(i_n + r * h_n)
            h = (1.0 - z) * n + z * h
            outs.append(h)
        layer_in = jnp.stack(outs, axis=0)
        h_finals.append(h)
    return layer_in, jnp.stack(h_finals, axis=0)


if __name__ == "__main__":
    seq, batch, input_size, hidden_size, n_layers = 8, 2, 16, 32, 2

    key = jax.random.PRNGKey(0)
    key, xk, pk = jax.random.split(key, 3)
    x = jax.random.normal(xk, (seq, batch, input_size), jnp.float32)

    model = RecurrentNeuralNetworkPallas(input_size, hidden_size, n_layers, pk)

    out, hidden = model(x)
    out = jax.block_until_ready(out)
    hidden = jax.block_until_ready(hidden)

    assert out.shape == (seq, batch, hidden_size)
    assert hidden.shape == (n_layers, batch, hidden_size)

    # Sanity-check against a pure-JAX f32 reference. Tolerance is loosened because the
    # kernel uses bf16 MXU operands (f32 accumulation / f32 gate math and h carry).
    out_ref, hidden_ref = _gru_reference(x, model.params)
    assert jnp.allclose(out, out_ref, atol=5e-2, rtol=5e-2)
    assert jnp.allclose(hidden, hidden_ref, atol=5e-2, rtol=5e-2)

    print("KERNEL_OK")
</pallas_src>

<mosaic_0001>
module attributes {stable_mosaic.version = 11 : i64} {
  func.func @kernel(%arg0: memref<8x8x16xbf16, #tpu.memory_space<vmem>>, %arg1: memref<16x384xbf16, #tpu.memory_space<vmem>>, %arg2: memref<128x384xbf16, #tpu.memory_space<vmem>>, %arg3: memref<1x384xf32, #tpu.memory_space<vmem>>, %arg4: memref<1x128xf32, #tpu.memory_space<vmem>>, %arg5: memref<128x384xbf16, #tpu.memory_space<vmem>>, %arg6: memref<128x384xbf16, #tpu.memory_space<vmem>>, %arg7: memref<1x384xf32, #tpu.memory_space<vmem>>, %arg8: memref<1x128xf32, #tpu.memory_space<vmem>>, %arg9: memref<8x8x128xf32, #tpu.memory_space<vmem>>, %arg10: memref<2x8x128xf32, #tpu.memory_space<vmem>>, %arg11: memref<8x8x384xf32, #tpu.memory_space<vmem>>) attributes {dimension_semantics = [], scalar_prefetch = 0 : i64, scratch_operands = 1 : i64, tpu.core_type = #tpu.core_type<tc>} {
    %c0 = arith.constant 0 : index
    %c0_0 = arith.constant 0 : index
    %c0_1 = arith.constant 0 : index
    %0 = vector.load %arg0[%c0, %c0_0, %c0_1] : memref<8x8x16xbf16, #tpu.memory_space<vmem>>, vector<8x8x16xbf16>
    %1 = vector.shape_cast %0 : vector<8x8x16xbf16> to vector<64x16xbf16>
    %c0_2 = arith.constant 0 : index
    %c0_3 = arith.constant 0 : index
    %2 = vector.load %arg1[%c0_2, %c0_3] : memref<16x384xbf16, #tpu.memory_space<vmem>>, vector<16x384xbf16>
    %cst = arith.constant dense<0.000000e+00> : vector<64x384xf32>
    %3 = tpu.matmul %1, %2, %cst {dimension_numbers = #tpu.dot_dimension_numbers<[1], [0], [0], [1], [0, 0, 1, 1], [], []>} : vector<64x16xbf16>, vector<16x384xbf16>, vector<64x384xf32> -> vector<64x384xf32>
    %c0_4 = arith.constant 0 : index
    %c0_5 = arith.constant 0 : index
    %4 = vector.load %arg3[%c0_4, %c0_5] : memref<1x384xf32, #tpu.memory_space<vmem>>, vector<1x384xf32>
    %5 = vector.broadcast %4 : vector<1x384xf32> to vector<64x384xf32>
    %6 = arith.addf %3, %5 : vector<64x384xf32>
    %7 = vector.shape_cast %6 : vector<64x384xf32> to vector<8x8x384xf32>
    %c0_6 = arith.constant 0 : index
    %c0_7 = arith.constant 0 : index
    %c0_8 = arith.constant 0 : index
    %8 = vector.load %arg11[%c0_6, %c0_7, %c0_8] : memref<8x8x384xf32, #tpu.memory_space<vmem>>, vector<8x8x384xf32>
    tpu.vector_store %arg11[%c0_6, %c0_7, %c0_8], %7 {strides = array<i32>} : memref<8x8x384xf32, #tpu.memory_space<vmem>>, vector<8x8x384xf32>,
    %c0_9 = arith.constant 0 : index
    %c0_10 = arith.constant 0 : index
    %9 = vector.load %arg2[%c0_9, %c0_10] : memref<128x384xbf16, #tpu.memory_space<vmem>>, vector<128x384xbf16>
    %c0_11 = arith.constant 0 : index
    %c0_12 = arith.constant 0 : index
    %10 = vector.load %arg4[%c0_11, %c0_12] : memref<1x128xf32, #tpu.memory_space<vmem>>, vector<1x128xf32>
    %11 = vector.shape_cast %10 : vector<1x128xf32> to vector<1x128xf32>
    %12 = vector.broadcast %11 : vector<1x128xf32> to vector<8x128xf32>
    %cst_13 = arith.constant 0.000000e+00 : f32
    %13 = vector.broadcast %cst_13 : f32 to vector<8x128xf32>
    %c0_i32 = arith.constant 0 : i32
    %14 = arith.truncf %13 : vector<8x128xf32> to vector<8x128xbf16>
    %cst_14 = arith.constant dense<0.000000e+00> : vector<8x384xf32>
    %15 = tpu.matmul %14, %9, %cst_14 {dimension_numbers = #tpu.dot_dimension_numbers<[1], [0], [0], [1], [0, 0, 1, 1], [], []>} : vector<8x128xbf16>, vector<128x384xbf16>, vector<8x384xf32> -> vector<8x384xf32>
    %16 = arith.index_cast %c0_i32 : i32 to index
    %c0_15 = arith.constant 0 : index
    %c0_16 = arith.constant 0 : index
    %17 = vector.load %arg11[%16, %c0_15, %c0_16] : memref<8x8x384xf32, #tpu.memory_space<vmem>>, vector<1x8x384xf32>
    %18 = vector.shape_cast %17 : vector<1x8x384xf32> to vector<8x384xf32>
    %19 = vector.extract_strided_slice %18 {offsets = [0, 0], sizes = [8, 128], strides = [1, 1]} : vector<8x384xf32> to vector<8x128xf32>
    %20 = vector.extract_strided_slice %15 {offsets = [0, 0], sizes = [8, 128], strides = [1, 1]} : vector<8x384xf32> to vector<8x128xf32>
    %21 = arith.addf %19, %20 : vector<8x128xf32>
    %22 = arith.negf %21 : vector<8x128xf32>
    %23 = math.exp %22 : vector<8x128xf32>
    %cst_17 = arith.constant 1.000000e+00 : f32
    %24 = vector.broadcast %cst_17 : f32 to vector<8x128xf32>
    %25 = arith.addf %24, %23 : vector<8x128xf32>
    %26 = arith.divf %24, %25 : vector<8x128xf32>
    %27 = vector.extract_strided_slice %18 {offsets = [0, 128], sizes = [8, 128], strides = [1, 1]} : vector<8x384xf32> to vector<8x128xf32>
    %28 = vector.extract_strided_slice %15 {offsets = [0, 128], sizes = [8, 128], strides = [1, 1]} : vector<8x384xf32> to vector<8x128xf32>
    %29 = arith.addf %27, %28 : vector<8x128xf32>
    %30 = arith.negf %29 : vector<8x128xf32>
    %31 = math.exp %30 : vector<8x128xf32>
    %cst_18 = arith.constant 1.000000e+00 : f32
    %32 = vector.broadcast %cst_18 : f32 to vector<8x128xf32>
    %33 = arith.addf %32, %31 : vector<8x128xf32>
    %34 = arith.divf %32, %33 : vector<8x128xf32>
    %35 = vector.extract_strided_slice %18 {offsets = [0, 256], sizes = [8, 128], strides = [1, 1]} : vector<8x384xf32> to vector<8x128xf32>
    %36 = vector.extract_strided_slice %15 {offsets = [0, 256], sizes = [8, 128], strides = [1, 1]} : vector<8x384xf32> to vector<8x128xf32>
    %37 = arith.addf %36, %12 : vector<8x128xf32>
    %38 = arith.mulf %26, %37 : vector<8x128xf32>
    %39 = arith.addf %35, %38 : vector<8x128xf32>
    %40 = math.tanh %39 : vector<8x128xf32>
    %cst_19 = arith.constant 1.000000e+00 : f32
    %41 = vector.broadcast %cst_19 : f32 to vector<8x128xf32>
    %42 = arith.subf %41, %34 : vector<8x128xf32>
    %43 = arith.mulf %42, %40 : vector<8x128xf32>
    %44 = arith.mulf %34, %13 : vector<8x128xf32>
    %45 = arith.addf %43, %44 : vector<8x128xf32>
    %46 = arith.index_cast %c0_i32 : i32 to index
    %c0_20 = arith.constant 0 : index
    %c0_21 = arith.constant 0 : index
    %47 = vector.load %arg9[%46, %c0_20, %c0_21] : memref<8x8x128xf32, #tpu.memory_space<vmem>>, vector<1x8x128xf32>
    %48 = vector.shape_cast %47 : vector<1x8x128xf32> to vector<8x128xf32>
    %49 = vector.shape_cast %45 : vector<8x128xf32> to vector<1x8x128xf32>
    tpu.vector_store %arg9[%46, %c0_20, %c0_21], %49 {strides = array<i32>} : memref<8x8x128xf32, #tpu.memory_space<vmem>>, vector<1x8x128xf32>,
    %c1_i32 = arith.constant 1 : i32
    %50 = arith.truncf %45 : vector<8x128xf32> to vector<8x128xbf16>
    %cst_22 = arith.constant dense<0.000000e+00> : vector<8x384xf32>
    %51 = tpu.matmul %50, %9, %cst_22 {dimension_numbers = #tpu.dot_dimension_numbers<[1], [0], [0], [1], [0, 0, 1, 1], [], []>} : vector<8x128xbf16>, vector<128x384xbf16>, vector<8x384xf32> -> vector<8x384xf32>
    %52 = arith.index_cast %c1_i32 : i32 to index
    %c0_23 = arith.constant 0 : index
    %c0_24 = arith.constant 0 : index
    %53 = vector.load %arg11[%52, %c0_23, %c0_24] : memref<8x8x384xf32, #tpu.memory_space<vmem>>, vector<1x8x384xf32>
    %54 = vector.shape_cast %53 : vector<1x8x384xf32> to vector<8x384xf32>
    %55 = vector.extract_strided_slice %54 {offsets = [0, 0], sizes = [8, 128], strides = [1, 1]} : vector<8x384xf32> to vector<8x128xf32>
    %56 = vector.extract_strided_slice %51 {offsets = [0, 0], sizes = [8, 128], strides = [1, 1]} : vector<8x384xf32> to vector<8x128xf32>
    %57 = arith.addf %55, %56 : vector<8x128xf32>
    %58 = arith.negf %57 : vector<8x128xf32>
    %59 = math.exp %58 : vector<8x128xf32>
    %cst_25 = arith.constant 1.000000e+00 : f32
    %60 = vector.broadcast %cst_25 : f32 to vector<8x128xf32>
    %61 = arith.addf %60, %59 : vector<8x128xf32>
    %62 = arith.divf %60, %61 : vector<8x128xf32>
    %63 = vector.extract_strided_slice %54 {offsets = [0, 128], sizes = [8, 128], strides = [1, 1]} : vector<8x384xf32> to vector<8x128xf32>
    %64 = vector.extract_strided_slice %51 {offsets = [0, 128], sizes = [8, 128], strides = [1, 1]} : vector<8x384xf32> to vector<8x128xf32>
    %65 = arith.addf %63, %64 : vector<8x128xf32>
    %66 = arith.negf %65 : vector<8x128xf32>
    %67 = math.exp %66 : vector<8x128xf32>
    %cst_26 = arith.constant 1.000000e+00 : f32
    %68 = vector.broadcast %cst_26 : f32 to vector<8x128xf32>
    %69 = arith.addf %68, %67 : vector<8x128xf32>
    %70 = arith.divf %68, %69 : vector<8x128xf32>
    %71 = vector.extract_strided_slice %54 {offsets = [0, 256], sizes = [8, 128], strides = [1, 1]} : vector<8x384xf32> to vector<8x128xf32>
    %72 = vector.extract_strided_slice %51 {offsets = [0, 256], sizes = [8, 128], strides = [1, 1]} : vector<8x384xf32> to vector<8x128xf32>
    %73 = arith.addf %72, %12 : vector<8x128xf32>
    %74 = arith.mulf %62, %73 : vector<8x128xf32>
    %75 = arith.addf %71, %74 : vector<8x128xf32>
    %76 = math.tanh %75 : vector<8x128xf32>
    %cst_27 = arith.constant 1.000000e+00 : f32
    %77 = vector.broadcast %cst_27 : f32 to vector<8x128xf32>
    %78 = arith.subf %77, %70 : vector<8x128xf32>
    %79 = arith.mulf %78, %76 : vector<8x128xf32>
    %80 = arith.mulf %70, %45 : vector<8x128xf32>
    %81 = arith.addf %79, %80 : vector<8x128xf32>
    %82 = arith.index_cast %c1_i32 : i32 to index
    %c0_28 = arith.constant 0 : index
    %c0_29 = arith.constant 0 : index
    %83 = vector.load %arg9[%82, %c0_28, %c0_29] : memref<8x8x128xf32, #tpu.memory_space<vmem>>, vector<1x8x128xf32>
    %84 = vector.shape_cast %83 : vector<1x8x128xf32> to vector<8x128xf32>
    %85 = vector.shape_cast %81 : vector<8x128xf32> to vector<1x8x128xf32>
    tpu.vector_store %arg9[%82, %c0_28, %c0_29], %85 {strides = array<i32>} : memref<8x8x128xf32, #tpu.memory_space<vmem>>, vector<1x8x128xf32>,
    %c2_i32 = arith.constant 2 : i32
    %86 = arith.truncf %81 : vector<8x128xf32> to vector<8x128xbf16>
    %cst_30 = arith.constant dense<0.000000e+00> : vector<8x384xf32>
    %87 = tpu.matmul %86, %9, %cst_30 {dimension_numbers = #tpu.dot_dimension_numbers<[1], [0], [0], [1], [0, 0, 1, 1], [], []>} : vector<8x128xbf16>, vector<128x384xbf16>, vector<8x384xf32> -> vector<8x384xf32>
    %88 = arith.index_cast %c2_i32 : i32 to index
    %c0_31 = arith.constant 0 : index
    %c0_32 = arith.constant 0 : index
    %89 = vector.load %arg11[%88, %c0_31, %c0_32] : memref<8x8x384xf32, #tpu.memory_space<vmem>>, vector<1x8x384xf32>
    %90 = vector.shape_cast %89 : vector<1x8x384xf32> to vector<8x384xf32>
    %91 = vector.extract_strided_slice %90 {offsets = [0, 0], sizes = [8, 128], strides = [1, 1]} : vector<8x384xf32> to vector<8x128xf32>
    %92 = vector.extract_strided_slice %87 {offsets = [0, 0], sizes = [8, 128], strides = [1, 1]} : vector<8x384xf32> to vector<8x128xf32>
    %93 = arith.addf %91, %92 : vector<8x128xf32>
    %94 = arith.negf %93 : vector<8x128xf32>
    %95 = math.exp %94 : vector<8x128xf32>
    %cst_33 = arith.constant 1.000000e+00 : f32
    %96 = vector.broadcast %cst_33 : f32 to vector<8x128xf32>
    %97 = arith.addf %96, %95 : vector<8x128xf32>
    %98 = arith.divf %96, %97 : vector<8x128xf32>
    %99 = vector.extract_strided_slice %90 {offsets = [0, 128], sizes = [8, 128], strides = [1, 1]} : vector<8x384xf32> to vector<8x128xf32>
    %100 = vector.extract_strided_slice %87 {offsets = [0, 128], sizes = [8, 128], strides = [1, 1]} : vector<8x384xf32> to vector<8x128xf32>
    %101 = arith.addf %99, %100 : vector<8x128xf32>
    %102 = arith.negf %101 : vector<8x128xf32>
    %103 = math.exp %102 : vector<8x128xf32>
    %cst_34 = arith.constant 1.000000e+00 : f32
    %104 = vector.broadcast %cst_34 : f32 to vector<8x128xf32>
    %105 = arith.addf %104, %103 : vector<8x128xf32>
    %106 = arith.divf %104, %105 : vector<8x128xf32>
    %107 = vector.extract_strided_slice %90 {offsets = [0, 256], sizes = [8, 128], strides = [1, 1]} : vector<8x384xf32> to vector<8x128xf32>
    %108 = vector.extract_strided_slice %87 {offsets = [0, 256], sizes = [8, 128], strides = [1, 1]} : vector<8x384xf32> to vector<8x128xf32>
    %109 = arith.addf %108, %12 : vector<8x128xf32>
    %110 = arith.mulf %98, %109 : vector<8x128xf32>
    %111 = arith.addf %107, %110 : vector<8x128xf32>
    %112 = math.tanh %111 : vector<8x128xf32>
    %cst_35 = arith.constant 1.000000e+00 : f32
    %113 = vector.broadcast %cst_35 : f32 to vector<8x128xf32>
    %114 = arith.subf %113, %106 : vector<8x128xf32>
    %115 = arith.mulf %114, %112 : vector<8x128xf32>
    %116 = arith.mulf %106, %81 : vector<8x128xf32>
    %117 = arith.addf %115, %116 : vector<8x128xf32>
    %118 = arith.index_cast %c2_i32 : i32 to index
    %c0_36 = arith.constant 0 : index
    %c0_37 = arith.constant 0 : index
    %119 = vector.load %arg9[%118, %c0_36, %c0_37] : memref<8x8x128xf32, #tpu.memory_space<vmem>>, vector<1x8x128xf32>
    %120 = vector.shape_cast %119 : vector<1x8x128xf32> to vector<8x128xf32>
    %121 = vector.shape_cast %117 : vector<8x128xf32> to vector<1x8x128xf32>
    tpu.vector_store %arg9[%118, %c0_36, %c0_37], %121 {strides = array<i32>} : memref<8x8x128xf32, #tpu.memory_space<vmem>>, vector<1x8x128xf32>,
    %c3_i32 = arith.constant 3 : i32
    %122 = arith.truncf %117 : vector<8x128xf32> to vector<8x128xbf16>
    %cst_38 = arith.constant dense<0.000000e+00> : vector<8x384xf32>
    %123 = tpu.matmul %122, %9, %cst_38 {dimension_numbers = #tpu.dot_dimension_numbers<[1], [0], [0], [1], [0, 0, 1, 1], [], []>} : vector<8x128xbf16>, vector<128x384xbf16>, vector<8x384xf32> -> vector<8x384xf32>
    %124 = arith.index_cast %c3_i32 : i32 to index
    %c0_39 = arith.constant 0 : index
    %c0_40 = arith.constant 0 : index
    %125 = vector.load %arg11[%124, %c0_39, %c0_40] : memref<8x8x384xf32, #tpu.memory_space<vmem>>, vector<1x8x384xf32>
    %126 = vector.shape_cast %125 : vector<1x8x384xf32> to vector<8x384xf32>
    %127 = vector.extract_strided_slice %126 {offsets = [0, 0], sizes = [8, 128], strides = [1, 1]} : vector<8x384xf32> to vector<8x128xf32>
    %128 = vector.extract_strided_slice %123 {offsets = [0, 0], sizes = [8, 128], strides = [1, 1]} : vector<8x384xf32> to vector<8x128xf32>
    %129 = arith.addf %127, %128 : vector<8x128xf32>
    %130 = arith.negf %129 : vector<8x128xf32>
    %131 = math.exp %130 : vector<8x128xf32>
    %cst_41 = arith.constant 1.000000e+00 : f32
    %132 = vector.broadcast %cst_41 : f32 to vector<8x128xf32>
    %133 = arith.addf %132, %131 : vector<8x128xf32>
    %134 = arith.divf %132, %133 : vector<8x128xf32>
    %135 = vector.extract_strided_slice %126 {offsets = [0, 128], sizes = [8, 128], strides = [1, 1]} : vector<8x384xf32> to vector<8x128xf32>
    %136 = vector.extract_strided_slice %123 {offsets = [0, 128], sizes = [8, 128], strides = [1, 1]} : vector<8x384xf32> to vector<8x128xf32>
    %137 = arith.addf %135, %136 : vector<8x128xf32>
    %138 = arith.negf %137 : vector<8x128xf32>
    %139 = math.exp %138 : vector<8x128xf32>
    %cst_42 = arith.constant 1.000000e+00 : f32
    %140 = vector.broadcast %cst_42 : f32 to vector<8x128xf32>
    %141 = arith.addf %140, %139 : vector<8x128xf32>
    %142 = arith.divf %140, %141 : vector<8x128xf32>
    %143 = vector.extract_strided_slice %126 {offsets = [0, 256], sizes = [8, 128], strides = [1, 1]} : vector<8x384xf32> to vector<8x128xf32>
    %144 = vector.extract_strided_slice %123 {offsets = [0, 256], sizes = [8, 128], strides = [1, 1]} : vector<8x384xf32> to vector<8x128xf32>
    %145 = arith.addf %144, %12 : vector<8x128xf32>
    %146 = arith.mulf %134, %145 : vector<8x128xf32>
    %147 = arith.addf %143, %146 : vector<8x128xf32>
    %148 = math.tanh %147 : vector<8x128xf32>
    %cst_43 = arith.constant 1.000000e+00 : f32
    %149 = vector.broadcast %cst_43 : f32 to vector<8x128xf32>
    %150 = arith.subf %149, %142 : vector<8x128xf32>
    %151 = arith.mulf %150, %148 : vector<8x128xf32>
    %152 = arith.mulf %142, %117 : vector<8x128xf32>
    %153 = arith.addf %151, %152 : vector<8x128xf32>
    %154 = arith.index_cast %c3_i32 : i32 to index
    %c0_44 = arith.constant 0 : index
    %c0_45 = arith.constant 0 : index
    %155 = vector.load %arg9[%154, %c0_44, %c0_45] : memref<8x8x128xf32, #tpu.memory_space<vmem>>, vector<1x8x128xf32>
    %156 = vector.shape_cast %155 : vector<1x8x128xf32> to vector<8x128xf32>
    %157 = vector.shape_cast %153 : vector<8x128xf32> to vector<1x8x128xf32>
    tpu.vector_store %arg9[%154, %c0_44, %c0_45], %157 {strides = array<i32>} : memref<8x8x128xf32, #tpu.memory_space<vmem>>, vector<1x8x128xf32>,
    %c4_i32 = arith.constant 4 : i32
    %158 = arith.truncf %153 : vector<8x128xf32> to vector<8x128xbf16>
    %cst_46 = arith.constant dense<0.000000e+00> : vector<8x384xf32>
    %159 = tpu.matmul %158, %9, %cst_46 {dimension_numbers = #tpu.dot_dimension_numbers<[1], [0], [0], [1], [0, 0, 1, 1], [], []>} : vector<8x128xbf16>, vector<128x384xbf16>, vector<8x384xf32> -> vector<8x384xf32>
    %160 = arith.index_cast %c4_i32 : i32 to index
    %c0_47 = arith.constant 0 : index
    %c0_48 = arith.constant 0 : index
    %161 = vector.load %arg11[%160, %c0_47, %c0_48] : memref<8x8x384xf32, #tpu.memory_space<vmem>>, vector<1x8x384xf32>
    %162 = vector.shape_cast %161 : vector<1x8x384xf32> to vector<8x384xf32>
    %163 = vector.extract_strided_slice %162 {offsets = [0, 0], sizes = [8, 128], strides = [1, 1]} : vector<8x384xf32> to vector<8x128xf32>
    %164 = vector.extract_strided_slice %159 {offsets = [0, 0], sizes = [8, 128], strides = [1, 1]} : vector<8x384xf32> to vector<8x128xf32>
    %165 = arith.addf %163, %164 : vector<8x128xf32>
    %166 = arith.negf %165 : vector<8x128xf32>
    %167 = math.exp %166 : vector<8x128xf32>
    %cst_49 = arith.constant 1.000000e+00 : f32
    %168 = vector.broadcast %cst_49 : f32 to vector<8x128xf32>
    %169 = arith.addf %168, %167 : vector<8x128xf32>
    %170 = arith.divf %168, %169 : vector<8x128xf32>
    %171 = vector.extract_strided_slice %162 {offsets = [0, 128], sizes = [8, 128], strides = [1, 1]} : vector<8x384xf32> to vector<8x128xf32>
    %172 = vector.extract_strided_slice %159 {offsets = [0, 128], sizes = [8, 128], strides = [1, 1]} : vector<8x384xf32> to vector<8x128xf32>
    %173 = arith.addf %171, %172 : vector<8x128xf32>
    %174 = arith.negf %173 : vector<8x128xf32>
    %175 = math.exp %174 : vector<8x128xf32>
    %cst_50 = arith.constant 1.000000e+00 : f32
    %176 = vector.broadcast %cst_50 : f32 to vector<8x128xf32>
    %177 = arith.addf %176, %175 : vector<8x128xf32>
    %178 = arith.divf %176, %177 : vector<8x128xf32>
    %179 = vector.extract_strided_slice %162 {offsets = [0, 256], sizes = [8, 128], strides = [1, 1]} : vector<8x384xf32> to vector<8x128xf32>
    %180 = vector.extract_strided_slice %159 {offsets = [0, 256], sizes = [8, 128], strides = [1, 1]} : vector<8x384xf32> to vector<8x128xf32>
    %181 = arith.addf %180, %12 : vector<8x128xf32>
    %182 = arith.mulf %170, %181 : vector<8x128xf32>
    %183 = arith.addf %179, %182 : vector<8x128xf32>
    %184 = math.tanh %183 : vector<8x128xf32>
    %cst_51 = arith.constant 1.000000e+00 : f32
    %185 = vector.broadcast %cst_51 : f32 to vector<8x128xf32>
    %186 = arith.subf %185, %178 : vector<8x128xf32>
    %187 = arith.mulf %186, %184 : vector<8x128xf32>
    %188 = arith.mulf %178, %153 : vector<8x128xf32>
    %189 = arith.addf %187, %188 : vector<8x128xf32>
    %190 = arith.index_cast %c4_i32 : i32 to index
    %c0_52 = arith.constant 0 : index
    %c0_53 = arith.constant 0 : index
    %191 = vector.load %arg9[%190, %c0_52, %c0_53] : memref<8x8x128xf32, #tpu.memory_space<vmem>>, vector<1x8x128xf32>
    %192 = vector.shape_cast %191 : vector<1x8x128xf32> to vector<8x128xf32>
    %193 = vector.shape_cast %189 : vector<8x128xf32> to vector<1x8x128xf32>
    tpu.vector_store %arg9[%190, %c0_52, %c0_53], %193 {strides = array<i32>} : memref<8x8x128xf32, #tpu.memory_space<vmem>>, vector<1x8x128xf32>,
    %c5_i32 = arith.constant 5 : i32
    %194 = arith.truncf %189 : vector<8x128xf32> to vector<8x128xbf16>
    %cst_54 = arith.constant dense<0.000000e+00> : vector<8x384xf32>
    %195 = tpu.matmul %194, %9, %cst_54 {dimension_numbers = #tpu.dot_dimension_numbers<[1], [0], [0], [1], [0, 0, 1, 1], [], []>} : vector<8x128xbf16>, vector<128x384xbf16>, vector<8x384xf32> -> vector<8x384xf32>
    %196 = arith.index_cast %c5_i32 : i32 to index
    %c0_55 = arith.constant 0 : index
    %c0_56 = arith.constant 0 : index
    %197 = vector.load %arg11[%196, %c0_55, %c0_56] : memref<8x8x384xf32, #tpu.memory_space<vmem>>, vector<1x8x384xf32>
    %198 = vector.shape_cast %197 : vector<1x8x384xf32> to vector<8x384xf32>
    %199 = vector.extract_strided_slice %198 {offsets = [0, 0], sizes = [8, 128], strides = [1, 1]} : vector<8x384xf32> to vector<8x128xf32>
    %200 = vector.extract_strided_slice %195 {offsets = [0, 0], sizes = [8, 128], strides = [1, 1]} : vector<8x384xf32> to vector<8x128xf32>
    %201 = arith.addf %199, %200 : vector<8x128xf32>
    %202 = arith.negf %201 : vector<8x128xf32>
    %203 = math.exp %202 : vector<8x128xf32>
    %cst_57 = arith.constant 1.000000e+00 : f32
    %204 = vector.broadcast %cst_57 : f32 to vector<8x128xf32>
    %205 = arith.addf %204, %203 : vector<8x128xf32>
    %206 = arith.divf %204, %205 : vector<8x128xf32>
    %207 = vector.extract_strided_slice %198 {offsets = [0, 128], sizes = [8, 128], strides = [1, 1]} : vector<8x384xf32> to vector<8x128xf32>
    %208 = vector.extract_strided_slice %195 {offsets = [0, 128], sizes = [8, 128], strides = [1, 1]} : vector<8x384xf32> to vector<8x128xf32>
    %209 = arith.addf %207, %208 : vector<8x128xf32>
    %210 = arith.negf %209 : vector<8x128xf32>
    %211 = math.exp %210 : vector<8x128xf32>
    %cst_58 = arith.constant 1.000000e+00 : f32
    %212 = vector.broadcast %cst_58 : f32 to vector<8x128xf32>
    %213 = arith.addf %212, %211 : vector<8x128xf32>
    %214 = arith.divf %212, %213 : vector<8x128xf32>
    %215 = vector.extract_strided_slice %198 {offsets = [0, 256], sizes = [8, 128], strides = [1, 1]} : vector<8x384xf32> to vector<8x128xf32>
    %216 = vector.extract_strided_slice %195 {offsets = [0, 256], sizes = [8, 128], strides = [1, 1]} : vector<8x384xf32> to vector<8x128xf32>
    %217 = arith.addf %216, %12 : vector<8x128xf32>
    %218 = arith.mulf %206, %217 : vector<8x128xf32>
    %219 = arith.addf %215, %218 : vector<8x128xf32>
    %220 = math.tanh %219 : vector<8x128xf32>
    %cst_59 = arith.constant 1.000000e+00 : f32
    %221 = vector.broadcast %cst_59 : f32 to vector<8x128xf32>
    %222 = arith.subf %221, %214 : vector<8x128xf32>
    %223 = arith.mulf %222, %220 : vector<8x128xf32>
    %224 = arith.mulf %214, %189 : vector<8x128xf32>
    %225 = arith.addf %223, %224 : vector<8x128xf32>
    %226 = arith.index_cast %c5_i32 : i32 to index
    %c0_60 = arith.constant 0 : index
    %c0_61 = arith.constant 0 : index
    %227 = vector.load %arg9[%226, %c0_60, %c0_61] : memref<8x8x128xf32, #tpu.memory_space<vmem>>, vector<1x8x128xf32>
    %228 = vector.shape_cast %227 : vector<1x8x128xf32> to vector<8x128xf32>
    %229 = vector.shape_cast %225 : vector<8x128xf32> to vector<1x8x128xf32>
    tpu.vector_store %arg9[%226, %c0_60, %c0_61], %229 {strides = array<i32>} : memref<8x8x128xf32, #tpu.memory_space<vmem>>, vector<1x8x128xf32>,
    %c6_i32 = arith.constant 6 : i32
    %230 = arith.truncf %225 : vector<8x128xf32> to vector<8x128xbf16>
    %cst_62 = arith.constant dense<0.000000e+00> : vector<8x384xf32>
    %231 = tpu.matmul %230, %9, %cst_62 {dimension_numbers = #tpu.dot_dimension_numbers<[1], [0], [0], [1], [0, 0, 1, 1], [], []>} : vector<8x128xbf16>, vector<128x384xbf16>, vector<8x384xf32> -> vector<8x384xf32>
    %232 = arith.index_cast %c6_i32 : i32 to index
    %c0_63 = arith.constant 0 : index
    %c0_64 = arith.constant 0 : index
    %233 = vector.load %arg11[%232, %c0_63, %c0_64] : memref<8x8x384xf32, #tpu.memory_space<vmem>>, vector<1x8x384xf32>
    %234 = vector.shape_cast %233 : vector<1x8x384xf32> to vector<8x384xf32>
    %235 = vector.extract_strided_slice %234 {offsets = [0, 0], sizes = [8, 128], strides = [1, 1]} : vector<8x384xf32> to vector<8x128xf32>
    %236 = vector.extract_strided_slice %231 {offsets = [0, 0], sizes = [8, 128], strides = [1, 1]} : vector<8x384xf32> to vector<8x128xf32>
    %237 = arith.addf %235, %236 : vector<8x128xf32>
    %238 = arith.negf %237 : vector<8x128xf32>
    %239 = math.exp %238 : vector<8x128xf32>
    %cst_65 = arith.constant 1.000000e+00 : f32
    %240 = vector.broadcast %cst_65 : f32 to vector<8x128xf32>
    %241 = arith.addf %240, %239 : vector<8x128xf32>
    %242 = arith.divf %240, %241 : vector<8x128xf32>
    %243 = vector.extract_strided_slice %234 {offsets = [0, 128], sizes = [8, 128], strides = [1, 1]} : vector<8x384xf32> to vector<8x128xf32>
    %244 = vector.extract_strided_slice %231 {offsets = [0, 128], sizes = [8, 128], strides = [1, 1]} : vector<8x384xf32> to vector<8x128xf32>
    %245 = arith.addf %243, %244 : vector<8x128xf32>
    %246 = arith.negf %245 : vector<8x128xf32>
    %247 = math.exp %246 : vector<8x128xf32>
    %cst_66 = arith.constant 1.000000e+00 : f32
    %248 = vector.broadcast %cst_66 : f32 to vector<8x128xf32>
    %249 = arith.addf %248, %247 : vector<8x128xf32>
    %250 = arith.divf %248, %249 : vector<8x128xf32>
    %251 = vector.extract_strided_slice %234 {offsets = [0, 256], sizes = [8, 128], strides = [1, 1]} : vector<8x384xf32> to vector<8x128xf32>
    %252 = vector.extract_strided_slice %231 {offsets = [0, 256], sizes = [8, 128], strides = [1, 1]} : vector<8x384xf32> to vector<8x128xf32>
    %253 = arith.addf %252, %12 : vector<8x128xf32>
    %254 = arith.mulf %242, %253 : vector<8x128xf32>
    %255 = arith.addf %251, %254 : vector<8x128xf32>
    %256 = math.tanh %255 : vector<8x128xf32>
    %cst_67 = arith.constant 1.000000e+00 : f32
    %257 = vector.broadcast %cst_67 : f32 to vector<8x128xf32>
    %258 = arith.subf %257, %250 : vector<8x128xf32>
    %259 = arith.mulf %258, %256 : vector<8x128xf32>
    %260 = arith.mulf %250, %225 : vector<8x128xf32>
    %261 = arith.addf %259, %260 : vector<8x128xf32>
    %262 = arith.index_cast %c6_i32 : i32 to index
    %c0_68 = arith.constant 0 : index
    %c0_69 = arith.constant 0 : index
    %263 = vector.load %arg9[%262, %c0_68, %c0_69] : memref<8x8x128xf32, #tpu.memory_space<vmem>>, vector<1x8x128xf32>
    %264 = vector.shape_cast %263 : vector<1x8x128xf32> to vector<8x128xf32>
    %265 = vector.shape_cast %261 : vector<8x128xf32> to vector<1x8x128xf32>
    tpu.vector_store %arg9[%262, %c0_68, %c0_69], %265 {strides = array<i32>} : memref<8x8x128xf32, #tpu.memory_space<vmem>>, vector<1x8x128xf32>,
    %c7_i32 = arith.constant 7 : i32
    %266 = arith.truncf %261 : vector<8x128xf32> to vector<8x128xbf16>
    %cst_70 = arith.constant dense<0.000000e+00> : vector<8x384xf32>
    %267 = tpu.matmul %266, %9, %cst_70 {dimension_numbers = #tpu.dot_dimension_numbers<[1], [0], [0], [1], [0, 0, 1, 1], [], []>} : vector<8x128xbf16>, vector<128x384xbf16>, vector<8x384xf32> -> vector<8x384xf32>
    %268 = arith.index_cast %c7_i32 : i32 to index
    %c0_71 = arith.constant 0 : index
    %c0_72 = arith.constant 0 : index
    %269 = vector.load %arg11[%268, %c0_71, %c0_72] : memref<8x8x384xf32, #tpu.memory_space<vmem>>, vector<1x8x384xf32>
    %270 = vector.shape_cast %269 : vector<1x8x384xf32> to vector<8x384xf32>
    %271 = vector.extract_strided_slice %270 {offsets = [0, 0], sizes = [8, 128], strides = [1, 1]} : vector<8x384xf32> to vector<8x128xf32>
    %272 = vector.extract_strided_slice %267 {offsets = [0, 0], sizes = [8, 128], strides = [1, 1]} : vector<8x384xf32> to vector<8x128xf32>
    %273 = arith.addf %271, %272 : vector<8x128xf32>
    %274 = arith.negf %273 : vector<8x128xf32>
    %275 = math.exp %274 : vector<8x128xf32>
    %cst_73 = arith.constant 1.000000e+00 : f32
    %276 = vector.broadcast %cst_73 : f32 to vector<8x128xf32>
    %277 = arith.addf %276, %275 : vector<8x128xf32>
    %278 = arith.divf %276, %277 : vector<8x128xf32>
    %279 = vector.extract_strided_slice %270 {offsets = [0, 128], sizes = [8, 128], strides = [1, 1]} : vector<8x384xf32> to vector<8x128xf32>
    %280 = vector.extract_strided_slice %267 {offsets = [0, 128], sizes = [8, 128], strides = [1, 1]} : vector<8x384xf32> to vector<8x128xf32>
    %281 = arith.addf %279, %280 : vector<8x128xf32>
    %282 = arith.negf %281 : vector<8x128xf32>
    %283 = math.exp %282 : vector<8x128xf32>
    %cst_74 = arith.constant 1.000000e+00 : f32
    %284 = vector.broadcast %cst_74 : f32 to vector<8x128xf32>
    %285 = arith.addf %284, %283 : vector<8x128xf32>
    %286 = arith.divf %284, %285 : vector<8x128xf32>
    %287 = vector.extract_strided_slice %270 {offsets = [0, 256], sizes = [8, 128], strides = [1, 1]} : vector<8x384xf32> to vector<8x128xf32>
    %288 = vector.extract_strided_slice %267 {offsets = [0, 256], sizes = [8, 128], strides = [1, 1]} : vector<8x384xf32> to vector<8x128xf32>
    %289 = arith.addf %288, %12 : vector<8x128xf32>
    %290 = arith.mulf %278, %289 : vector<8x128xf32>
    %291 = arith.addf %287, %290 : vector<8x128xf32>
    %292 = math.tanh %291 : vector<8x128xf32>
    %cst_75 = arith.constant 1.000000e+00 : f32
    %293 = vector.broadcast %cst_75 : f32 to vector<8x128xf32>
    %294 = arith.subf %293, %286 : vector<8x128xf32>
    %295 = arith.mulf %294, %292 : vector<8x128xf32>
    %296 = arith.mulf %286, %261 : vector<8x128xf32>
    %297 = arith.addf %295, %296 : vector<8x128xf32>
    %298 = arith.index_cast %c7_i32 : i32 to index
    %c0_76 = arith.constant 0 : index
    %c0_77 = arith.constant 0 : index
    %299 = vector.load %arg9[%298, %c0_76, %c0_77] : memref<8x8x128xf32, #tpu.memory_space<vmem>>, vector<1x8x128xf32>
    %300 = vector.shape_cast %299 : vector<1x8x128xf32> to vector<8x128xf32>
    %301 = vector.shape_cast %297 : vector<8x128xf32> to vector<1x8x128xf32>
    tpu.vector_store %arg9[%298, %c0_76, %c0_77], %301 {strides = array<i32>} : memref<8x8x128xf32, #tpu.memory_space<vmem>>, vector<1x8x128xf32>,
    %c8_i32 = arith.constant 8 : i32
    %c0_78 = arith.constant 0 : index
    %c0_79 = arith.constant 0 : index
    %c0_80 = arith.constant 0 : index
    %302 = vector.load %arg10[%c0_78, %c0_79, %c0_80] : memref<2x8x128xf32, #tpu.memory_space<vmem>>, vector<1x8x128xf32>
    %303 = vector.shape_cast %302 : vector<1x8x128xf32> to vector<8x128xf32>
    %304 = vector.shape_cast %297 : vector<8x128xf32> to vector<1x8x128xf32>
    tpu.vector_store %arg10[%c0_78, %c0_79, %c0_80], %304 {strides = array<i32>} : memref<2x8x128xf32, #tpu.memory_space<vmem>>, vector<1x8x128xf32>,
    %c0_81 = arith.constant 0 : index
    %c0_82 = arith.constant 0 : index
    %c0_83 = arith.constant 0 : index
    %305 = vector.load %arg9[%c0_81, %c0_82, %c0_83] : memref<8x8x128xf32, #tpu.memory_space<vmem>>, vector<8x8x128xf32>
    %306 = arith.truncf %305 : vector<8x8x128xf32> to vector<8x8x128xbf16>
    %307 = vector.shape_cast %306 : vector<8x8x128xbf16> to vector<64x128xbf16>
    %c0_84 = arith.constant 0 : index
    %c0_85 = arith.constant 0 : index
    %308 = vector.load %arg5[%c0_84, %c0_85] : memref<128x384xbf16, #tpu.memory_space<vmem>>, vector<128x384xbf16>
    %cst_86 = arith.constant dense<0.000000e+00> : vector<64x384xf32>
    %309 = tpu.matmul %307, %308, %cst_86 {dimension_numbers = #tpu.dot_dimension_numbers<[1], [0], [0], [1], [0, 0, 1, 1], [], []>} : vector<64x128xbf16>, vector<128x384xbf16>, vector<64x384xf32> -> vector<64x384xf32>
    %c0_87 = arith.constant 0 : index
    %c0_88 = arith.constant 0 : index
    %310 = vector.load %arg7[%c0_87, %c0_88] : memref<1x384xf32, #tpu.memory_space<vmem>>, vector<1x384xf32>
    %311 = vector.broadcast %310 : vector<1x384xf32> to vector<64x384xf32>
    %312 = arith.addf %309, %311 : vector<64x384xf32>
    %313 = vector.shape_cast %312 : vector<64x384xf32> to vector<8x8x384xf32>
    %c0_89 = arith.constant 0 : index
    %c0_90 = arith.constant 0 : index
    %c0_91 = arith.constant 0 : index
    %314 = vector.load %arg11[%c0_89, %c0_90, %c0_91] : memref<8x8x384xf32, #tpu.memory_space<vmem>>, vector<8x8x384xf32>
    tpu.vector_store %arg11[%c0_89, %c0_90, %c0_91], %313 {strides = array<i32>} : memref<8x8x384xf32, #tpu.memory_space<vmem>>, vector<8x8x384xf32>,
    %c0_92 = arith.constant 0 : index
    %c0_93 = arith.constant 0 : index
    %315 = vector.load %arg6[%c0_92, %c0_93] : memref<128x384xbf16, #tpu.memory_space<vmem>>, vector<128x384xbf16>
    %c0_94 = arith.constant 0 : index
    %c0_95 = arith.constant 0 : index
    %316 = vector.load %arg8[%c0_94, %c0_95] : memref<1x128xf32, #tpu.memory_space<vmem>>, vector<1x128xf32>
    %317 = vector.shape_cast %316 : vector<1x128xf32> to vector<1x128xf32>
    %318 = vector.broadcast %317 : vector<1x128xf32> to vector<8x128xf32>
    %cst_96 = arith.constant 0.000000e+00 : f32
    %319 = vector.broadcast %cst_96 : f32 to vector<8x128xf32>
    %c0_i32_97 = arith.constant 0 : i32
    %320 = arith.truncf %319 : vector<8x128xf32> to vector<8x128xbf16>
    %cst_98 = arith.constant dense<0.000000e+00> : vector<8x384xf32>
    %321 = tpu.matmul %320, %315, %cst_98 {dimension_numbers = #tpu.dot_dimension_numbers<[1], [0], [0], [1], [0, 0, 1, 1], [], []>} : vector<8x128xbf16>, vector<128x384xbf16>, vector<8x384xf32> -> vector<8x384xf32>
    %322 = arith.index_cast %c0_i32_97 : i32 to index
    %c0_99 = arith.constant 0 : index
    %c0_100 = arith.constant 0 : index
    %323 = vector.load %arg11[%322, %c0_99, %c0_100] : memref<8x8x384xf32, #tpu.memory_space<vmem>>, vector<1x8x384xf32>
    %324 = vector.shape_cast %323 : vector<1x8x384xf32> to vector<8x384xf32>
    %325 = vector.extract_strided_slice %324 {offsets = [0, 0], sizes = [8, 128], strides = [1, 1]} : vector<8x384xf32> to vector<8x128xf32>
    %326 = vector.extract_strided_slice %321 {offsets = [0, 0], sizes = [8, 128], strides = [1, 1]} : vector<8x384xf32> to vector<8x128xf32>
    %327 = arith.addf %325, %326 : vector<8x128xf32>
    %328 = arith.negf %327 : vector<8x128xf32>
    %329 = math.exp %328 : vector<8x128xf32>
    %cst_101 = arith.constant 1.000000e+00 : f32
    %330 = vector.broadcast %cst_101 : f32 to vector<8x128xf32>
    %331 = arith.addf %330, %329 : vector<8x128xf32>
    %332 = arith.divf %330, %331 : vector<8x128xf32>
    %333 = vector.extract_strided_slice %324 {offsets = [0, 128], sizes = [8, 128], strides = [1, 1]} : vector<8x384xf32> to vector<8x128xf32>
    %334 = vector.extract_strided_slice %321 {offsets = [0, 128], sizes = [8, 128], strides = [1, 1]} : vector<8x384xf32> to vector<8x128xf32>
    %335 = arith.addf %333, %334 : vector<8x128xf32>
    %336 = arith.negf %335 : vector<8x128xf32>
    %337 = math.exp %336 : vector<8x128xf32>
    %cst_102 = arith.constant 1.000000e+00 : f32
    %338 = vector.broadcast %cst_102 : f32 to vector<8x128xf32>
    %339 = arith.addf %338, %337 : vector<8x128xf32>
    %340 = arith.divf %338, %339 : vector<8x128xf32>
    %341 = vector.extract_strided_slice %324 {offsets = [0, 256], sizes = [8, 128], strides = [1, 1]} : vector<8x384xf32> to vector<8x128xf32>
    %342 = vector.extract_strided_slice %321 {offsets = [0, 256], sizes = [8, 128], strides = [1, 1]} : vector<8x384xf32> to vector<8x128xf32>
    %343 = arith.addf %342, %318 : vector<8x128xf32>
    %344 = arith.mulf %332, %343 : vector<8x128xf32>
    %345 = arith.addf %341, %344 : vector<8x128xf32>
    %346 = math.tanh %345 : vector<8x128xf32>
    %cst_103 = arith.constant 1.000000e+00 : f32
    %347 = vector.broadcast %cst_103 : f32 to vector<8x128xf32>
    %348 = arith.subf %347, %340 : vector<8x128xf32>
    %349 = arith.mulf %348, %346 : vector<8x128xf32>
    %350 = arith.mulf %340, %319 : vector<8x128xf32>
    %351 = arith.addf %349, %350 : vector<8x128xf32>
    %352 = arith.index_cast %c0_i32_97 : i32 to index
    %c0_104 = arith.constant 0 : index
    %c0_105 = arith.constant 0 : index
    %353 = vector.load %arg9[%352, %c0_104, %c0_105] : memref<8x8x128xf32, #tpu.memory_space<vmem>>, vector<1x8x128xf32>
    %354 = vector.shape_cast %353 : vector<1x8x128xf32> to vector<8x128xf32>
    %355 = vector.shape_cast %351 : vector<8x128xf32> to vector<1x8x128xf32>
    tpu.vector_store %arg9[%352, %c0_104, %c0_105], %355 {strides = array<i32>} : memref<8x8x128xf32, #tpu.memory_space<vmem>>, vector<1x8x128xf32>,
    %c1_i32_106 = arith.constant 1 : i32
    %356 = arith.truncf %351 : vector<8x128xf32> to vector<8x128xbf16>
    %cst_107 = arith.constant dense<0.000000e+00> : vector<8x384xf32>
    %357 = tpu.matmul %356, %315, %cst_107 {dimension_numbers = #tpu.dot_dimension_numbers<[1], [0], [0], [1], [0, 0, 1, 1], [], []>} : vector<8x128xbf16>, vector<128x384xbf16>, vector<8x384xf32> -> vector<8x384xf32>
    %358 = arith.index_cast %c1_i32_106 : i32 to index
    %c0_108 = arith.constant 0 : index
    %c0_109 = arith.constant 0 : index
    %359 = vector.load %arg11[%358, %c0_108, %c0_109] : memref<8x8x384xf32, #tpu.memory_space<vmem>>, vector<1x8x384xf32>
    %360 = vector.shape_cast %359 : vector<1x8x384xf32> to vector<8x384xf32>
    %361 = vector.extract_strided_slice %360 {offsets = [0, 0], sizes = [8, 128], strides = [1, 1]} : vector<8x384xf32> to vector<8x128xf32>
    %362 = vector.extract_strided_slice %357 {offsets = [0, 0], sizes = [8, 128], strides = [1, 1]} : vector<8x384xf32> to vector<8x128xf32>
    %363 = arith.addf %361, %362 : vector<8x128xf32>
    %364 = arith.negf %363 : vector<8x128xf32>
    %365 = math.exp %364 : vector<8x128xf32>
    %cst_110 = arith.constant 1.000000e+00 : f32
    %366 = vector.broadcast %cst_110 : f32 to vector<8x128xf32>
    %367 = arith.addf %366, %365 : vector<8x128xf32>
    %368 = arith.divf %366, %367 : vector<8x128xf32>
    %369 = vector.extract_strided_slice %360 {offsets = [0, 128], sizes = [8, 128], strides = [1, 1]} : vector<8x384xf32> to vector<8x128xf32>
    %370 = vector.extract_strided_slice %357 {offsets = [0, 128], sizes = [8, 128], strides = [1, 1]} : vector<8x384xf32> to vector<8x128xf32>
    %371 = arith.addf %369, %370 : vector<8x128xf32>
    %372 = arith.negf %371 : vector<8x128xf32>
    %373 = math.exp %372 : vector<8x128xf32>
    %cst_111 = arith.constant 1.000000e+00 : f32
    %374 = vector.broadcast %cst_111 : f32 to vector<8x128xf32>
    %375 = arith.addf %374, %373 : vector<8x128xf32>
    %376 = arith.divf %374, %375 : vector<8x128xf32>
    %377 = vector.extract_strided_slice %360 {offsets = [0, 256], sizes = [8, 128], strides = [1, 1]} : vector<8x384xf32> to vector<8x128xf32>
    %378 = vector.extract_strided_slice %357 {offsets = [0, 256], sizes = [8, 128], strides = [1, 1]} : vector<8x384xf32> to vector<8x128xf32>
    %379 = arith.addf %378, %318 : vector<8x128xf32>
    %380 = arith.mulf %368, %379 : vector<8x128xf32>
    %381 = arith.addf %377, %380 : vector<8x128xf32>
    %382 = math.tanh %381 : vector<8x128xf32>
    %cst_112 = arith.constant 1.000000e+00 : f32
    %383 = vector.broadcast %cst_112 : f32 to vector<8x128xf32>
    %384 = arith.subf %383, %376 : vector<8x128xf32>
    %385 = arith.mulf %384, %382 : vector<8x128xf32>
    %386 = arith.mulf %376, %351 : vector<8x128xf32>
    %387 = arith.addf %385, %386 : vector<8x128xf32>
    %388 = arith.index_cast %c1_i32_106 : i32 to index
    %c0_113 = arith.constant 0 : index
    %c0_114 = arith.constant 0 : index
    %389 = vector.load %arg9[%388, %c0_113, %c0_114] : memref<8x8x128xf32, #tpu.memory_space<vmem>>, vector<1x8x128xf32>
    %390 = vector.shape_cast %389 : vector<1x8x128xf32> to vector<8x128xf32>
    %391 = vector.shape_cast %387 : vector<8x128xf32> to vector<1x8x128xf32>
    tpu.vector_store %arg9[%388, %c0_113, %c0_114], %391 {strides = array<i32>} : memref<8x8x128xf32, #tpu.memory_space<vmem>>, vector<1x8x128xf32>,
    %c2_i32_115 = arith.constant 2 : i32
    %392 = arith.truncf %387 : vector<8x128xf32> to vector<8x128xbf16>
    %cst_116 = arith.constant dense<0.000000e+00> : vector<8x384xf32>
    %393 = tpu.matmul %392, %315, %cst_116 {dimension_numbers = #tpu.dot_dimension_numbers<[1], [0], [0], [1], [0, 0, 1, 1], [], []>} : vector<8x128xbf16>, vector<128x384xbf16>, vector<8x384xf32> -> vector<8x384xf32>
    %394 = arith.index_cast %c2_i32_115 : i32 to index
    %c0_117 = arith.constant 0 : index
    %c0_118 = arith.constant 0 : index
    %395 = vector.load %arg11[%394, %c0_117, %c0_118] : memref<8x8x384xf32, #tpu.memory_space<vmem>>, vector<1x8x384xf32>
    %396 = vector.shape_cast %395 : vector<1x8x384xf32> to vector<8x384xf32>
    %397 = vector.extract_strided_slice %396 {offsets = [0, 0], sizes = [8, 128], strides = [1, 1]} : vector<8x384xf32> to vector<8x128xf32>
    %398 = vector.extract_strided_slice %393 {offsets = [0, 0], sizes = [8, 128], strides = [1, 1]} : vector<8x384xf32> to vector<8x128xf32>
    %399 = arith.addf %397, %398 : vector<8x128xf32>
    %400 = arith.negf %399 : vector<8x128xf32>
    %401 = math.exp %400 : vector<8x128xf32>
    %cst_119 = arith.constant 1.000000e+00 : f32
    %402 = vector.broadcast %cst_119 : f32 to vector<8x128xf32>
    %403 = arith.addf %402, %401 : vector<8x128xf32>
    %404 = arith.divf %402, %403 : vector<8x128xf32>
    %405 = vector.extract_strided_slice %396 {offsets = [0, 128], sizes = [8, 128], strides = [1, 1]} : vector<8x384xf32> to vector<8x128xf32>
    %406 = vector.extract_strided_slice %393 {offsets = [0, 128], sizes = [8, 128], strides = [1, 1]} : vector<8x384xf32> to vector<8x128xf32>
    %407 = arith.addf %405, %406 : vector<8x128xf32>
    %408 = arith.negf %407 : vector<8x128xf32>
    %409 = math.exp %408 : vector<8x128xf32>
    %cst_120 = arith.constant 1.000000e+00 : f32
    %410 = vector.broadcast %cst_120 : f32 to vector<8x128xf32>
    %411 = arith.addf %410, %409 : vector<8x128xf32>
    %412 = arith.divf %410, %411 : vector<8x128xf32>
    %413 = vector.extract_strided_slice %396 {offsets = [0, 256], sizes = [8, 128], strides = [1, 1]} : vector<8x384xf32> to vector<8x128xf32>
    %414 = vector.extract_strided_slice %393 {offsets = [0, 256], sizes = [8, 128], strides = [1, 1]} : vector<8x384xf32> to vector<8x128xf32>
    %415 = arith.addf %414, %318 : vector<8x128xf32>
    %416 = arith.mulf %404, %415 : vector<8x128xf32>
    %417 = arith.addf %413, %416 : vector<8x128xf32>
    %418 = math.tanh %417 : vector<8x128xf32>
    %cst_121 = arith.constant 1.000000e+00 : f32
    %419 = vector.broadcast %cst_121 : f32 to vector<8x128xf32>
    %420 = arith.subf %419, %412 : vector<8x128xf32>
    %421 = arith.mulf %420, %418 : vector<8x128xf32>
    %422 = arith.mulf %412, %387 : vector<8x128xf32>
    %423 = arith.addf %421, %422 : vector<8x128xf32>
    %424 = arith.index_cast %c2_i32_115 : i32 to index
    %c0_122 = arith.constant 0 : index
    %c0_123 = arith.constant 0 : index
    %425 = vector.load %arg9[%424, %c0_122, %c0_123] : memref<8x8x128xf32, #tpu.memory_space<vmem>>, vector<1x8x128xf32>
    %426 = vector.shape_cast %425 : vector<1x8x128xf32> to vector<8x128xf32>
    %427 = vector.shape_cast %423 : vector<8x128xf32> to vector<1x8x128xf32>
    tpu.vector_store %arg9[%424, %c0_122, %c0_123], %427 {strides = array<i32>} : memref<8x8x128xf32, #tpu.memory_space<vmem>>, vector<1x8x128xf32>,
    %c3_i32_124 = arith.constant 3 : i32
    %428 = arith.truncf %423 : vector<8x128xf32> to vector<8x128xbf16>
    %cst_125 = arith.constant dense<0.000000e+00> : vector<8x384xf32>
    %429 = tpu.matmul %428, %315, %cst_125 {dimension_numbers = #tpu.dot_dimension_numbers<[1], [0], [0], [1], [0, 0, 1, 1], [], []>} : vector<8x128xbf16>, vector<128x384xbf16>, vector<8x384xf32> -> vector<8x384xf32>
    %430 = arith.index_cast %c3_i32_124 : i32 to index
    %c0_126 = arith.constant 0 : index
    %c0_127 = arith.constant 0 : index
    %431 = vector.load %arg11[%430, %c0_126, %c0_127] : memref<8x8x384xf32, #tpu.memory_space<vmem>>, vector<1x8x384xf32>
    %432 = vector.shape_cast %431 : vector<1x8x384xf32> to vector<8x384xf32>
    %433 = vector.extract_strided_slice %432 {offsets = [0, 0], sizes = [8, 128], strides = [1, 1]} : vector<8x384xf32> to vector<8x128xf32>
    %434 = vector.extract_strided_slice %429 {offsets = [0, 0], sizes = [8, 128], strides = [1, 1]} : vector<8x384xf32> to vector<8x128xf32>
    %435 = arith.addf %433, %434 : vector<8x128xf32>
    %436 = arith.negf %435 : vector<8x128xf32>
    %437 = math.exp %436 : vector<8x128xf32>
    %cst_128 = arith.constant 1.000000e+00 : f32
    %438 = vector.broadcast %cst_128 : f32 to vector<8x128xf32>
    %439 = arith.addf %438, %437 : vector<8x128xf32>
    %440 = arith.divf %438, %439 : vector<8x128xf32>
    %441 = vector.extract_strided_slice %432 {offsets = [0, 128], sizes = [8, 128], strides = [1, 1]} : vector<8x384xf32> to vector<8x128xf32>
    %442 = vector.extract_strided_slice %429 {offsets = [0, 128], sizes = [8, 128], strides = [1, 1]} : vector<8x384xf32> to vector<8x128xf32>
    %443 = arith.addf %441, %442 : vector<8x128xf32>
    %444 = arith.negf %443 : vector<8x128xf32>
    %445 = math.exp %444 : vector<8x128xf32>
    %cst_129 = arith.constant 1.000000e+00 : f32
    %446 = vector.broadcast %cst_129 : f32 to vector<8x128xf32>
    %447 = arith.addf %446, %445 : vector<8x128xf32>
    %448 = arith.divf %446, %447 : vector<8x128xf32>
    %449 = vector.extract_strided_slice %432 {offsets = [0, 256], sizes = [8, 128], strides = [1, 1]} : vector<8x384xf32> to vector<8x128xf32>
    %450 = vector.extract_strided_slice %429 {offsets = [0, 256], sizes = [8, 128], strides = [1, 1]} : vector<8x384xf32> to vector<8x128xf32>
    %451 = arith.addf %450, %318 : vector<8x128xf32>
    %452 = arith.mulf %440, %451 : vector<8x128xf32>
    %453 = arith.addf %449, %452 : vector<8x128xf32>
    %454 = math.tanh %453 : vector<8x128xf32>
    %cst_130 = arith.constant 1.000000e+00 : f32
    %455 = vector.broadcast %cst_130 : f32 to vector<8x128xf32>
    %456 = arith.subf %455, %448 : vector<8x128xf32>
    %457 = arith.mulf %456, %454 : vector<8x128xf32>
    %458 = arith.mulf %448, %423 : vector<8x128xf32>
    %459 = arith.addf %457, %458 : vector<8x128xf32>
    %460 = arith.index_cast %c3_i32_124 : i32 to index
    %c0_131 = arith.constant 0 : index
    %c0_132 = arith.constant 0 : index
    %461 = vector.load %arg9[%460, %c0_131, %c0_132] : memref<8x8x128xf32, #tpu.memory_space<vmem>>, vector<1x8x128xf32>
    %462 = vector.shape_cast %461 : vector<1x8x128xf32> to vector<8x128xf32>
    %463 = vector.shape_cast %459 : vector<8x128xf32> to vector<1x8x128xf32>
    tpu.vector_store %arg9[%460, %c0_131, %c0_132], %463 {strides = array<i32>} : memref<8x8x128xf32, #tpu.memory_space<vmem>>, vector<1x8x128xf32>,
    %c4_i32_133 = arith.constant 4 : i32
    %464 = arith.truncf %459 : vector<8x128xf32> to vector<8x128xbf16>
    %cst_134 = arith.constant dense<0.000000e+00> : vector<8x384xf32>
    %465 = tpu.matmul %464, %315, %cst_134 {dimension_numbers = #tpu.dot_dimension_numbers<[1], [0], [0], [1], [0, 0, 1, 1], [], []>} : vector<8x128xbf16>, vector<128x384xbf16>, vector<8x384xf32> -> vector<8x384xf32>
    %466 = arith.index_cast %c4_i32_133 : i32 to index
    %c0_135 = arith.constant 0 : index
    %c0_136 = arith.constant 0 : index
    %467 = vector.load %arg11[%466, %c0_135, %c0_136] : memref<8x8x384xf32, #tpu.memory_space<vmem>>, vector<1x8x384xf32>
    %468 = vector.shape_cast %467 : vector<1x8x384xf32> to vector<8x384xf32>
    %469 = vector.extract_strided_slice %468 {offsets = [0, 0], sizes = [8, 128], strides = [1, 1]} : vector<8x384xf32> to vector<8x128xf32>
    %470 = vector.extract_strided_slice %465 {offsets = [0, 0], sizes = [8, 128], strides = [1, 1]} : vector<8x384xf32> to vector<8x128xf32>
    %471 = arith.addf %469, %470 : vector<8x128xf32>
    %472 = arith.negf %471 : vector<8x128xf32>
    %473 = math.exp %472 : vector<8x128xf32>
    %cst_137 = arith.constant 1.000000e+00 : f32
    %474 = vector.broadcast %cst_137 : f32 to vector<8x128xf32>
    %475 = arith.addf %474, %473 : vector<8x128xf32>
    %476 = arith.divf %474, %475 : vector<8x128xf32>
    %477 = vector.extract_strided_slice %468 {offsets = [0, 128], sizes = [8, 128], strides = [1, 1]} : vector<8x384xf32> to vector<8x128xf32>
    %478 = vector.extract_strided_slice %465 {offsets = [0, 128], sizes = [8, 128], strides = [1, 1]} : vector<8x384xf32> to vector<8x128xf32>
    %479 = arith.addf %477, %478 : vector<8x128xf32>
    %480 = arith.negf %479 : vector<8x128xf32>
    %481 = math.exp %480 : vector<8x128xf32>
    %cst_138 = arith.constant 1.000000e+00 : f32
    %482 = vector.broadcast %cst_138 : f32 to vector<8x128xf32>
    %483 = arith.addf %482, %481 : vector<8x128xf32>
    %484 = arith.divf %482, %483 : vector<8x128xf32>
    %485 = vector.extract_strided_slice %468 {offsets = [0, 256], sizes = [8, 128], strides = [1, 1]} : vector<8x384xf32> to vector<8x128xf32>
    %486 = vector.extract_strided_slice %465 {offsets = [0, 256], sizes = [8, 128], strides = [1, 1]} : vector<8x384xf32> to vector<8x128xf32>
    %487 = arith.addf %486, %318 : vector<8x128xf32>
    %488 = arith.mulf %476, %487 : vector<8x128xf32>
    %489 = arith.addf %485, %488 : vector<8x128xf32>
    %490 = math.tanh %489 : vector<8x128xf32>
    %cst_139 = arith.constant 1.000000e+00 : f32
    %491 = vector.broadcast %cst_139 : f32 to vector<8x128xf32>
    %492 = arith.subf %491, %484 : vector<8x128xf32>
    %493 = arith.mulf %492, %490 : vector<8x128xf32>
    %494 = arith.mulf %484, %459 : vector<8x128xf32>
    %495 = arith.addf %493, %494 : vector<8x128xf32>
    %496 = arith.index_cast %c4_i32_133 : i32 to index
    %c0_140 = arith.constant 0 : index
    %c0_141 = arith.constant 0 : index
    %497 = vector.load %arg9[%496, %c0_140, %c0_141] : memref<8x8x128xf32, #tpu.memory_space<vmem>>, vector<1x8x128xf32>
    %498 = vector.shape_cast %497 : vector<1x8x128xf32> to vector<8x128xf32>
    %499 = vector.shape_cast %495 : vector<8x128xf32> to vector<1x8x128xf32>
    tpu.vector_store %arg9[%496, %c0_140, %c0_141], %499 {strides = array<i32>} : memref<8x8x128xf32, #tpu.memory_space<vmem>>, vector<1x8x128xf32>,
    %c5_i32_142 = arith.constant 5 : i32
    %500 = arith.truncf %495 : vector<8x128xf32> to vector<8x128xbf16>
    %cst_143 = arith.constant dense<0.000000e+00> : vector<8x384xf32>
    %501 = tpu.matmul %500, %315, %cst_143 {dimension_numbers = #tpu.dot_dimension_numbers<[1], [0], [0], [1], [0, 0, 1, 1], [], []>} : vector<8x128xbf16>, vector<128x384xbf16>, vector<8x384xf32> -> vector<8x384xf32>
    %502 = arith.index_cast %c5_i32_142 : i32 to index
    %c0_144 = arith.constant 0 : index
    %c0_145 = arith.constant 0 : index
    %503 = vector.load %arg11[%502, %c0_144, %c0_145] : memref<8x8x384xf32, #tpu.memory_space<vmem>>, vector<1x8x384xf32>
    %504 = vector.shape_cast %503 : vector<1x8x384xf32> to vector<8x384xf32>
    %505 = vector.extract_strided_slice %504 {offsets = [0, 0], sizes = [8, 128], strides = [1, 1]} : vector<8x384xf32> to vector<8x128xf32>
    %506 = vector.extract_strided_slice %501 {offsets = [0, 0], sizes = [8, 128], strides = [1, 1]} : vector<8x384xf32> to vector<8x128xf32>
    %507 = arith.addf %505, %506 : vector<8x128xf32>
    %508 = arith.negf %507 : vector<8x128xf32>
    %509 = math.exp %508 : vector<8x128xf32>
    %cst_146 = arith.constant 1.000000e+00 : f32
    %510 = vector.broadcast %cst_146 : f32 to vector<8x128xf32>
    %511 = arith.addf %510, %509 : vector<8x128xf32>
    %512 = arith.divf %510, %511 : vector<8x128xf32>
    %513 = vector.extract_strided_slice %504 {offsets = [0, 128], sizes = [8, 128], strides = [1, 1]} : vector<8x384xf32> to vector<8x128xf32>
    %514 = vector.extract_strided_slice %501 {offsets = [0, 128], sizes = [8, 128], strides = [1, 1]} : vector<8x384xf32> to vector<8x128xf32>
    %515 = arith.addf %513, %514 : vector<8x128xf32>
    %516 = arith.negf %515 : vector<8x128xf32>
    %517 = math.exp %516 : vector<8x128xf32>
    %cst_147 = arith.constant 1.000000e+00 : f32
    %518 = vector.broadcast %cst_147 : f32 to vector<8x128xf32>
    %519 = arith.addf %518, %517 : vector<8x128xf32>
    %520 = arith.divf %518, %519 : vector<8x128xf32>
    %521 = vector.extract_strided_slice %504 {offsets = [0, 256], sizes = [8, 128], strides = [1, 1]} : vector<8x384xf32> to vector<8x128xf32>
    %522 = vector.extract_strided_slice %501 {offsets = [0, 256], sizes = [8, 128], strides = [1, 1]} : vector<8x384xf32> to vector<8x128xf32>
    %523 = arith.addf %522, %318 : vector<8x128xf32>
    %524 = arith.mulf %512, %523 : vector<8x128xf32>
    %525 = arith.addf %521, %524 : vector<8x128xf32>
    %526 = math.tanh %525 : vector<8x128xf32>
    %cst_148 = arith.constant 1.000000e+00 : f32
    %527 = vector.broadcast %cst_148 : f32 to vector<8x128xf32>
    %528 = arith.subf %527, %520 : vector<8x128xf32>
    %529 = arith.mulf %528, %526 : vector<8x128xf32>
    %530 = arith.mulf %520, %495 : vector<8x128xf32>
    %531 = arith.addf %529, %530 : vector<8x128xf32>
    %532 = arith.index_cast %c5_i32_142 : i32 to index
    %c0_149 = arith.constant 0 : index
    %c0_150 = arith.constant 0 : index
    %533 = vector.load %arg9[%532, %c0_149, %c0_150] : memref<8x8x128xf32, #tpu.memory_space<vmem>>, vector<1x8x128xf32>
    %534 = vector.shape_cast %533 : vector<1x8x128xf32> to vector<8x128xf32>
    %535 = vector.shape_cast %531 : vector<8x128xf32> to vector<1x8x128xf32>
    tpu.vector_store %arg9[%532, %c0_149, %c0_150], %535 {strides = array<i32>} : memref<8x8x128xf32, #tpu.memory_space<vmem>>, vector<1x8x128xf32>,
    %c6_i32_151 = arith.constant 6 : i32
    %536 = arith.truncf %531 : vector<8x128xf32> to vector<8x128xbf16>
    %cst_152 = arith.constant dense<0.000000e+00> : vector<8x384xf32>
    %537 = tpu.matmul %536, %315, %cst_152 {dimension_numbers = #tpu.dot_dimension_numbers<[1], [0], [0], [1], [0, 0, 1, 1], [], []>} : vector<8x128xbf16>, vector<128x384xbf16>, vector<8x384xf32> -> vector<8x384xf32>
    %538 = arith.index_cast %c6_i32_151 : i32 to index
    %c0_153 = arith.constant 0 : index
    %c0_154 = arith.constant 0 : index
    %539 = vector.load %arg11[%538, %c0_153, %c0_154] : memref<8x8x384xf32, #tpu.memory_space<vmem>>, vector<1x8x384xf32>
    %540 = vector.shape_cast %539 : vector<1x8x384xf32> to vector<8x384xf32>
    %541 = vector.extract_strided_slice %540 {offsets = [0, 0], sizes = [8, 128], strides = [1, 1]} : vector<8x384xf32> to vector<8x128xf32>
    %542 = vector.extract_strided_slice %537 {offsets = [0, 0], sizes = [8, 128], strides = [1, 1]} : vector<8x384xf32> to vector<8x128xf32>
    %543 = arith.addf %541, %542 : vector<8x128xf32>
    %544 = arith.negf %543 : vector<8x128xf32>
    %545 = math.exp %544 : vector<8x128xf32>
    %cst_155 = arith.constant 1.000000e+00 : f32
    %546 = vector.broadcast %cst_155 : f32 to vector<8x128xf32>
    %547 = arith.addf %546, %545 : vector<8x128xf32>
    %548 = arith.divf %546, %547 : vector<8x128xf32>
    %549 = vector.extract_strided_slice %540 {offsets = [0, 128], sizes = [8, 128], strides = [1, 1]} : vector<8x384xf32> to vector<8x128xf32>
    %550 = vector.extract_strided_slice %537 {offsets = [0, 128], sizes = [8, 128], strides = [1, 1]} : vector<8x384xf32> to vector<8x128xf32>
    %551 = arith.addf %549, %550 : vector<8x128xf32>
    %552 = arith.negf %551 : vector<8x128xf32>
    %553 = math.exp %552 : vector<8x128xf32>
    %cst_156 = arith.constant 1.000000e+00 : f32
    %554 = vector.broadcast %cst_156 : f32 to vector<8x128xf32>
    %555 = arith.addf %554, %553 : vector<8x128xf32>
    %556 = arith.divf %554, %555 : vector<8x128xf32>
    %557 = vector.extract_strided_slice %540 {offsets = [0, 256], sizes = [8, 128], strides = [1, 1]} : vector<8x384xf32> to vector<8x128xf32>
    %558 = vector.extract_strided_slice %537 {offsets = [0, 256], sizes = [8, 128], strides = [1, 1]} : vector<8x384xf32> to vector<8x128xf32>
    %559 = arith.addf %558, %318 : vector<8x128xf32>
    %560 = arith.mulf %548, %559 : vector<8x128xf32>
    %561 = arith.addf %557, %560 : vector<8x128xf32>
    %562 = math.tanh %561 : vector<8x128xf32>
    %cst_157 = arith.constant 1.000000e+00 : f32
    %563 = vector.broadcast %cst_157 : f32 to vector<8x128xf32>
    %564 = arith.subf %563, %556 : vector<8x128xf32>
    %565 = arith.mulf %564, %562 : vector<8x128xf32>
    %566 = arith.mulf %556, %531 : vector<8x128xf32>
    %567 = arith.addf %565, %566 : vector<8x128xf32>
    %568 = arith.index_cast %c6_i32_151 : i32 to index
    %c0_158 = arith.constant 0 : index
    %c0_159 = arith.constant 0 : index
    %569 = vector.load %arg9[%568, %c0_158, %c0_159] : memref<8x8x128xf32, #tpu.memory_space<vmem>>, vector<1x8x128xf32>
    %570 = vector.shape_cast %569 : vector<1x8x128xf32> to vector<8x128xf32>
    %571 = vector.shape_cast %567 : vector<8x128xf32> to vector<1x8x128xf32>
    tpu.vector_store %arg9[%568, %c0_158, %c0_159], %571 {strides = array<i32>} : memref<8x8x128xf32, #tpu.memory_space<vmem>>, vector<1x8x128xf32>,
    %c7_i32_160 = arith.constant 7 : i32
    %572 = arith.truncf %567 : vector<8x128xf32> to vector<8x128xbf16>
    %cst_161 = arith.constant dense<0.000000e+00> : vector<8x384xf32>
    %573 = tpu.matmul %572, %315, %cst_161 {dimension_numbers = #tpu.dot_dimension_numbers<[1], [0], [0], [1], [0, 0, 1, 1], [], []>} : vector<8x128xbf16>, vector<128x384xbf16>, vector<8x384xf32> -> vector<8x384xf32>
    %574 = arith.index_cast %c7_i32_160 : i32 to index
    %c0_162 = arith.constant 0 : index
    %c0_163 = arith.constant 0 : index
    %575 = vector.load %arg11[%574, %c0_162, %c0_163] : memref<8x8x384xf32, #tpu.memory_space<vmem>>, vector<1x8x384xf32>
    %576 = vector.shape_cast %575 : vector<1x8x384xf32> to vector<8x384xf32>
    %577 = vector.extract_strided_slice %576 {offsets = [0, 0], sizes = [8, 128], strides = [1, 1]} : vector<8x384xf32> to vector<8x128xf32>
    %578 = vector.extract_strided_slice %573 {offsets = [0, 0], sizes = [8, 128], strides = [1, 1]} : vector<8x384xf32> to vector<8x128xf32>
    %579 = arith.addf %577, %578 : vector<8x128xf32>
    %580 = arith.negf %579 : vector<8x128xf32>
    %581 = math.exp %580 : vector<8x128xf32>
    %cst_164 = arith.constant 1.000000e+00 : f32
    %582 = vector.broadcast %cst_164 : f32 to vector<8x128xf32>
    %583 = arith.addf %582, %581 : vector<8x128xf32>
    %584 = arith.divf %582, %583 : vector<8x128xf32>
    %585 = vector.extract_strided_slice %576 {offsets = [0, 128], sizes = [8, 128], strides = [1, 1]} : vector<8x384xf32> to vector<8x128xf32>
    %586 = vector.extract_strided_slice %573 {offsets = [0, 128], sizes = [8, 128], strides = [1, 1]} : vector<8x384xf32> to vector<8x128xf32>
    %587 = arith.addf %585, %586 : vector<8x128xf32>
    %588 = arith.negf %587 : vector<8x128xf32>
    %589 = math.exp %588 : vector<8x128xf32>
    %cst_165 = arith.constant 1.000000e+00 : f32
    %590 = vector.broadcast %cst_165 : f32 to vector<8x128xf32>
    %591 = arith.addf %590, %589 : vector<8x128xf32>
    %592 = arith.divf %590, %591 : vector<8x128xf32>
    %593 = vector.extract_strided_slice %576 {offsets = [0, 256], sizes = [8, 128], strides = [1, 1]} : vector<8x384xf32> to vector<8x128xf32>
    %594 = vector.extract_strided_slice %573 {offsets = [0, 256], sizes = [8, 128], strides = [1, 1]} : vector<8x384xf32> to vector<8x128xf32>
    %595 = arith.addf %594, %318 : vector<8x128xf32>
    %596 = arith.mulf %584, %595 : vector<8x128xf32>
    %597 = arith.addf %593, %596 : vector<8x128xf32>
    %598 = math.tanh %597 : vector<8x128xf32>
    %cst_166 = arith.constant 1.000000e+00 : f32
    %599 = vector.broadcast %cst_166 : f32 to vector<8x128xf32>
    %600 = arith.subf %599, %592 : vector<8x128xf32>
    %601 = arith.mulf %600, %598 : vector<8x128xf32>
    %602 = arith.mulf %592, %567 : vector<8x128xf32>
    %603 = arith.addf %601, %602 : vector<8x128xf32>
    %604 = arith.index_cast %c7_i32_160 : i32 to index
    %c0_167 = arith.constant 0 : index
    %c0_168 = arith.constant 0 : index
    %605 = vector.load %arg9[%604, %c0_167, %c0_168] : memref<8x8x128xf32, #tpu.memory_space<vmem>>, vector<1x8x128xf32>
    %606 = vector.shape_cast %605 : vector<1x8x128xf32> to vector<8x128xf32>
    %607 = vector.shape_cast %603 : vector<8x128xf32> to vector<1x8x128xf32>
    tpu.vector_store %arg9[%604, %c0_167, %c0_168], %607 {strides = array<i32>} : memref<8x8x128xf32, #tpu.memory_space<vmem>>, vector<1x8x128xf32>,
    %c8_i32_169 = arith.constant 8 : i32
    %c1 = arith.constant 1 : index
    %c0_170 = arith.constant 0 : index
    %c0_171 = arith.constant 0 : index
    %608 = vector.load %arg10[%c1, %c0_170, %c0_171] : memref<2x8x128xf32, #tpu.memory_space<vmem>>, vector<1x8x128xf32>
    %609 = vector.shape_cast %608 : vector<1x8x128xf32> to vector<8x128xf32>
    %610 = vector.shape_cast %603 : vector<8x128xf32> to vector<1x8x128xf32>
    tpu.vector_store %arg10[%c1, %c0_170, %c0_171], %610 {strides = array<i32>} : memref<2x8x128xf32, #tpu.memory_space<vmem>>, vector<1x8x128xf32>,
    return
  }
}

</mosaic_0001>

<bundles_post_ra>
// kernel: tpu_custom_call.1
= control target key start
LH: loop header
LB: loop body
LE: loop exit
PB: predicated region body
PF: predicated region fallthrough
CT: control target
= control target key end

     0   :  { %16 = vsyncpa [#allocation4], 0  ;;  %s5027_s0 = inlined_call_operand.hbm [shape: bf16[8,8,16], index: 0, kind: input, shape index: {}]   ;;  %s5028_s1 = inlined_call_operand.hbm [shape: bf16[16,384], index: 1, kind: input, shape index: {}]   ;;  %s5029_s2 = inlined_call_operand.hbm [shape: bf16[128,384], index: 2, kind: input, shape index: {}]   ;;  %s5030_s3 = inlined_call_operand.vmem [shape: f32[1,384], index: 3, kind: input, shape index: {}]   ;;  %s5031_s4 = inlined_call_operand.vmem [shape: f32[1,128], index: 4, kind: input, shape index: {}]   ;;  %s5032_s5 = inlined_call_operand.hbm [shape: bf16[128,384], index: 5, kind: input, shape index: {}]   ;;  %s5033_s6 = inlined_call_operand.hbm [shape: bf16[128,384], index: 6, kind: input, shape index: {}]   ;;  %s5034_s7 = inlined_call_operand.vmem [shape: f32[1,384], index: 7, kind: input, shape index: {}]   ;;  %s5035_s8 = inlined_call_operand.vmem [shape: f32[1,128], index: 8, kind: input, shape index: {}]   ;;  %s5036_s9 = inlined_call_operand.hbm [shape: f32[8,8,128], index: 9, kind: output, shape index: {0}]   ;;  %s5037_s10 = inlined_call_operand.hbm [shape: f32[2,8,128], index: 10, kind: output, shape index: {1}]  }
   0x1   :  { %17 = vsyncpa [#allocation7], 0 }
   0x2   :  { %18 = vsyncpa [#allocation10], 0 }
   0x3   :  { %19 = vsyncpa [#allocation5], 0 }
   0x4   :  { %20 = vsyncpa [#allocation14], 0  ;;  %s3958_s13 = smov [#allocation6]  }
   0x5   :  { %s38_s14 = sshll.u32 %s3958_s13, 4  ;;  %s39_s14 = int_to_ptr.vmem [resolvable:$true] %s38_s14 }
   0x6   :  { %s3816_s15 = scalar_lea.vmem %s39_s14, 384  ;;  %p3821_p1 = scmp.lt.s32.totalorder %s39_s14, %s39_s14 }
   0x7   :  { %p3817_p0 = scmp.ne.s32.totalorder %s39_s14, %s3816_s15  ;;  %p3822_p2 = scmp.lt.s32.totalorder %s3816_s15, %s3816_s15 }
   0x9   :  { %p3823_p3 = por %p3822_p2, %p3821_p1 }
   0xb   :  { %p3824_p4 = pnand %p3823_p3, %p3817_p0 }
   0xd   :  { %3827 = shalt.err (!%p3824_p4)
}
   0xe   :  { %s3959_s16 = smov 192   ;;  %s3960_s17 = smov 12  }
   0xf   :  { %44 = dma.hbm_to_vmem [thread:$0]  %s5028_s1, 384, %s39_s14, [#allocation7], %s3959_s16, %s3959_s16, %s3960_s17  }
  0x10   :  { %s3961_s20 = smov [#allocation9]   ;;  %s3962_s22 = smov [#allocation3]  }
  0x11   :  { %s66_s21 = sshll.u32 %s3961_s20, 4  ;;  %s26_s23 = sshll.u32 %s3962_s22, 4  ;;  %s67_s21 = int_to_ptr.vmem [resolvable:$true] %s66_s21  ;;  %s27_s23 = int_to_ptr.vmem [resolvable:$true] %s26_s23 }
  0x12   :  { %s3836_s24 = scalar_lea.vmem %s67_s21, 3072  ;;  %p3841_p6 = scmp.lt.s32.totalorder %s67_s21, %s67_s21 }
  0x13   :  { %p3837_p5 = scmp.ne.s32.totalorder %s67_s21, %s3836_s24  ;;  %p3842_p7 = scmp.lt.s32.totalorder %s3836_s24, %s3836_s24 }
  0x15   :  { %p3843_p8 = por %p3842_p7, %p3841_p6 }
  0x17   :  { %p3844_p9 = pnand %p3843_p8, %p3837_p5 }
  0x19   :  { %3847 = shalt.err (!%p3844_p9)
}
  0x1a   :  { %72 = dma.hbm_to_vmem [thread:$0]  %s5032_s5, 3072, %s67_s21, [#allocation10], %s3959_s16, %s3959_s16, %s3960_s17  }
  0x1b   :  { %s3856_s1 = scalar_lea.vmem %s27_s23, 512  ;;  %p3861_p11 = scmp.lt.s32.totalorder %s27_s23, %s27_s23 }
  0x1c   :  { %p3857_p10 = scmp.ne.s32.totalorder %s27_s23, %s3856_s1  ;;  %p3862_p12 = scmp.lt.s32.totalorder %s3856_s1, %s3856_s1 }
  0x1e   :  { %p3863_p13 = por %p3862_p12, %p3861_p11 }
  0x20   :  { %p3864_p0 = pnand %p3863_p13, %p3857_p10 }
  0x22   :  { %3867 = shalt.err (!%p3864_p0)
}
  0x23   :  { %s3963_s27 = smov 64   ;;  %s3964_s28 = smov 4  }
  0x24   :  { %32 = dma.hbm_to_vmem [thread:$0]  %s5027_s0, 512, %s27_s23, [#allocation4], %s3963_s27, %s3963_s27, %s3964_s28  }
  0x25   :  { %s3965_s11 = smov [#allocation8]   ;;  %s3966_s13 = smov [#allocation11]  }
  0x26   :  { %s50_s12 = sshll.u32 %s3965_s11, 4  ;;  %s78_s14 = sshll.u32 %s3966_s13, 4  ;;  %s51_s12 = int_to_ptr.vmem [resolvable:$true] %s50_s12  ;;  %s79_s14 = int_to_ptr.vmem [resolvable:$true] %s78_s14 }
  0x27   :  { %s3876_s5 = scalar_lea.vmem %s51_s12, 3072  ;;  %p3881_p2 = scmp.lt.s32.totalorder %s51_s12, %s51_s12 }
  0x28   :  { %p3877_p1 = scmp.ne.s32.totalorder %s51_s12, %s3876_s5  ;;  %p3882_p3 = scmp.lt.s32.totalorder %s3876_s5, %s3876_s5 }
  0x2a   :  { %p3883_p4 = por %p3882_p3, %p3881_p2 }
  0x2c   :  { %p3884_p5 = pnand %p3883_p4, %p3877_p1 }
  0x2e   :  { %3887 = shalt.err (!%p3884_p5)
}
  0x2f   :  { %56 = dma.hbm_to_vmem [thread:$0]  %s5029_s2, 3072, %s51_s12, [#allocation7], %s3959_s16, %s3959_s16, %s3960_s17  }
  0x30   :  { %s3896_s0 = scalar_lea.vmem %s79_s14, 3072  ;;  %p3901_p7 = scmp.lt.s32.totalorder %s79_s14, %s79_s14 }
  0x31   :  { %p3897_p6 = scmp.ne.s32.totalorder %s79_s14, %s3896_s0  ;;  %p3902_p8 = scmp.lt.s32.totalorder %s3896_s0, %s3896_s0 }
  0x33   :  { %p3903_p9 = por %p3902_p8, %p3901_p7 }
  0x35   :  { %p3904_p10 = pnand %p3903_p9, %p3897_p6 }
  0x37   :  { %3907 = shalt.err (!%p3904_p10)
}
  0x38   :  { %84 = dma.hbm_to_vmem [thread:$0]  %s5033_s6, 3072, %s79_s14, [#allocation10], %s3959_s16, %s3959_s16, %s3960_s17  }
  0x39   :  { %3948 = dma.done.wait [#allocation4], 512  }
  0x3a   :  { %3949 = vsyncadd [#allocation4], 4294966784 }
  0x3b   :  { %3950 = dma.done.wait [#allocation7], 3456  }
  0x3c   :  { %3951 = vsyncadd [#allocation7], 4294963840 }
  0x3d   :  { %3952 = dma.done.wait [#allocation10], 6144  }
  0x3e   :  { %3953 = vsyncadd [#allocation10], 4294961152  ;;  %v5041_v0 = vmov 0   ;;  %v3496_v1 = vld [vmem:[#allocation6 + $0x4] ss:$12 sps:$4 sm:$0xff]   ;;  %vm170_vm0 = vcmask 130048   ;;  %v119_v33 = vlaneseq }
  0x3f   :  { %215 = vmatprep.mubr.bf16.mxu0 %v5041_v0  ;;  %v3498_v2 = vld [vmem:[#allocation6] ss:$12 sps:$4 sm:$0xff]   ;;  %197 = vmatprep.subr.bf16.mxu0 %v3496_v1  ;;  %v4057_v4 = vld [vmem:[#allocation8 + $0xac] ss:$12 sps:$4 sm:$0xff]   ;;  %v4067_v7 = vld [vmem:[#allocation8 + $0x90] ss:$12 sps:$4 sm:$0xff]  }
  0x40   :  { %v3499_v3 = vld [vmem:[#allocation3] sm:$0xff]   ;;  %198 = vmatpush1.bf16.msra.mxu0 %v3498_v2  ;;  %v4061_v6 = vld [vmem:[#allocation8 + $0x94] ss:$12 sps:$4 sm:$0xff]   ;;  %v4074_v10 = vld [vmem:[#allocation8 + $0x78] ss:$12 sps:$4 sm:$0xff]   ;;  %v5043_v17 = vmov 0.0  }
  0x41   :  { %v4059_v5 = vld [vmem:[#allocation8 + $0xa8] ss:$12 sps:$4 sm:$0xff]   ;;  %3128 = vmatprep.mubr.msk.bf16.mxu1 %vm170_vm0, %v3499_v3  ;;  %512 = vmatprep.subr.bf16.mxu0 %v4057_v4  ;;  %v4077_v11 = vld [vmem:[#allocation8 + $0x64] ss:$12 sps:$4 sm:$0xff]   ;;  %v4081_v13 = vld [vmem:[#allocation8 + $0x60] ss:$12 sps:$4 sm:$0xff]  }
  0x42   :  { %v4071_v8 = vld [vmem:[#allocation8 + $0x7c] ss:$12 sps:$4 sm:$0xff]   ;;  %v3506_v9 = vld [vmem:[#allocation3 + $0x8] sm:$0xff]   ;;  %v4085_v14 = vld [vmem:[#allocation8 + $0x4c] ss:$12 sps:$4 sm:$0xff]   ;;  %vm3969_vm1 = vmmov 0  }
  0x43   :  { %2843 = vmatmul.mubr.msk.bf16.vlgmr.msra.gmra.mxu0 %vm170_vm0, %v3499_v3  ;;  %v3520_v12 = vld [vmem:[#allocation6 + $0x8] ss:$12 sps:$4 sm:$0xff]   ;;  %v4091_v18 = vld [vmem:[#allocation8 + $0x48] ss:$12 sps:$4 sm:$0xff]   ;;  %v4098_v20 = vld [vmem:[#allocation8 + $0x98] ss:$12 sps:$4 sm:$0xff]  }
  0x44   :  { %513 = vmatpush1.bf16.msra.mxu0 %v4059_v5  ;;  %225 = vmatprep.mubr.bf16.mxu0 %v5041_v0  ;;  %v4087_v15 = vld [vmem:[#allocation8 + $0xb0] ss:$12 sps:$4 sm:$0xff]   ;;  %v4094_v19 = vld [vmem:[#allocation8 + $0x34] ss:$12 sps:$4 sm:$0xff]   ;;  %v4110_v24 = vld [vmem:[#allocation8 + $0x18] ss:$12 sps:$4 sm:$0xff]  }
  0x45   :  { %514 = vmatprep.subr.bf16.mxu0 %v4061_v6  ;;  %3126 = vmatprep.subr.bf16.mxu1 %v3520_v12  ;;  %v3513_v16 = vld [vmem:[#allocation3 + $0x10] sm:$0xff]   ;;  %v3521_v22 = vld [vmem:[#allocation3 + $0x18] sm:$0xff]   ;;  %v4119_v27 = vld [vmem:[#allocation8 + $0x68] ss:$12 sps:$4 sm:$0xff]   ;;  %v4190_v34 = vshrl.u32 %v119_v33, 7  ;;  %s3971_s25 = smov [#allocation13]  }
  0x46   :  { %3127 = vmatpush3.bf16.msra.mxu1 %v3520_v12  ;;  %v4104_v21 = vld [vmem:[#allocation8 + $0x30] ss:$12 sps:$4 sm:$0xff]   ;;  %v4113_v25 = vld [vmem:[#allocation8 + $0x80] ss:$12 sps:$4 sm:$0xff]   ;;  %v4138_v30 = vld [vmem:[#allocation8 + $0x38] ss:$12 sps:$4 sm:$0xff]  }
  0x47   :  { %3136 = vmatprep.subr.bf16.mxu1 %v5043_v17  ;;  %v4108_v23 = vld [vmem:[#allocation8 + $0x1c] ss:$12 sps:$4 sm:$0xff]   ;;  %v4115_v26 = vld [vmem:[#allocation8 + $0x4] ss:$12 sps:$4 sm:$0xff]   ;;  %v4123_v28 = vld [vmem:[#allocation8] ss:$12 sps:$4 sm:$0xff]  }
  0x48   :  { %515 = vmatpush1.bf16.msra.mxu0 %v4067_v7  ;;  %v4132_v29 = vld [vmem:[#allocation8 + $0x50] ss:$12 sps:$4 sm:$0xff]   ;;  %v4144_v31 = vld [vmem:[#allocation8 + $0x20] ss:$12 sps:$4 sm:$0xff]   ;;  %v4151_v32 = vld [vmem:[#allocation8 + $0x8] ss:$12 sps:$4 sm:$0xff]  }
  0x49   :  { %516 = vmatprep.subr.bf16.mxu0 %v4071_v8  ;;  %3129 = vmatmul.mubr.msk.bf16.vlgmr.msra.gmra.mxu1 %vm170_vm0, %v3506_v9  ;;  %5047 = vst [vmem:[#allocation20_spill] sm:$0xff] %v4190_v34  ;;  %v5040_v35 = vsub.s32 0, %v4190_v34  ;;  %v117_v36 = vld [vmem:[%s5030_s3] sm:$0x7]  ;;  %v5039_v38 = vsub.s32 1, %v4190_v34  ;;  %v5038_v46 = vsub.s32 2, %v4190_v34 }
  0x4a   :  { %3137 = vmatpush3.bf16.msra.mxu1 %v4087_v15  ;;  %3132 = vmatprep.mubr.msk.bf16.mxu1 %vm170_vm0, %v3513_v16  ;;  %s2818_s26 = sshll.u32 %s3971_s25, 4  ;;  %s2819_s26 = int_to_ptr.vmem [resolvable:$true] %s2818_s26 }
  0x4b   :  { %2844 = vmatmul.mubr.msk.bf16.gmra.mxu0 %vm170_vm0, %v3506_v9  ;;  %3138 = vmatprep.subr.bf16.mxu1 %v5043_v17  ;;  %v122_v40 = vrot.slane %v117_v36, %v5040_v35  ;;  %v126_v42 = vrot.slane %v117_v36, %v5039_v38  ;;  %v130_v51 = vrot.slane %v117_v36, %v5038_v46 }
  0x4c   :  { %517 = vmatpush1.bf16.msra.mxu0 %v4074_v10  ;;  %235 = vmatprep.mubr.bf16.mxu0 %v5041_v0 }
  0x4d   :  { %518 = vmatprep.subr.bf16.mxu0 %v4077_v11 }
  0x4e   :  { %3139 = vmatpush3.bf16.msra.mxu1 %v4098_v20 }
  0x4f   :  { %3140 = vmatprep.subr.bf16.mxu1 %v5043_v17 }
  0x50   :  { %519 = vmatpush1.bf16.msra.mxu0 %v4081_v13 }
  0x51   :  { %520 = vmatprep.subr.bf16.mxu0 %v4085_v14  ;;  %3133 = vmatmul.mubr.msk.bf16.gmra.mxu1 %vm170_vm0, %v3521_v22 }
  0x52   :  { %3141 = vmatpush3.bf16.msra.mxu1 %v4113_v25  ;;  %3152 = vmatprep.mubr.msk.bf16.mxu1 %vm3969_vm1, %v5043_v17 }
  0x53   :  { %2845 = vmatmul.mubr.msk.bf16.gmra.mxu0 %vm170_vm0, %v3513_v16  ;;  %3142 = vmatprep.subr.bf16.mxu1 %v5043_v17 }
  0x54   :  { %521 = vmatpush1.bf16.msra.mxu0 %v4091_v18  ;;  %245 = vmatprep.mubr.bf16.mxu0 %v5041_v0 }
  0x55   :  { %522 = vmatprep.subr.bf16.mxu0 %v4094_v19 }
  0x56   :  { %3143 = vmatpush3.bf16.msra.mxu1 %v4119_v27 }
  0x57   :  { %3144 = vmatprep.subr.bf16.mxu1 %v5043_v17 }
  0x58   :  { %523 = vmatpush1.bf16.msra.mxu0 %v4104_v21 }
  0x59   :  { %524 = vmatprep.subr.bf16.mxu0 %v4108_v23 }
  0x5a   :  { %3145 = vmatpush3.bf16.msra.mxu1 %v4132_v29 }
  0x5b   :  { %2846 = vmatmul.mubr.msk.bf16.gmra.mxu0 %vm170_vm0, %v3521_v22  ;;  %3146 = vmatprep.subr.bf16.mxu1 %v5043_v17 }
  0x5c   :  { %525 = vmatpush1.bf16.msra.mxu0 %v4110_v24  ;;  %544 = vmatprep.mubr.bf16.mxu0 %v5041_v0 }
  0x5d   :  { %526 = vmatprep.subr.bf16.mxu0 %v4115_v26 }
  0x5e   :  { %3147 = vmatpush3.bf16.msra.mxu1 %v4138_v30 }
  0x5f   :  { %3148 = vmatprep.subr.bf16.mxu1 %v5043_v17 }
  0x60   :  { %527 = vmatpush1.bf16.msra.mxu0 %v4123_v28 }
  0x61   :  { %620 = vmatprep.subr.bf16.mxu0 %v4057_v4 }
  0x62   :  { %3149 = vmatpush3.bf16.msra.mxu1 %v4144_v31 }
  0x63   :  { %545 = vmatmul.mubr.bf16.vlgmr.msra.gmra.mxu0 %v5041_v0  ;;  %3150 = vmatprep.subr.bf16.mxu1 %v5043_v17 }
  0x64   :  { %621 = vmatpush1.bf16.msra.mxu0 %v4059_v5  ;;  %652 = vmatprep.mubr.bf16.mxu0 %v5041_v0 }
  0x65   :  { %622 = vmatprep.subr.bf16.mxu0 %v4061_v6 }
  0x66   :  { %3151 = vmatpush3.bf16.msra.mxu1 %v4151_v32 }
  0x67   :  { %3156 = vmatprep.subr.bf16.mxu1 %v5043_v17 }
  0x68   :  { %623 = vmatpush1.bf16.msra.mxu0 %v4067_v7 }
  0x69   :  { %624 = vmatprep.subr.bf16.mxu0 %v4071_v8  ;;  %3153 = vmatmul.mubr.bf16.vlgmr.msra.gmra.mxu1 %v5041_v0 }
  0x6a   :  { %3157 = vmatpush3.bf16.msra.mxu1 %v4087_v15  ;;  %3172 = vmatprep.mubr.msk.bf16.mxu1 %vm3969_vm1, %v5043_v17 }
  0x6b   :  { %3158 = vmatprep.subr.bf16.mxu1 %v5043_v17 }
  0x6c   :  { %625 = vmatpush1.bf16.msra.mxu0 %v4074_v10 }
  0x6d   :  { %626 = vmatprep.subr.bf16.mxu0 %v4077_v11 }
  0x6e   :  { %3159 = vmatpush3.bf16.msra.mxu1 %v4098_v20 }
  0x6f   :  { %3160 = vmatprep.subr.bf16.mxu1 %v5043_v17 }
  0x70   :  { %627 = vmatpush1.bf16.msra.mxu0 %v4081_v13 }
  0x71   :  { %628 = vmatprep.subr.bf16.mxu0 %v4085_v14 }
  0x72   :  { %3161 = vmatpush3.bf16.msra.mxu1 %v4113_v25 }
  0x73   :  { %3162 = vmatprep.subr.bf16.mxu1 %v5043_v17 }
  0x74   :  { %629 = vmatpush1.bf16.msra.mxu0 %v4091_v18 }
  0x75   :  { %630 = vmatprep.subr.bf16.mxu0 %v4094_v19 }
  0x76   :  { %3163 = vmatpush3.bf16.msra.mxu1 %v4119_v27 }
  0x77   :  { %3164 = vmatprep.subr.bf16.mxu1 %v5043_v17 }
  0x78   :  { %631 = vmatpush1.bf16.msra.mxu0 %v4104_v21 }
  0x79   :  { %632 = vmatprep.subr.bf16.mxu0 %v4108_v23 }
  0x7a   :  { %3165 = vmatpush3.bf16.msra.mxu1 %v4132_v29 }
  0x7b   :  { %3166 = vmatprep.subr.bf16.mxu1 %v5043_v17 }
  0x7c   :  { %633 = vmatpush1.bf16.msra.mxu0 %v4110_v24 }
  0x7d   :  { %634 = vmatprep.subr.bf16.mxu0 %v4115_v26 }
  0x7e   :  { %3167 = vmatpush3.bf16.msra.mxu1 %v4138_v30 }
  0x7f   :  { %3168 = vmatprep.subr.bf16.mxu1 %v5043_v17 }
  0x80   :  { %635 = vmatpush1.bf16.msra.mxu0 %v4123_v28 }
  0x81   :  { %730 = vmatprep.subr.bf16.mxu0 %v4057_v4 }
  0x82   :  { %3169 = vmatpush3.bf16.msra.mxu1 %v4144_v31 }
  0x83   :  { %3170 = vmatprep.subr.bf16.mxu1 %v5043_v17 }
  0x86   :  { %3171 = vmatpush3.bf16.msra.mxu1 %v4151_v32 }
  0x87   :  { %3176 = vmatprep.subr.bf16.mxu1 %v5043_v17 }
 0x103   :  { %v217_v37 = vpop.f32.mrf.mxu0 }
 0x105   :  { %v219_v39 = vpop.f32.mrf.mxu0 }
 0x106   :  { %v220_v17 = vadd.f32 %v219_v39, %v126_v42 }
 0x107   :  { %v221_v41 = vpop.f32.mrf.mxu0 }
 0x108   :  { %v4201_v43 = vadd.f32 %v221_v41, %v122_v40 }
 0x109   :  { %v223_v44 = vpop.f32.mrf.mxu0  ;;  %v3130_v55 = vpop.f32.mrf.mxu1 }
 0x10a   :  { %v4203_v45 = vadd.f32 %v223_v44, %v126_v42  ;;  %v4216_v57 = vadd.f32 %v3130_v55, %v130_v51 }
 0x10b   :  { %v227_v47 = vpop.f32.mrf.mxu0  ;;  %v290_v59 = vpop.f32.mrf.mxu1 }
 0x10c   :  { %v4206_v48 = vadd.f32 %v227_v47, %v122_v40 }
 0x10d   :  { %v229_v49 = vpop.f32.mrf.mxu0  ;;  %v3131_v62 = vpop.f32.mrf.mxu1 }
 0x10e   :  { %v4208_v50 = vadd.f32 %v229_v49, %v126_v42  ;;  %v4222_v1 = vadd.f32 %v3131_v62, %v130_v51 }
 0x10f   :  { %v231_v52 = vpop.f32.mrf.mxu0  ;;  %v293_v3 = vpop.f32.mrf.mxu1 }
 0x110   :  { %v4212_v53 = vadd.f32 %v231_v52, %v122_v40  ;;  %v4226_v12 = vadd.f32 %v293_v3, %v130_v51 }
 0x111   :  { %v233_v54 = vpop.f32.mrf.mxu0  ;;  %v3134_v22 = vpop.f32.mrf.mxu1 }
 0x112   :  { %v4214_v56 = vadd.f32 %v233_v54, %v126_v42  ;;  %v4230_v36 = vadd.f32 %v3134_v22, %v130_v51  ;;  %v218_v22 = vadd.f32 %v217_v37, %v122_v40 }
 0x113   :  { %v237_v58 = vpop.f32.mrf.mxu0  ;;  %v306_v44 = vpop.f32.mrf.mxu1 }
 0x114   :  { %v4218_v60 = vadd.f32 %v237_v58, %v122_v40  ;;  %5048 = vst [vmem:[#allocation21_spill] sm:$0xff] %v4230_v36  ;;  %v4234_v49 = vadd.f32 %v306_v44, %v130_v51 }
 0x115   :  { %v239_v61 = vpop.f32.mrf.mxu0  ;;  %v3135_v54 = vpop.f32.mrf.mxu1 }
 0x116   :  { %v4220_v63 = vadd.f32 %v239_v61, %v126_v42  ;;  %v4238_v58 = vadd.f32 %v3135_v54, %v130_v51 }
 0x117   :  { %v241_v2 = vpop.f32.mrf.mxu0  ;;  %v309_v62 = vpop.f32.mrf.mxu1 }
 0x118   :  { %v4224_v9 = vadd.f32 %v241_v2, %v122_v40  ;;  %5050 = vst [vmem:[#allocation23_spill] sm:$0xff] %v4238_v58  ;;  %v4242_v3 = vadd.f32 %v309_v62, %v130_v51 }
 0x119   :  { %v243_v16 = vpop.f32.mrf.mxu0 }
 0x11a   :  { %v4228_v33 = vadd.f32 %v243_v16, %v126_v42 }
 0x11b   :  { %v247_v41 = vpop.f32.mrf.mxu0 }
 0x11c   :  { %v4232_v47 = vadd.f32 %v247_v41, %v122_v40 }
 0x11d   :  { %v249_v52 = vpop.f32.mrf.mxu0 }
 0x11e   :  { %v4236_v55 = vadd.f32 %v249_v52, %v126_v42 }
 0x11f   :  { %v251_v61 = vpop.f32.mrf.mxu0 }
 0x120   :  { %5049 = vst [vmem:[#allocation22_spill] sm:$0xff] %v4236_v55  ;;  %v4240_v2 = vadd.f32 %v251_v61, %v122_v40  ;;  %v4249_v40 = vld [vmem:[%s5031_s4] ss:$0 sm:$0xff] }
 0x121   :  { %v253_v16 = vpop.f32.mrf.mxu0 }
 0x122   :  { %5051 = vst [vmem:[#allocation24_spill] sm:$0xff] %v4240_v2  ;;  %v4244_v46 = vadd.f32 %v253_v16, %v126_v42 }
 0x123   :  { %v546_v41 = vpop.f32.mrf.mxu0 }
 0x124   :  { %v596_v38 = vadd.f32 %v546_v41, %v218_v22 }
 0x125   :  { %v548_v44 = vpop.f32.mrf.mxu0 }
 0x126   :  { %v2876_v35 = vmul.f32 -1.442695, %v596_v38  ;;  %v603_v54 = vadd.f32 %v548_v44, %v220_v17  ;;  %v291_v17 = vadd.f32 %v290_v59, %v130_v51  ;;  %v5052_v51 = vmov 0.0  }
 0x127   :  { %v550_v0 = vpop.f32.mrf.mxu0  ;;  %v5053_v59 = vmov 0  }
 0x128   :  { %3600 = vpow2.f32 %v2876_v35  ;;  %v2877_v34 = vmul.f32 -1.442695, %v603_v54 }
 0x129   :  { %v551_v52 = vpop.f32.mrf.mxu0  ;;  %v587_v58 = vpop.f32.mrf.mxu1 }
 0x12a   :  { %3602 = vpow2.f32 %v2877_v34  ;;  %v610_v35 = vadd.f32 %v4249_v40, %v587_v58 }
 0x12b   :  { %v3154_v61 = vpop.f32.mrf.mxu1 }
 0x12d   :  { %v590_v62 = vpop.f32.mrf.mxu1 }
 0x12f   :  { %v3155_v55 = vpop.f32.mrf.mxu1 }
 0x135   :  { %v3601_v2 = vpop.eup %3600 }
 0x136   :  { %v600_v36 = vadd.f32 1.0, %v3601_v2 }
 0x137   :  { %v3603_v37 = vpop.eup %3602 }
 0x138   :  { %3604 = vrcp.f32 %v600_v36  ;;  %v607_v0 = vadd.f32 1.0, %v3603_v37 }
 0x13a   :  { %3606 = vrcp.f32 %v607_v0 }
 0x145   :  { %v3605_v38 = vpop.eup %3604 }
 0x146   :  { %v611_v39 = vmul.f32 %v3605_v38, %v610_v35 }
 0x147   :  { %v3607_v42 = vpop.eup %3606 }
 0x148   :  { %v612_v34 = vadd.f32 %v611_v39, %v291_v17  ;;  %v614_v16 = vsub.f32 1.0, %v3607_v42  ;;  %v616_v36 = vmul.f32 0.0, %v3607_v42 }
 0x14a   :  { %3608 = vtanh.f32 %v612_v34 }
 0x157   :  { %v3609_v2 = vpop.eup %3608 }
 0x158   :  { %v615_v55 = vmul.f32 %v3609_v2, %v614_v16 }
 0x15a   :  { %v4252_v22 = vadd.f32 %v616_v36, %v615_v55 }
 0x15c   :  { %v619_v41 = vpack.c.bf16 %v4252_v22, %v4252_v22 }
 0x15e   :  { %653 = vmatmul.mubr.bf16.vlgmr.msra.gmra.mxu0 %v619_v41  ;;  %3173 = vmatmul.mubr.bf16.vlgmr.msra.gmra.mxu1 %v619_v41 }
 0x15f   :  { %731 = vmatpush1.bf16.msra.mxu0 %v4059_v5  ;;  %3177 = vmatpush3.bf16.msra.mxu1 %v4087_v15 }
 0x160   :  { %732 = vmatprep.subr.bf16.mxu0 %v4061_v6  ;;  %3178 = vmatprep.subr.bf16.mxu1 %v5052_v51 }
 0x161   :  { %762 = vmatprep.mubr.bf16.mxu0 %v5053_v59  ;;  %3192 = vmatprep.mubr.msk.bf16.mxu1 %vm3969_vm1, %v5052_v51 }
 0x163   :  { %733 = vmatpush1.bf16.msra.mxu0 %v4067_v7  ;;  %3179 = vmatpush3.bf16.msra.mxu1 %v4098_v20 }
 0x164   :  { %734 = vmatprep.subr.bf16.mxu0 %v4071_v8  ;;  %3180 = vmatprep.subr.bf16.mxu1 %v5052_v51 }
 0x167   :  { %735 = vmatpush1.bf16.msra.mxu0 %v4074_v10  ;;  %3181 = vmatpush3.bf16.msra.mxu1 %v4113_v25 }
 0x168   :  { %736 = vmatprep.subr.bf16.mxu0 %v4077_v11  ;;  %3182 = vmatprep.subr.bf16.mxu1 %v5052_v51 }
 0x16b   :  { %737 = vmatpush1.bf16.msra.mxu0 %v4081_v13  ;;  %3183 = vmatpush3.bf16.msra.mxu1 %v4119_v27 }
 0x16c   :  { %738 = vmatprep.subr.bf16.mxu0 %v4085_v14  ;;  %3184 = vmatprep.subr.bf16.mxu1 %v5052_v51 }
 0x16f   :  { %739 = vmatpush1.bf16.msra.mxu0 %v4091_v18  ;;  %3185 = vmatpush3.bf16.msra.mxu1 %v4132_v29 }
 0x170   :  { %740 = vmatprep.subr.bf16.mxu0 %v4094_v19  ;;  %3186 = vmatprep.subr.bf16.mxu1 %v5052_v51 }
 0x173   :  { %741 = vmatpush1.bf16.msra.mxu0 %v4104_v21  ;;  %3187 = vmatpush3.bf16.msra.mxu1 %v4138_v30 }
 0x174   :  { %742 = vmatprep.subr.bf16.mxu0 %v4108_v23  ;;  %3188 = vmatprep.subr.bf16.mxu1 %v5052_v51 }
 0x177   :  { %743 = vmatpush1.bf16.msra.mxu0 %v4110_v24  ;;  %3189 = vmatpush3.bf16.msra.mxu1 %v4144_v31 }
 0x178   :  { %744 = vmatprep.subr.bf16.mxu0 %v4115_v26  ;;  %3190 = vmatprep.subr.bf16.mxu1 %v5052_v51 }
 0x17b   :  { %745 = vmatpush1.bf16.msra.mxu0 %v4123_v28  ;;  %3191 = vmatpush3.bf16.msra.mxu1 %v4151_v32 }
 0x17c   :  { %840 = vmatprep.subr.bf16.mxu0 %v4057_v4  ;;  %3196 = vmatprep.subr.bf16.mxu1 %v5052_v51 }
 0x21e   :  { %v654_v58 = vpop.f32.mrf.mxu0  ;;  %v695_v44 = vpop.f32.mrf.mxu1 }
 0x21f   :  { %v705_v52 = vadd.f32 %v654_v58, %v4201_v43  ;;  %v719_v55 = vadd.f32 %v4249_v40, %v695_v44 }
 0x220   :  { %v656_v54 = vpop.f32.mrf.mxu0  ;;  %v3174_v61 = vpop.f32.mrf.mxu1 }
 0x221   :  { %v2878_v62 = vmul.f32 -1.442695, %v705_v52  ;;  %v712_v17 = vadd.f32 %v656_v54, %v4203_v45 }
 0x222   :  { %v658_v37 = vpop.f32.mrf.mxu0  ;;  %v698_v0 = vpop.f32.mrf.mxu1 }
 0x223   :  { %3610 = vpow2.f32 %v2878_v62  ;;  %v2879_v39 = vmul.f32 -1.442695, %v712_v17 }
 0x224   :  { %v659_v35 = vpop.f32.mrf.mxu0  ;;  %v3175_v38 = vpop.f32.mrf.mxu1 }
 0x225   :  { %3612 = vpow2.f32 %v2879_v39 }
 0x230   :  { %v3611_v34 = vpop.eup %3610 }
 0x231   :  { %v709_v42 = vadd.f32 1.0, %v3611_v34 }
 0x232   :  { %v3613_v16 = vpop.eup %3612 }
 0x233   :  { %3614 = vrcp.f32 %v709_v42  ;;  %v716_v2 = vadd.f32 1.0, %v3613_v16 }
 0x235   :  { %3616 = vrcp.f32 %v716_v2 }
 0x240   :  { %v3615_v43 = vpop.eup %3614 }
 0x241   :  { %v720_v36 = vmul.f32 %v3615_v43, %v719_v55 }
 0x242   :  { %v3617_v58 = vpop.eup %3616 }
 0x243   :  { %v721_v41 = vadd.f32 %v720_v36, %v4226_v12  ;;  %v723_v52 = vsub.f32 1.0, %v3617_v58  ;;  %v725_v45 = vmul.f32 %v3617_v58, %v4252_v22 }
 0x245   :  { %3618 = vtanh.f32 %v721_v41 }
 0x252   :  { %v3619_v61 = vpop.eup %3618 }
 0x253   :  { %v724_v62 = vmul.f32 %v3619_v61, %v723_v52 }
 0x255   :  { %v4296_v54 = vadd.f32 %v725_v45, %v724_v62 }
 0x257   :  { %v729_v37 = vpack.c.bf16 %v4296_v54, %v4296_v54 }
 0x259   :  { %763 = vmatmul.mubr.bf16.vlgmr.msra.gmra.mxu0 %v729_v37  ;;  %3193 = vmatmul.mubr.bf16.vlgmr.msra.gmra.mxu1 %v729_v37 }
 0x25a   :  { %841 = vmatpush1.bf16.msra.mxu0 %v4059_v5  ;;  %3197 = vmatpush3.bf16.msra.mxu1 %v4087_v15 }
 0x25b   :  { %842 = vmatprep.subr.bf16.mxu0 %v4061_v6  ;;  %3198 = vmatprep.subr.bf16.mxu1 %v5052_v51 }
 0x25c   :  { %872 = vmatprep.mubr.bf16.mxu0 %v5053_v59  ;;  %3212 = vmatprep.mubr.msk.bf16.mxu1 %vm3969_vm1, %v5052_v51 }
 0x25e   :  { %843 = vmatpush1.bf16.msra.mxu0 %v4067_v7  ;;  %3199 = vmatpush3.bf16.msra.mxu1 %v4098_v20 }
 0x25f   :  { %844 = vmatprep.subr.bf16.mxu0 %v4071_v8  ;;  %3200 = vmatprep.subr.bf16.mxu1 %v5052_v51 }
 0x262   :  { %845 = vmatpush1.bf16.msra.mxu0 %v4074_v10  ;;  %3201 = vmatpush3.bf16.msra.mxu1 %v4113_v25 }
 0x263   :  { %846 = vmatprep.subr.bf16.mxu0 %v4077_v11  ;;  %3202 = vmatprep.subr.bf16.mxu1 %v5052_v51 }
 0x266   :  { %847 = vmatpush1.bf16.msra.mxu0 %v4081_v13  ;;  %3203 = vmatpush3.bf16.msra.mxu1 %v4119_v27 }
 0x267   :  { %848 = vmatprep.subr.bf16.mxu0 %v4085_v14  ;;  %3204 = vmatprep.subr.bf16.mxu1 %v5052_v51 }
 0x26a   :  { %849 = vmatpush1.bf16.msra.mxu0 %v4091_v18  ;;  %3205 = vmatpush3.bf16.msra.mxu1 %v4132_v29 }
 0x26b   :  { %850 = vmatprep.subr.bf16.mxu0 %v4094_v19  ;;  %3206 = vmatprep.subr.bf16.mxu1 %v5052_v51 }
 0x26e   :  { %851 = vmatpush1.bf16.msra.mxu0 %v4104_v21  ;;  %3207 = vmatpush3.bf16.msra.mxu1 %v4138_v30 }
 0x26f   :  { %852 = vmatprep.subr.bf16.mxu0 %v4108_v23  ;;  %3208 = vmatprep.subr.bf16.mxu1 %v5052_v51 }
 0x272   :  { %853 = vmatpush1.bf16.msra.mxu0 %v4110_v24  ;;  %3209 = vmatpush3.bf16.msra.mxu1 %v4144_v31 }
 0x273   :  { %854 = vmatprep.subr.bf16.mxu0 %v4115_v26  ;;  %3210 = vmatprep.subr.bf16.mxu1 %v5052_v51 }
 0x276   :  { %855 = vmatpush1.bf16.msra.mxu0 %v4123_v28  ;;  %3211 = vmatpush3.bf16.msra.mxu1 %v4151_v32 }
 0x277   :  { %950 = vmatprep.subr.bf16.mxu0 %v4057_v4  ;;  %3216 = vmatprep.subr.bf16.mxu1 %v5052_v51 }
 0x319   :  { %v764_v12 = vpop.f32.mrf.mxu0  ;;  %v805_v44 = vpop.f32.mrf.mxu1 }
 0x31a   :  { %v815_v0 = vadd.f32 %v764_v12, %v4206_v48  ;;  %v829_v52 = vadd.f32 %v4249_v40, %v805_v44 }
 0x31b   :  { %v766_v35 = vpop.f32.mrf.mxu0  ;;  %v3194_v38 = vpop.f32.mrf.mxu1 }
 0x31c   :  { %v2880_v17 = vmul.f32 -1.442695, %v815_v0  ;;  %v822_v2 = vadd.f32 %v766_v35, %v4208_v50 }
 0x31d   :  { %v768_v39 = vpop.f32.mrf.mxu0  ;;  %v808_v34 = vpop.f32.mrf.mxu1 }
 0x31e   :  { %3620 = vpow2.f32 %v2880_v17  ;;  %v2881_v55 = vmul.f32 -1.442695, %v822_v2 }
 0x31f   :  { %v769_v42 = vpop.f32.mrf.mxu0  ;;  %v3195_v16 = vpop.f32.mrf.mxu1 }
 0x320   :  { %3622 = vpow2.f32 %v2881_v55 }
 0x32b   :  { %v3621_v43 = vpop.eup %3620 }
 0x32c   :  { %v819_v36 = vadd.f32 1.0, %v3621_v43 }
 0x32d   :  { %v3623_v41 = vpop.eup %3622 }
 0x32e   :  { %3624 = vrcp.f32 %v819_v36  ;;  %v826_v58 = vadd.f32 1.0, %v3623_v41 }
 0x330   :  { %3626 = vrcp.f32 %v826_v58 }
 0x33b   :  { %v3625_v48 = vpop.eup %3624 }
 0x33c   :  { %v830_v61 = vmul.f32 %v3625_v48, %v829_v52 }
 0x33d   :  { %v3627_v45 = vpop.eup %3626 }
 0x33e   :  { %v831_v62 = vadd.f32 %v830_v61, %v4216_v57  ;;  %v833_v37 = vsub.f32 1.0, %v3627_v45  ;;  %v835_v50 = vmul.f32 %v3627_v45, %v4296_v54 }
 0x340   :  { %3628 = vtanh.f32 %v831_v62 }
 0x34d   :  { %v3629_v12 = vpop.eup %3628 }
 0x34e   :  { %v834_v0 = vmul.f32 %v3629_v12, %v833_v37 }
 0x350   :  { %v4340_v35 = vadd.f32 %v835_v50, %v834_v0 }
 0x352   :  { %v839_v38 = vpack.c.bf16 %v4340_v35, %v4340_v35 }
 0x354   :  { %873 = vmatmul.mubr.bf16.vlgmr.msra.gmra.mxu0 %v839_v38  ;;  %3213 = vmatmul.mubr.bf16.vlgmr.msra.gmra.mxu1 %v839_v38 }
 0x355   :  { %951 = vmatpush1.bf16.msra.mxu0 %v4059_v5  ;;  %3217 = vmatpush3.bf16.msra.mxu1 %v4087_v15 }
 0x356   :  { %952 = vmatprep.subr.bf16.mxu0 %v4061_v6  ;;  %3218 = vmatprep.subr.bf16.mxu1 %v5052_v51 }
 0x357   :  { %982 = vmatprep.mubr.bf16.mxu0 %v5053_v59  ;;  %3232 = vmatprep.mubr.msk.bf16.mxu1 %vm3969_vm1, %v5052_v51 }
 0x359   :  { %953 = vmatpush1.bf16.msra.mxu0 %v4067_v7  ;;  %3219 = vmatpush3.bf16.msra.mxu1 %v4098_v20 }
 0x35a   :  { %954 = vmatprep.subr.bf16.mxu0 %v4071_v8  ;;  %3220 = vmatprep.subr.bf16.mxu1 %v5052_v51 }
 0x35d   :  { %955 = vmatpush1.bf16.msra.mxu0 %v4074_v10  ;;  %3221 = vmatpush3.bf16.msra.mxu1 %v4113_v25 }
 0x35e   :  { %956 = vmatprep.subr.bf16.mxu0 %v4077_v11  ;;  %3222 = vmatprep.subr.bf16.mxu1 %v5052_v51 }
 0x361   :  { %957 = vmatpush1.bf16.msra.mxu0 %v4081_v13  ;;  %3223 = vmatpush3.bf16.msra.mxu1 %v4119_v27 }
 0x362   :  { %958 = vmatprep.subr.bf16.mxu0 %v4085_v14  ;;  %3224 = vmatprep.subr.bf16.mxu1 %v5052_v51 }
 0x365   :  { %959 = vmatpush1.bf16.msra.mxu0 %v4091_v18  ;;  %3225 = vmatpush3.bf16.msra.mxu1 %v4132_v29 }
 0x366   :  { %960 = vmatprep.subr.bf16.mxu0 %v4094_v19  ;;  %3226 = vmatprep.subr.bf16.mxu1 %v5052_v51 }
 0x369   :  { %961 = vmatpush1.bf16.msra.mxu0 %v4104_v21  ;;  %3227 = vmatpush3.bf16.msra.mxu1 %v4138_v30 }
 0x36a   :  { %962 = vmatprep.subr.bf16.mxu0 %v4108_v23  ;;  %3228 = vmatprep.subr.bf16.mxu1 %v5052_v51 }
 0x36d   :  { %963 = vmatpush1.bf16.msra.mxu0 %v4110_v24  ;;  %3229 = vmatpush3.bf16.msra.mxu1 %v4144_v31 }
 0x36e   :  { %964 = vmatprep.subr.bf16.mxu0 %v4115_v26  ;;  %3230 = vmatprep.subr.bf16.mxu1 %v5052_v51 }
 0x371   :  { %965 = vmatpush1.bf16.msra.mxu0 %v4123_v28  ;;  %3231 = vmatpush3.bf16.msra.mxu1 %v4151_v32 }
 0x372   :  { %1060 = vmatprep.subr.bf16.mxu0 %v4057_v4  ;;  %3236 = vmatprep.subr.bf16.mxu1 %v5052_v51 }
 0x414   :  { %v874_v5 = vpop.f32.mrf.mxu0  ;;  %v915_v57 = vpop.f32.mrf.mxu1 }
 0x415   :  { %v925_v44 = vadd.f32 %v874_v5, %v4212_v53  ;;  %v939_v48 = vadd.f32 %v4249_v40, %v915_v57  ;;  %v4388_v5 = vld [vmem:[#allocation8 + $0xa8] ss:$12 sps:$4 sm:$0xff]  }
 0x416   :  { %v876_v17 = vpop.f32.mrf.mxu0  ;;  %v3214_v39 = vpop.f32.mrf.mxu1 }
 0x417   :  { %v2882_v34 = vmul.f32 -1.442695, %v925_v44  ;;  %v932_v43 = vadd.f32 %v876_v17, %v4214_v56 }
 0x418   :  { %v878_v42 = vpop.f32.mrf.mxu0  ;;  %v918_v16 = vpop.f32.mrf.mxu1 }
 0x419   :  { %3630 = vpow2.f32 %v2882_v34  ;;  %v2883_v36 = vmul.f32 -1.442695, %v932_v43 }
 0x41a   :  { %v879_v2 = vpop.f32.mrf.mxu0  ;;  %v3215_v55 = vpop.f32.mrf.mxu1 }
 0x41b   :  { %3632 = vpow2.f32 %v2883_v36  ;;  %v4437_v36 = vld [vmem:[#allocation8 + $0xb0] ss:$12 sps:$4 sm:$0xff]  }
 0x426   :  { %v3631_v41 = vpop.eup %3630 }
 0x427   :  { %v929_v4 = vadd.f32 1.0, %v3631_v41  ;;  %v4447_v41 = vld [vmem:[#allocation8 + $0x90] ss:$12 sps:$4 sm:$0xff]  }
 0x428   :  { %v3633_v58 = vpop.eup %3632 }
 0x429   :  { %3634 = vrcp.f32 %v929_v4  ;;  %v936_v52 = vadd.f32 1.0, %v3633_v58  ;;  %v4450_v4 = vld [vmem:[#allocation8 + $0x98] ss:$12 sps:$4 sm:$0xff]   ;;  %v4453_v58 = vld [vmem:[#allocation8 + $0x7c] ss:$12 sps:$4 sm:$0xff]  }
 0x42b   :  { %3636 = vrcp.f32 %v936_v52  ;;  %v4457_v52 = vld [vmem:[#allocation8 + $0x78] ss:$12 sps:$4 sm:$0xff]  }
 0x436   :  { %v3635_v53 = vpop.eup %3634 }
 0x437   :  { %v940_v61 = vmul.f32 %v3635_v53, %v939_v48  ;;  %v4461_v48 = vld [vmem:[#allocation8 + $0x64] ss:$12 sps:$4 sm:$0xff]   ;;  %v4465_v53 = vld [vmem:[#allocation8 + $0x60] ss:$12 sps:$4 sm:$0xff]  }
 0x438   :  { %v3637_v45 = vpop.eup %3636 }
 0x439   :  { %v941_v62 = vadd.f32 %v940_v61, %v4222_v1  ;;  %v943_v37 = vsub.f32 1.0, %v3637_v45  ;;  %v945_v56 = vmul.f32 %v3637_v45, %v4340_v35  ;;  %v4469_v61 = vld [vmem:[#allocation8 + $0x4c] ss:$12 sps:$4 sm:$0xff]   ;;  %v4481_v45 = vld [vmem:[#allocation8 + $0x30] ss:$12 sps:$4 sm:$0xff]  }
 0x43b   :  { %3638 = vtanh.f32 %v941_v62  ;;  %v4473_v62 = vld [vmem:[#allocation8 + $0x48] ss:$12 sps:$4 sm:$0xff]  }
 0x448   :  { %v3639_v12 = vpop.eup %3638 }
 0x449   :  { %v944_v0 = vmul.f32 %v3639_v12, %v943_v37  ;;  %v4489_v37 = vld [vmem:[#allocation8 + $0x18] ss:$12 sps:$4 sm:$0xff]  }
 0x44b   :  { %v4384_v50 = vadd.f32 %v945_v56, %v944_v0 }
 0x44d   :  { %v949_v38 = vpack.c.bf16 %v4384_v50, %v4384_v50 }
 0x44f   :  { %983 = vmatmul.mubr.bf16.vlgmr.msra.gmra.mxu0 %v949_v38  ;;  %3233 = vmatmul.mubr.bf16.vlgmr.msra.gmra.mxu1 %v949_v38 }
 0x450   :  { %1061 = vmatpush1.bf16.msra.mxu0 %v4388_v5  ;;  %3237 = vmatpush3.bf16.msra.mxu1 %v4087_v15 }
 0x451   :  { %1062 = vmatprep.subr.bf16.mxu0 %v4061_v6  ;;  %3238 = vmatprep.subr.bf16.mxu1 %v5052_v51  ;;  %v4423_v6 = vld [vmem:[#allocation8 + $0xac] ss:$12 sps:$4 sm:$0xff]  }
 0x452   :  { %1092 = vmatprep.mubr.bf16.mxu0 %v5053_v59  ;;  %3252 = vmatprep.mubr.msk.bf16.mxu1 %vm3969_vm1, %v5052_v51 }
 0x454   :  { %1063 = vmatpush1.bf16.msra.mxu0 %v4067_v7  ;;  %3239 = vmatpush3.bf16.msra.mxu1 %v4098_v20 }
 0x455   :  { %1064 = vmatprep.subr.bf16.mxu0 %v4071_v8  ;;  %3240 = vmatprep.subr.bf16.mxu1 %v5052_v51 }
 0x458   :  { %1065 = vmatpush1.bf16.msra.mxu0 %v4074_v10  ;;  %3241 = vmatpush3.bf16.msra.mxu1 %v4113_v25 }
 0x459   :  { %1066 = vmatprep.subr.bf16.mxu0 %v4077_v11  ;;  %3242 = vmatprep.subr.bf16.mxu1 %v5052_v51 }
 0x45c   :  { %1067 = vmatpush1.bf16.msra.mxu0 %v4081_v13  ;;  %3243 = vmatpush3.bf16.msra.mxu1 %v4119_v27 }
 0x45d   :  { %1068 = vmatprep.subr.bf16.mxu0 %v4085_v14  ;;  %3244 = vmatprep.subr.bf16.mxu1 %v5052_v51 }
 0x460   :  { %1069 = vmatpush1.bf16.msra.mxu0 %v4091_v18  ;;  %3245 = vmatpush3.bf16.msra.mxu1 %v4132_v29 }
 0x461   :  { %1070 = vmatprep.subr.bf16.mxu0 %v4094_v19  ;;  %3246 = vmatprep.subr.bf16.mxu1 %v5052_v51 }
 0x464   :  { %1071 = vmatpush1.bf16.msra.mxu0 %v4104_v21  ;;  %3247 = vmatpush3.bf16.msra.mxu1 %v4138_v30 }
 0x465   :  { %1072 = vmatprep.subr.bf16.mxu0 %v4108_v23  ;;  %3248 = vmatprep.subr.bf16.mxu1 %v5052_v51 }
 0x468   :  { %1073 = vmatpush1.bf16.msra.mxu0 %v4110_v24  ;;  %3249 = vmatpush3.bf16.msra.mxu1 %v4144_v31 }
 0x469   :  { %1074 = vmatprep.subr.bf16.mxu0 %v4115_v26  ;;  %3250 = vmatprep.subr.bf16.mxu1 %v5052_v51 }
 0x46c   :  { %1075 = vmatpush1.bf16.msra.mxu0 %v4123_v28  ;;  %3251 = vmatpush3.bf16.msra.mxu1 %v4151_v32 }
 0x46d   :  { %1170 = vmatprep.subr.bf16.mxu0 %v4423_v6  ;;  %3256 = vmatprep.subr.bf16.mxu1 %v5052_v51 }
 0x50f   :  { %v984_v7 = vpop.f32.mrf.mxu0  ;;  %v1025_v8 = vpop.f32.mrf.mxu1 }
 0x510   :  { %v1035_v10 = vadd.f32 %v984_v7, %v4218_v60  ;;  %v1049_v44 = vadd.f32 %v4249_v40, %v1025_v8 }
 0x511   :  { %v986_v11 = vpop.f32.mrf.mxu0  ;;  %v3234_v13 = vpop.f32.mrf.mxu1 }
 0x512   :  { %v2884_v14 = vmul.f32 -1.442695, %v1035_v10  ;;  %v1042_v21 = vadd.f32 %v986_v11, %v4220_v63 }
 0x513   :  { %v988_v15 = vpop.f32.mrf.mxu0  ;;  %v1028_v18 = vpop.f32.mrf.mxu1 }
 0x514   :  { %3640 = vpow2.f32 %v2884_v14  ;;  %v2885_v23 = vmul.f32 -1.442695, %v1042_v21 }
 0x515   :  { %v989_v19 = vpop.f32.mrf.mxu0  ;;  %v3235_v20 = vpop.f32.mrf.mxu1 }
 0x516   :  { %3642 = vpow2.f32 %v2885_v23 }
 0x521   :  { %v3641_v24 = vpop.eup %3640 }
 0x522   :  { %v1039_v26 = vadd.f32 1.0, %v3641_v24 }
 0x523   :  { %v3643_v1 = vpop.eup %3642 }
 0x524   :  { %3644 = vrcp.f32 %v1039_v26  ;;  %v1046_v57 = vadd.f32 1.0, %v3643_v1 }
 0x526   :  { %3646 = vrcp.f32 %v1046_v57 }
 0x531   :  { %v3645_v60 = vpop.eup %3644 }
 0x532   :  { %v1050_v17 = vmul.f32 %v3645_v60, %v1049_v44  ;;  %v3779_v60 = vld [vmem:[#allocation8 + $0x50] ss:$12 sps:$4 sm:$0xff]  }
 0x533   :  { %v3647_v34 = vpop.eup %3646 }
 0x534   :  { %v1051_v39 = vadd.f32 %v1050_v17, %v4234_v49  ;;  %v1053_v42 = vsub.f32 1.0, %v3647_v34  ;;  %v1055_v63 = vmul.f32 %v3647_v34, %v4384_v50  ;;  %v4440_v49 = vld [vmem:[#allocation8 + $0x94] ss:$12 sps:$4 sm:$0xff]   ;;  %v3780_v17 = vld [vmem:[#allocation8 + $0x38] ss:$12 sps:$4 sm:$0xff]  }
 0x535   :  { %v3782_v34 = vld [vmem:[#allocation8] ss:$12 sps:$4 sm:$0xff]  }
 0x536   :  { %3648 = vtanh.f32 %v1051_v39  ;;  %v3781_v39 = vld [vmem:[#allocation8 + $0x20] ss:$12 sps:$4 sm:$0xff]  }
 0x543   :  { %v3649_v16 = vpop.eup %3648 }
 0x544   :  { %v1054_v2 = vmul.f32 %v3649_v16, %v1053_v42  ;;  %v3538_v42 = vld [vmem:[#allocation9 + $0xac] ss:$12 sps:$4 sm:$0xff]   ;;  %v3539_v16 = vld [vmem:[#allocation9 + $0xb0] ss:$12 sps:$4 sm:$0xff]  }
 0x546   :  { %v4432_v55 = vadd.f32 %v1055_v63, %v1054_v2 }
 0x548   :  { %v1059_v43 = vpack.c.bf16 %v4432_v55, %v4432_v55 }
 0x54a   :  { %1093 = vmatmul.mubr.bf16.vlgmr.msra.gmra.mxu0 %v1059_v43  ;;  %3253 = vmatmul.mubr.bf16.vlgmr.msra.gmra.mxu1 %v1059_v43 }
 0x54b   :  { %1171 = vmatpush1.bf16.msra.mxu0 %v4388_v5  ;;  %3257 = vmatpush3.bf16.msra.mxu1 %v4437_v36 }
 0x54c   :  { %1172 = vmatprep.subr.bf16.mxu0 %v4440_v49  ;;  %3258 = vmatprep.subr.bf16.mxu1 %v5052_v51 }
 0x54d   :  { %1202 = vmatprep.mubr.bf16.mxu0 %v5053_v59  ;;  %3272 = vmatprep.mubr.msk.bf16.mxu1 %vm3969_vm1, %v5052_v51 }
 0x54f   :  { %1173 = vmatpush1.bf16.msra.mxu0 %v4447_v41  ;;  %3259 = vmatpush3.bf16.msra.mxu1 %v4450_v4 }
 0x550   :  { %1174 = vmatprep.subr.bf16.mxu0 %v4453_v58  ;;  %3260 = vmatprep.subr.bf16.mxu1 %v5052_v51 }
 0x553   :  { %1175 = vmatpush1.bf16.msra.mxu0 %v4457_v52  ;;  %3261 = vmatpush3.bf16.msra.mxu1 %v4113_v25  ;;  %v4477_v25 = vld [vmem:[#allocation8 + $0x34] ss:$12 sps:$4 sm:$0xff]  }
 0x554   :  { %1176 = vmatprep.subr.bf16.mxu0 %v4461_v48  ;;  %3262 = vmatprep.subr.bf16.mxu1 %v5052_v51 }
 0x557   :  { %1177 = vmatpush1.bf16.msra.mxu0 %v4465_v53  ;;  %3263 = vmatpush3.bf16.msra.mxu1 %v4119_v27  ;;  %v4485_v27 = vld [vmem:[#allocation8 + $0x1c] ss:$12 sps:$4 sm:$0xff]  }
 0x558   :  { %1178 = vmatprep.subr.bf16.mxu0 %v4469_v61  ;;  %3264 = vmatprep.subr.bf16.mxu1 %v5052_v51 }
 0x55b   :  { %1179 = vmatpush1.bf16.msra.mxu0 %v4473_v62  ;;  %3265 = vmatpush3.bf16.msra.mxu1 %v4132_v29  ;;  %v4493_v29 = vld [vmem:[#allocation8 + $0x4] ss:$12 sps:$4 sm:$0xff]  }
 0x55c   :  { %1180 = vmatprep.subr.bf16.mxu0 %v4477_v25  ;;  %3266 = vmatprep.subr.bf16.mxu1 %v5052_v51 }
 0x55f   :  { %1181 = vmatpush1.bf16.msra.mxu0 %v4481_v45  ;;  %3267 = vmatpush3.bf16.msra.mxu1 %v4138_v30 }
 0x560   :  { %1182 = vmatprep.subr.bf16.mxu0 %v4485_v27  ;;  %3268 = vmatprep.subr.bf16.mxu1 %v5052_v51 }
 0x563   :  { %1183 = vmatpush1.bf16.msra.mxu0 %v4489_v37  ;;  %3269 = vmatpush3.bf16.msra.mxu1 %v4144_v31 }
 0x564   :  { %1184 = vmatprep.subr.bf16.mxu0 %v4493_v29  ;;  %3270 = vmatprep.subr.bf16.mxu1 %v5052_v51 }
 0x567   :  { %1185 = vmatpush1.bf16.msra.mxu0 %v4123_v28  ;;  %3271 = vmatpush3.bf16.msra.mxu1 %v4151_v32 }
 0x568   :  { %1280 = vmatprep.subr.bf16.mxu0 %v4423_v6  ;;  %3276 = vmatprep.subr.bf16.mxu1 %v5052_v51 }
 0x60a   :  { %v1094_v30 = vpop.f32.mrf.mxu0  ;;  %v1135_v12 = vpop.f32.mrf.mxu1 }
 0x60b   :  { %v1145_v0 = vadd.f32 %v1094_v30, %v4224_v9  ;;  %v1159_v19 = vadd.f32 %v4249_v40, %v1135_v12  ;;  %v5055_v30 = vld [vmem:[#allocation21_spill] sm:$0xff] }
 0x60c   :  { %v1096_v56 = vpop.f32.mrf.mxu0  ;;  %v3254_v31 = vpop.f32.mrf.mxu1 }
 0x60d   :  { %v2886_v38 = vmul.f32 -1.442695, %v1145_v0  ;;  %v1152_v28 = vadd.f32 %v1096_v56, %v4228_v33 }
 0x60e   :  { %v1098_v7 = vpop.f32.mrf.mxu0  ;;  %v1138_v8 = vpop.f32.mrf.mxu1 }
 0x60f   :  { %3650 = vpow2.f32 %v2886_v38  ;;  %v2887_v13 = vmul.f32 -1.442695, %v1152_v28  ;;  %v3542_v28 = vld [vmem:[#allocation9 + $0x94] ss:$12 sps:$4 sm:$0xff]  }
 0x610   :  { %v1099_v10 = vpop.f32.mrf.mxu0  ;;  %v3255_v11 = vpop.f32.mrf.mxu1 }
 0x611   :  { %3652 = vpow2.f32 %v2887_v13  ;;  %v3536_v10 = vld [vmem:[#allocation9 + $0xa8] ss:$12 sps:$4 sm:$0xff]   ;;  %v2961_v13 = vpack.c.bf16 %v4296_v54, %v4252_v22  ;;  %v3548_v22 = vld [vmem:[#allocation9 + $0x60] ss:$12 sps:$4 sm:$0xff]  }
 0x612   :  { %v3554_v54 = vld [vmem:[#allocation9 + $0x4c] ss:$12 sps:$4 sm:$0xff]  }
 0x61c   :  { %v3651_v14 = vpop.eup %3650 }
 0x61d   :  { %v1149_v6 = vadd.f32 1.0, %v3651_v14  ;;  %v3540_v14 = vld [vmem:[#allocation9 + $0x90] ss:$12 sps:$4 sm:$0xff]  }
 0x61e   :  { %v3653_v15 = vpop.eup %3652 }
 0x61f   :  { %3654 = vrcp.f32 %v1149_v6  ;;  %v1156_v18 = vadd.f32 1.0, %v3653_v15  ;;  %v3546_v6 = vld [vmem:[#allocation9 + $0x7c] ss:$12 sps:$4 sm:$0xff]   ;;  %v3547_v15 = vld [vmem:[#allocation9 + $0x80] ss:$12 sps:$4 sm:$0xff]  }
 0x621   :  { %3656 = vrcp.f32 %v1156_v18  ;;  %v3544_v18 = vld [vmem:[#allocation9 + $0x78] ss:$12 sps:$4 sm:$0xff]  }
 0x62c   :  { %v3655_v9 = vpop.eup %3654 }
 0x62d   :  { %v1160_v20 = vmul.f32 %v3655_v9, %v1159_v19  ;;  %v3550_v19 = vld [vmem:[#allocation9 + $0x64] ss:$12 sps:$4 sm:$0xff]   ;;  %v3551_v9 = vld [vmem:[#allocation9 + $0x68] ss:$12 sps:$4 sm:$0xff]  }
 0x62e   :  { %v3657_v23 = vpop.eup %3656 }
 0x62f   :  { %v1161_v21 = vadd.f32 %v1160_v20, %v4242_v3  ;;  %v1163_v24 = vsub.f32 1.0, %v3657_v23  ;;  %v1165_v33 = vmul.f32 %v3657_v23, %v4432_v55  ;;  %v3777_v3 = vld [vmem:[#allocation8 + $0x80] ss:$12 sps:$4 sm:$0xff]   ;;  %v3555_v20 = vld [vmem:[#allocation9 + $0x50] ss:$12 sps:$4 sm:$0xff]  }
 0x630   :  { %v3558_v23 = vld [vmem:[#allocation9 + $0x34] ss:$12 sps:$4 sm:$0xff]  }
 0x631   :  { %3658 = vtanh.f32 %v1161_v21  ;;  %v3552_v21 = vld [vmem:[#allocation9 + $0x48] ss:$12 sps:$4 sm:$0xff]  }
 0x63e   :  { %v3659_v26 = vpop.eup %3658 }
 0x63f   :  { %v1164_v1 = vmul.f32 %v3659_v26, %v1163_v24  ;;  %v3559_v24 = vld [vmem:[#allocation9 + $0x38] ss:$12 sps:$4 sm:$0xff]   ;;  %v3556_v26 = vld [vmem:[#allocation9 + $0x30] ss:$12 sps:$4 sm:$0xff]  }
 0x641   :  { %v4506_v57 = vadd.f32 %v1165_v33, %v1164_v1  ;;  %v3562_v1 = vld [vmem:[#allocation9 + $0x1c] ss:$12 sps:$4 sm:$0xff]   ;;  %v3563_v33 = vld [vmem:[#allocation9 + $0x20] ss:$12 sps:$4 sm:$0xff]  }
 0x643   :  { %v1169_v44 = vpack.c.bf16 %v4506_v57, %v4506_v57 }
 0x645   :  { %1203 = vmatmul.mubr.bf16.vlgmr.msra.gmra.mxu0 %v1169_v44  ;;  %3273 = vmatmul.mubr.bf16.vlgmr.msra.gmra.mxu1 %v1169_v44  ;;  %v3560_v44 = vld [vmem:[#allocation9 + $0x18] ss:$12 sps:$4 sm:$0xff]  }
 0x646   :  { %1281 = vmatpush1.bf16.msra.mxu0 %v4388_v5  ;;  %3277 = vmatpush3.bf16.msra.mxu1 %v4437_v36  ;;  %v3778_v5 = vld [vmem:[#allocation8 + $0x68] ss:$12 sps:$4 sm:$0xff]  }
 0x647   :  { %1282 = vmatprep.subr.bf16.mxu0 %v4440_v49  ;;  %3278 = vmatprep.subr.bf16.mxu1 %v5052_v51 }
 0x648   :  { %1312 = vmatprep.mubr.bf16.mxu0 %v5053_v59  ;;  %3292 = vmatprep.mubr.msk.bf16.mxu1 %vm3969_vm1, %v5052_v51 }
 0x64a   :  { %1283 = vmatpush1.bf16.msra.mxu0 %v4447_v41  ;;  %3279 = vmatpush3.bf16.msra.mxu1 %v4450_v4 }
 0x64b   :  { %1284 = vmatprep.subr.bf16.mxu0 %v4453_v58  ;;  %3280 = vmatprep.subr.bf16.mxu1 %v5052_v51 }
 0x64e   :  { %1285 = vmatpush1.bf16.msra.mxu0 %v4457_v52  ;;  %3281 = vmatpush3.bf16.msra.mxu1 %v3777_v3  ;;  %v3566_v3 = vld [vmem:[#allocation9 + $0x4] ss:$12 sps:$4 sm:$0xff]  }
 0x64f   :  { %1286 = vmatprep.subr.bf16.mxu0 %v4461_v48  ;;  %3282 = vmatprep.subr.bf16.mxu1 %v5052_v51 }
 0x652   :  { %1287 = vmatpush1.bf16.msra.mxu0 %v4465_v53  ;;  %3283 = vmatpush3.bf16.msra.mxu1 %v3778_v5  ;;  %v5054_v53 = vld [vmem:[#allocation22_spill] sm:$0xff]  ;;  %v3567_v5 = vld [vmem:[#allocation9 + $0x8] ss:$12 sps:$4 sm:$0xff]  }
 0x653   :  { %1288 = vmatprep.subr.bf16.mxu0 %v4469_v61  ;;  %3284 = vmatprep.subr.bf16.mxu1 %v5052_v51 }
 0x656   :  { %1289 = vmatpush1.bf16.msra.mxu0 %v4473_v62  ;;  %3285 = vmatpush3.bf16.msra.mxu1 %v3779_v60  ;;  %v3564_v60 = vld [vmem:[#allocation9] ss:$12 sps:$4 sm:$0xff]  }
 0x657   :  { %1290 = vmatprep.subr.bf16.mxu0 %v4477_v25  ;;  %3286 = vmatprep.subr.bf16.mxu1 %v5052_v51 }
 0x65a   :  { %1291 = vmatpush1.bf16.msra.mxu0 %v4481_v45  ;;  %3287 = vmatpush3.bf16.msra.mxu1 %v3780_v17  ;;  %v2962_v17 = vpack.c.bf16 %v4384_v50, %v4340_v35  ;;  %v4563_v35 = vld [vmem:[#allocation11 + $0x94] ss:$12 sps:$4 sm:$0xff]   ;;  %v4565_v50 = vld [vmem:[#allocation11 + $0x90] ss:$12 sps:$4 sm:$0xff]  }
 0x65b   :  { %1292 = vmatprep.subr.bf16.mxu0 %v4485_v27  ;;  %3288 = vmatprep.subr.bf16.mxu1 %v5052_v51 }
 0x65e   :  { %1293 = vmatpush1.bf16.msra.mxu0 %v4489_v37  ;;  %3289 = vmatpush3.bf16.msra.mxu1 %v3781_v39  ;;  %v2963_v39 = vpack.c.bf16 %v4506_v57, %v4432_v55  ;;  %v4569_v55 = vld [vmem:[#allocation11 + $0x7c] ss:$12 sps:$4 sm:$0xff]  }
 0x65f   :  { %1294 = vmatprep.subr.bf16.mxu0 %v4493_v29  ;;  %3290 = vmatprep.subr.bf16.mxu1 %v5052_v51 }
 0x662   :  { %1295 = vmatpush1.bf16.msra.mxu0 %v3782_v34  ;;  %3291 = vmatpush3.bf16.msra.mxu1 %v4151_v32  ;;  %v4557_v34 = vld [vmem:[#allocation11 + $0xac] ss:$12 sps:$4 sm:$0xff]  }
 0x663   :  { %1607 = vmatprep.subr.bf16.mxu0 %v3538_v42  ;;  %3296 = vmatprep.subr.bf16.mxu1 %v3539_v16  ;;  %v4559_v42 = vld [vmem:[#allocation11 + $0xa8] ss:$12 sps:$4 sm:$0xff]  }
 0x705   :  { %v1204_v2 = vpop.f32.mrf.mxu0  ;;  %v1245_v63 = vpop.f32.mrf.mxu1 }
 0x706   :  { %v1255_v43 = vadd.f32 %v1204_v2, %v4232_v47  ;;  %v1269_v37 = vadd.f32 %v4249_v40, %v1245_v63  ;;  %v3543_v40 = vld [vmem:[#allocation9 + $0x98] ss:$12 sps:$4 sm:$0xff]   ;;  %v4577_v2 = vld [vmem:[#allocation11 + $0x60] ss:$12 sps:$4 sm:$0xff]  }
 0x707   :  { %v1206_v36 = vpop.f32.mrf.mxu0  ;;  %v3274_v49 = vpop.f32.mrf.mxu1  ;;  %v4581_v63 = vld [vmem:[#allocation11 + $0x4c] ss:$12 sps:$4 sm:$0xff]  }
 0x708   :  { %v2888_v41 = vmul.f32 -1.442695, %v1255_v43  ;;  %v1262_v61 = vadd.f32 %v1206_v36, %v5054_v53  ;;  %v4583_v43 = vld [vmem:[#allocation11 + $0x48] ss:$12 sps:$4 sm:$0xff]   ;;  %v4589_v49 = vld [vmem:[#allocation11 + $0x30] ss:$12 sps:$4 sm:$0xff]  }
 0x709   :  { %v1208_v4 = vpop.f32.mrf.mxu0  ;;  %v1248_v58 = vpop.f32.mrf.mxu1  ;;  %v4587_v36 = vld [vmem:[#allocation11 + $0x34] ss:$12 sps:$4 sm:$0xff]   ;;  %v4609_v53 = vld [vmem:[#allocation11 + $0x98] ss:$12 sps:$4 sm:$0xff]  }
 0x70a   :  { %3660 = vpow2.f32 %v2888_v41  ;;  %v2889_v62 = vmul.f32 -1.442695, %v1262_v61  ;;  %v4593_v41 = vld [vmem:[#allocation11 + $0x1c] ss:$12 sps:$4 sm:$0xff]   ;;  %v4595_v4 = vld [vmem:[#allocation11 + $0x18] ss:$12 sps:$4 sm:$0xff]  }
 0x70b   :  { %v1209_v52 = vpop.f32.mrf.mxu0  ;;  %v3275_v48 = vpop.f32.mrf.mxu1  ;;  %v4597_v58 = vld [vmem:[#allocation11 + $0x4] ss:$12 sps:$4 sm:$0xff]   ;;  %v4613_v61 = vld [vmem:[#allocation11 + $0x80] ss:$12 sps:$4 sm:$0xff]  }
 0x70c   :  { %3662 = vpow2.f32 %v2889_v62  ;;  %v4599_v52 = vld [vmem:[#allocation11 + $0xb0] ss:$12 sps:$4 sm:$0xff]   ;;  %v4604_v48 = vld [vmem:[#allocation11] ss:$12 sps:$4 sm:$0xff]   ;;  %v4617_v62 = vld [vmem:[#allocation11 + $0x68] ss:$12 sps:$4 sm:$0xff]  }
 0x717   :  { %v3661_v32 = vpop.eup %3660 }
 0x718   :  { %v1259_v25 = vadd.f32 1.0, %v3661_v32  ;;  %v4621_v32 = vld [vmem:[#allocation11 + $0x50] ss:$12 sps:$4 sm:$0xff]  }
 0x719   :  { %v3663_v45 = vpop.eup %3662 }
 0x71a   :  { %3664 = vrcp.f32 %v1259_v25  ;;  %v1266_v27 = vadd.f32 1.0, %v3663_v45  ;;  %v4625_v25 = vld [vmem:[#allocation11 + $0x38] ss:$12 sps:$4 sm:$0xff]   ;;  %v4629_v45 = vld [vmem:[#allocation11 + $0x20] ss:$12 sps:$4 sm:$0xff]  }
 0x71c   :  { %3666 = vrcp.f32 %v1266_v27  ;;  %v4633_v27 = vld [vmem:[#allocation11 + $0x8] ss:$12 sps:$4 sm:$0xff]  }
 0x727   :  { %v3665_v47 = vpop.eup %3664 }
 0x728   :  { %v1270_v29 = vmul.f32 %v3665_v47, %v1269_v37 }
 0x729   :  { %v3667_v0 = vpop.eup %3666 }
 0x72a   :  { %v1271_v12 = vadd.f32 %v1270_v29, %v5055_v30  ;;  %v1273_v56 = vsub.f32 1.0, %v3667_v0  ;;  %v1275_v7 = vmul.f32 %v3667_v0, %v4506_v57  ;;  %v4571_v57 = vld [vmem:[#allocation11 + $0x78] ss:$12 sps:$4 sm:$0xff]   ;;  %v5056_v29 = vld [vmem:[#allocation24_spill] sm:$0xff] }
 0x72c   :  { %3668 = vtanh.f32 %v1271_v12 }
 0x739   :  { %v3669_v31 = vpop.eup %3668 }
 0x73a   :  { %v1274_v38 = vmul.f32 %v3669_v31, %v1273_v56 }
 0x73c   :  { %v4542_v8 = vadd.f32 %v1275_v7, %v1274_v38 }
 0x73e   :  { %v1279_v11 = vpack.c.bf16 %v4542_v8, %v4542_v8 }
 0x740   :  { %1313 = vmatmul.mubr.bf16.vlgmr.msra.gmra.mxu0 %v1279_v11  ;;  %3293 = vmatmul.mubr.bf16.vlgmr.msra.gmra.mxu1 %v1279_v11 }
 0x741   :  { %1608 = vmatpush1.bf16.msra.mxu0 %v3536_v10  ;;  %3297 = vmatpush3.bf16.msra.mxu1 %v3539_v16  ;;  %v4575_v16 = vld [vmem:[#allocation11 + $0x64] ss:$12 sps:$4 sm:$0xff]  }
 0x742   :  { %3312 = vmatprep.mubr.bf16.mxu1 %v2961_v13  ;;  %1609 = vmatprep.subr.bf16.mxu0 %v3542_v28 }
 0x743   :  { %3298 = vmatprep.subr.bf16.mxu1 %v3543_v40  ;;  %1639 = vmatprep.mubr.bf16.mxu0 %v5053_v59 }
 0x745   :  { %1610 = vmatpush1.bf16.msra.mxu0 %v3540_v14  ;;  %3299 = vmatpush3.bf16.msra.mxu1 %v3543_v40 }
 0x746   :  { %1611 = vmatprep.subr.bf16.mxu0 %v3546_v6  ;;  %3300 = vmatprep.subr.bf16.mxu1 %v3547_v15 }
 0x749   :  { %1612 = vmatpush1.bf16.msra.mxu0 %v3544_v18  ;;  %3301 = vmatpush3.bf16.msra.mxu1 %v3547_v15  ;;  %v3783_v15 = vld [vmem:[%s5031_s4] ss:$0 sm:$0xff] }
 0x74a   :  { %1613 = vmatprep.subr.bf16.mxu0 %v3550_v19  ;;  %3302 = vmatprep.subr.bf16.mxu1 %v3551_v9 }
 0x74d   :  { %1614 = vmatpush1.bf16.msra.mxu0 %v3548_v22  ;;  %3303 = vmatpush3.bf16.msra.mxu1 %v3551_v9  ;;  %v5057_v22 = vld [vmem:[#allocation23_spill] sm:$0xff] }
 0x74e   :  { %1615 = vmatprep.subr.bf16.mxu0 %v3554_v54  ;;  %3304 = vmatprep.subr.bf16.mxu1 %v3555_v20 }
 0x751   :  { %1616 = vmatpush1.bf16.msra.mxu0 %v3552_v21  ;;  %3305 = vmatpush3.bf16.msra.mxu1 %v3555_v20 }
 0x752   :  { %1617 = vmatprep.subr.bf16.mxu0 %v3558_v23  ;;  %3306 = vmatprep.subr.bf16.mxu1 %v3559_v24 }
 0x755   :  { %1618 = vmatpush1.bf16.msra.mxu0 %v3556_v26  ;;  %3307 = vmatpush3.bf16.msra.mxu1 %v3559_v24 }
 0x756   :  { %1619 = vmatprep.subr.bf16.mxu0 %v3562_v1  ;;  %3308 = vmatprep.subr.bf16.mxu1 %v3563_v33 }
 0x759   :  { %1620 = vmatpush1.bf16.msra.mxu0 %v3560_v44  ;;  %3309 = vmatpush3.bf16.msra.mxu1 %v3563_v33 }
 0x75a   :  { %1621 = vmatprep.subr.bf16.mxu0 %v3566_v3  ;;  %3310 = vmatprep.subr.bf16.mxu1 %v3567_v5 }
 0x75d   :  { %1622 = vmatpush1.bf16.msra.mxu0 %v3564_v60  ;;  %3311 = vmatpush3.bf16.msra.mxu1 %v3567_v5 }
 0x75e   :  { %3320 = vmatprep.subr.bf16.mxu1 %v5052_v51  ;;  %1936 = vmatprep.subr.bf16.mxu0 %v4557_v34 }
 0x760   :  { %1640 = vmatmul.mubr.bf16.vlgmr.msra.gmra.mxu0 %v2961_v13  ;;  %3313 = vmatmul.mubr.bf16.vlgmr.msra.gmra.mxu1 %v2962_v17 }
 0x761   :  { %3316 = vmatprep.mubr.bf16.mxu1 %v2963_v39  ;;  %1649 = vmatprep.mubr.bf16.mxu0 %v5053_v59 }
 0x762   :  { %1937 = vmatpush1.bf16.msra.mxu0 %v4559_v42  ;;  %3321 = vmatpush3.bf16.msra.mxu1 %v4599_v52 }
 0x763   :  { %1938 = vmatprep.subr.bf16.mxu0 %v4563_v35  ;;  %3322 = vmatprep.subr.bf16.mxu1 %v5052_v51 }
 0x766   :  { %1939 = vmatpush1.bf16.msra.mxu0 %v4565_v50  ;;  %3323 = vmatpush3.bf16.msra.mxu1 %v4609_v53 }
 0x767   :  { %1940 = vmatprep.subr.bf16.mxu0 %v4569_v55  ;;  %3324 = vmatprep.subr.bf16.mxu1 %v5052_v51 }
 0x768   :  { %1650 = vmatmul.mubr.bf16.gmra.mxu0 %v2962_v17 }
 0x769   :  { %1659 = vmatprep.mubr.bf16.mxu0 %v5053_v59 }
 0x76a   :  { %1941 = vmatpush1.bf16.msra.mxu0 %v4571_v57  ;;  %3325 = vmatpush3.bf16.msra.mxu1 %v4613_v61 }
 0x76b   :  { %1942 = vmatprep.subr.bf16.mxu0 %v4575_v16  ;;  %3326 = vmatprep.subr.bf16.mxu1 %v5052_v51 }
 0x76e   :  { %1943 = vmatpush1.bf16.msra.mxu0 %v4577_v2  ;;  %3327 = vmatpush3.bf16.msra.mxu1 %v4617_v62 }
 0x76f   :  { %1944 = vmatprep.subr.bf16.mxu0 %v4581_v63  ;;  %3328 = vmatprep.subr.bf16.mxu1 %v5052_v51 }
 0x770   :  { %1660 = vmatmul.mubr.bf16.gmra.mxu0 %v2963_v39 }
 0x771   :  { %1669 = vmatprep.mubr.bf16.mxu0 %v5053_v59 }
 0x772   :  { %1945 = vmatpush1.bf16.msra.mxu0 %v4583_v43  ;;  %3329 = vmatpush3.bf16.msra.mxu1 %v4621_v32 }
 0x773   :  { %1946 = vmatprep.subr.bf16.mxu0 %v4587_v36  ;;  %3330 = vmatprep.subr.bf16.mxu1 %v5052_v51 }
 0x776   :  { %1947 = vmatpush1.bf16.msra.mxu0 %v4589_v49  ;;  %3331 = vmatpush3.bf16.msra.mxu1 %v4625_v25 }
 0x777   :  { %1948 = vmatprep.subr.bf16.mxu0 %v4593_v41  ;;  %3332 = vmatprep.subr.bf16.mxu1 %v5052_v51 }
 0x77a   :  { %1949 = vmatpush1.bf16.msra.mxu0 %v4595_v4  ;;  %3333 = vmatpush3.bf16.msra.mxu1 %v4629_v45 }
 0x77b   :  { %1950 = vmatprep.subr.bf16.mxu0 %v4597_v58  ;;  %3334 = vmatprep.subr.bf16.mxu1 %v5052_v51 }
 0x77e   :  { %1951 = vmatpush1.bf16.msra.mxu0 %v4604_v48  ;;  %3335 = vmatpush3.bf16.msra.mxu1 %v4633_v27 }
 0x77f   :  { %2044 = vmatprep.subr.bf16.mxu0 %v4557_v34  ;;  %3340 = vmatprep.subr.bf16.mxu1 %v5052_v51 }
 0x800   :  { %v1314_v37 = vpop.f32.mrf.mxu0  ;;  %v1355_v47 = vpop.f32.mrf.mxu1 }
 0x801   :  { %v1365_v30 = vadd.f32 %v1314_v37, %v5056_v29  ;;  %v1379_v18 = vadd.f32 %v3783_v15, %v1355_v47 }
 0x802   :  { %v1316_v12 = vpop.f32.mrf.mxu0  ;;  %v3294_v0 = vpop.f32.mrf.mxu1 }
 0x803   :  { %v2890_v56 = vmul.f32 -1.442695, %v1365_v30  ;;  %v1372_v11 = vadd.f32 %v1316_v12, %v4244_v46 }
 0x804   :  { %v1318_v31 = vpop.f32.mrf.mxu0  ;;  %v1358_v38 = vpop.f32.mrf.mxu1 }
 0x805   :  { %3670 = vpow2.f32 %v2890_v56  ;;  %v2891_v28 = vmul.f32 -1.442695, %v1372_v11  ;;  %v1438_v38 = vld [vmem:[%s5034_s7] sm:$0x7] }
 0x806   :  { %v1319_v7 = vpop.f32.mrf.mxu0  ;;  %v3295_v10 = vpop.f32.mrf.mxu1 }
 0x807   :  { %3672 = vpow2.f32 %v2891_v28 }
 0x812   :  { %v3671_v40 = vpop.eup %3670 }
 0x813   :  { %v1369_v13 = vadd.f32 1.0, %v3671_v40  ;;  %v5061_v40 = vld [vmem:[#allocation20_spill] sm:$0xff] }
 0x814   :  { %v3673_v14 = vpop.eup %3672 }
 0x815   :  { %3674 = vrcp.f32 %v1369_v13  ;;  %v1376_v6 = vadd.f32 1.0, %v3673_v14  ;;  %v5062_v13 = vsub.s32 0, %v5061_v40 }
 0x817   :  { %3676 = vrcp.f32 %v1376_v6  ;;  %v4725_v14 = vrot.slane %v1438_v38, %v5062_v13 }
 0x820   :  { %v4698_v37 = vpop.f32.mrf.mxu1 }
 0x822   :  { %v3675_v19 = vpop.eup %3674  ;;  %v1714_v29 = vpop.f32.mrf.mxu1 }
 0x823   :  { %v1380_v9 = vmul.f32 %v3675_v19, %v1379_v18 }
 0x824   :  { %v3677_v20 = vpop.eup %3676  ;;  %v4704_v12 = vpop.f32.mrf.mxu1 }
 0x825   :  { %v1381_v54 = vadd.f32 %v1380_v9, %v5057_v22  ;;  %v1383_v46 = vsub.f32 1.0, %v3677_v20  ;;  %v1385_v24 = vmul.f32 %v3677_v20, %v4542_v8  ;;  %v5067_v20 = vsub.s32 1, %v5061_v40 }
 0x826   :  { %v4708_v56 = vpop.f32.mrf.mxu1 }
 0x827   :  { %3678 = vtanh.f32 %v1381_v54 }
 0x834   :  { %v3679_v21 = vpop.eup %3678 }
 0x835   :  { %v1384_v23 = vmul.f32 %v3679_v21, %v1383_v46  ;;  %v4738_v46 = vrot.slane %v1438_v38, %v5067_v20 }
 0x837   :  { %v1386_v26 = vadd.f32 %v1385_v24, %v1384_v23 }
 0x839   :  { %1389 = vst [vmem:[#allocation13] sm:$0xff] %v1386_v26  ;;  %v2964_v1 = vpack.c.bf16 %v1386_v26, %v4542_v8  ;;  %v1641_v8 = vpop.f32.mrf.mxu0 }
 0x83a   :  { %v1642_v9 = vadd.f32 %v1641_v8, %v4725_v14 }
 0x83b   :  { %1670 = vmatmul.mubr.bf16.gmra.mxu0 %v2964_v1  ;;  %3317 = vmatmul.mubr.bf16.gmra.mxu1 %v2964_v1  ;;  %v1643_v33 = vpop.f32.mrf.mxu0 }
 0x83c   :  { %1968 = vmatprep.mubr.bf16.mxu0 %v5053_v59  ;;  %3336 = vmatprep.mubr.msk.bf16.mxu1 %vm3969_vm1, %v5052_v51 }
 0x83d   :  { %v4686_v44 = vpop.f32.mrf.mxu0 }
 0x83f   :  { %v4688_v3 = vpop.f32.mrf.mxu0 }
 0x841   :  { %v4690_v5 = vpop.f32.mrf.mxu0 }
 0x843   :  { %1969 = vmatmul.mubr.bf16.vlgmr.msra.gmra.mxu0 %v5053_v59  ;;  %3337 = vmatmul.mubr.bf16.vlgmr.msra.gmra.mxu1 %v5053_v59  ;;  %v4692_v60 = vpop.f32.mrf.mxu0 }
 0x844   :  { %2045 = vmatpush1.bf16.msra.mxu0 %v4559_v42  ;;  %3341 = vmatpush3.bf16.msra.mxu1 %v4599_v52 }
 0x845   :  { %2046 = vmatprep.subr.bf16.mxu0 %v4563_v35  ;;  %3342 = vmatprep.subr.bf16.mxu1 %v5052_v51  ;;  %v4694_v17 = vpop.f32.mrf.mxu0 }
 0x846   :  { %2076 = vmatprep.mubr.bf16.mxu0 %v5053_v59  ;;  %3356 = vmatprep.mubr.msk.bf16.mxu1 %vm3969_vm1, %v5052_v51 }
 0x847   :  { %v4696_v39 = vpop.f32.mrf.mxu0 }
 0x848   :  { %2047 = vmatpush1.bf16.msra.mxu0 %v4565_v50  ;;  %3343 = vmatpush3.bf16.msra.mxu1 %v4609_v53 }
 0x849   :  { %2048 = vmatprep.subr.bf16.mxu0 %v4569_v55  ;;  %3344 = vmatprep.subr.bf16.mxu1 %v5052_v51  ;;  %v4700_v47 = vpop.f32.mrf.mxu0 }
 0x84b   :  { %v4702_v30 = vpop.f32.mrf.mxu0 }
 0x84c   :  { %2049 = vmatpush1.bf16.msra.mxu0 %v4571_v57  ;;  %3345 = vmatpush3.bf16.msra.mxu1 %v4613_v61 }
 0x84d   :  { %2050 = vmatprep.subr.bf16.mxu0 %v4575_v16  ;;  %3346 = vmatprep.subr.bf16.mxu1 %v5052_v51  ;;  %v4706_v0 = vpop.f32.mrf.mxu0 }
 0x84f   :  { %v4710_v31 = vpop.f32.mrf.mxu0 }
 0x850   :  { %2051 = vmatpush1.bf16.msra.mxu0 %v4577_v2  ;;  %3347 = vmatpush3.bf16.msra.mxu1 %v4617_v62 }
 0x851   :  { %2052 = vmatprep.subr.bf16.mxu0 %v4581_v63  ;;  %3348 = vmatprep.subr.bf16.mxu1 %v5052_v51 }
 0x854   :  { %2053 = vmatpush1.bf16.msra.mxu0 %v4583_v43  ;;  %3349 = vmatpush3.bf16.msra.mxu1 %v4621_v32 }
 0x855   :  { %2054 = vmatprep.subr.bf16.mxu0 %v4587_v36  ;;  %3350 = vmatprep.subr.bf16.mxu1 %v5052_v51 }
 0x858   :  { %2055 = vmatpush1.bf16.msra.mxu0 %v4589_v49  ;;  %3351 = vmatpush3.bf16.msra.mxu1 %v4625_v25 }
 0x859   :  { %2056 = vmatprep.subr.bf16.mxu0 %v4593_v41  ;;  %3352 = vmatprep.subr.bf16.mxu1 %v5052_v51 }
 0x85c   :  { %2057 = vmatpush1.bf16.msra.mxu0 %v4595_v4  ;;  %3353 = vmatpush3.bf16.msra.mxu1 %v4629_v45 }
 0x85d   :  { %2058 = vmatprep.subr.bf16.mxu0 %v4597_v58  ;;  %3354 = vmatprep.subr.bf16.mxu1 %v5052_v51 }
 0x860   :  { %2059 = vmatpush1.bf16.msra.mxu0 %v4604_v48  ;;  %3355 = vmatpush3.bf16.msra.mxu1 %v4633_v27 }
 0x861   :  { %2152 = vmatprep.subr.bf16.mxu0 %v4557_v34  ;;  %3360 = vmatprep.subr.bf16.mxu1 %v5052_v51 }
 0x8fb   :  { %v4715_v7 = vpop.f32.mrf.mxu0  ;;  %v4717_v10 = vpop.f32.mrf.mxu1 }
 0x8fc   :  { %5058 = vst [vmem:[#allocation22_spill] sm:$0xff] %v4715_v7  ;;  %5059 = vst [vmem:[#allocation21_spill] sm:$0xff] %v4717_v10 }
 0x8fd   :  { %v4719_v11 = vpop.f32.mrf.mxu0  ;;  %v4721_v28 = vpop.f32.mrf.mxu1 }
 0x8fe   :  { %5060 = vst [vmem:[#allocation24_spill] sm:$0xff] %v4719_v11 }
 0x8ff   :  { %v4727_v6 = vpop.f32.mrf.mxu0  ;;  %v4729_v15 = vpop.f32.mrf.mxu1 }
 0x900   :  { %5063 = vst [vmem:[#allocation23_spill] sm:$0xff] %v4727_v6  ;;  %5064 = vst [vmem:[#allocation20_spill] sm:$0xff] %v4729_v15  ;;  %v1644_v15 = vadd.f32 %v1643_v33, %v4738_v46  ;;  %v5068_v33 = vsub.s32 2, %v5061_v40 }
 0x901   :  { %v4731_v18 = vpop.f32.mrf.mxu0  ;;  %v4733_v19 = vpop.f32.mrf.mxu1 }
 0x902   :  { %5065 = vst [vmem:[#allocation25_spill] sm:$0xff] %v4731_v18  ;;  %5066 = vst [vmem:[#allocation26_spill] sm:$0xff] %v4733_v19 }
 0x903   :  { %v1970_v22 = vpop.f32.mrf.mxu0  ;;  %v2011_v54 = vpop.f32.mrf.mxu1 }
 0x904   :  { %v2020_v21 = vadd.f32 %v1970_v22, %v1642_v9  ;;  %v4744_v9 = vld [vmem:[%s5035_s8] ss:$0 sm:$0xff]  ;;  %s3970_s8 = smov [#allocation12]  }
 0x905   :  { %v1972_v23 = vpop.f32.mrf.mxu0  ;;  %v3338_v24 = vpop.f32.mrf.mxu1  ;;  %v2034_v20 = vadd.f32 %v4744_v9, %v2011_v54  ;;  %s2806_s24 = sshll.u32 %s3970_s8, 4  ;;  %s2807_s24 = int_to_ptr.vmem [resolvable:$true] %s2806_s24 }
 0x906   :  { %v2945_v26 = vmul.f32 -1.442695, %v2020_v21  ;;  %v2027_v10 = vadd.f32 %v1972_v23, %v1644_v15  ;;  %v4749_v21 = vrot.slane %v1438_v38, %v5068_v33  ;;  %s3908_s1 = scalar_lea.vmem %s2807_s24, 1024  ;;  %p3913_p12 = scmp.lt.s32.totalorder %s2807_s24, %s2807_s24 }
 0x907   :  { %v1974_v1 = vpop.f32.mrf.mxu0  ;;  %v2014_v13 = vpop.f32.mrf.mxu1  ;;  %p3909_p11 = scmp.ne.s32.totalorder %s2807_s24, %s3908_s1  ;;  %p3914_p13 = scmp.lt.s32.totalorder %s3908_s1, %s3908_s1 }
 0x908   :  { %3680 = vpow2.f32 %v2945_v26  ;;  %v2946_v11 = vmul.f32 -1.442695, %v2027_v10  ;;  %v1715_v10 = vadd.f32 %v1714_v29, %v4749_v21  ;;  %v1646_v29 = vadd.f32 %v4686_v44, %v4725_v14 }
 0x909   :  { %v1975_v18 = vpop.f32.mrf.mxu0  ;;  %v3339_v6 = vpop.f32.mrf.mxu1  ;;  %p3915_p0 = por %p3914_p13, %p3913_p12 }
 0x90a   :  { %3682 = vpow2.f32 %v2946_v11 }
 0x90b   :  { %p3916_p1 = pnand %p3915_p0, %p3909_p11 }
 0x915   :  { %v3681_v8 = vpop.eup %3680 }
 0x916   :  { %v2024_v7 = vadd.f32 1.0, %v3681_v8 }
 0x917   :  { %v3683_v19 = vpop.eup %3682 }
 0x918   :  { %3684 = vrcp.f32 %v2024_v7  ;;  %v2031_v22 = vadd.f32 1.0, %v3683_v19 }
 0x91a   :  { %3686 = vrcp.f32 %v2031_v22 }
 0x925   :  { %v3685_v6 = vpop.eup %3684 }
 0x926   :  { %v2035_v11 = vmul.f32 %v3685_v6, %v2034_v20  ;;  %v1648_v6 = vadd.f32 %v4688_v3, %v4738_v46 }
 0x927   :  { %v3687_v7 = vpop.eup %3686 }
 0x928   :  { %v2036_v15 = vadd.f32 %v2035_v11, %v1715_v10  ;;  %v2038_v18 = vsub.f32 1.0, %v3687_v7  ;;  %v2040_v26 = vmul.f32 0.0, %v3687_v7 }
 0x92a   :  { %3688 = vtanh.f32 %v2036_v15 }
 0x937   :  { %v3689_v23 = vpop.eup %3688 }
 0x938   :  { %v2039_v24 = vmul.f32 %v3689_v23, %v2038_v18 }
 0x93a   :  { %v4752_v1 = vadd.f32 %v2040_v26, %v2039_v24 }
 0x93c   :  { %2042 = vst [vmem:[#allocation12] sm:$0xff] %v4752_v1  ;;  %v2043_v38 = vpack.c.bf16 %v4752_v1, %v4752_v1 }
 0x93e   :  { %2077 = vmatmul.mubr.bf16.vlgmr.msra.gmra.mxu0 %v2043_v38  ;;  %3357 = vmatmul.mubr.bf16.vlgmr.msra.gmra.mxu1 %v2043_v38 }
 0x93f   :  { %2153 = vmatpush1.bf16.msra.mxu0 %v4559_v42  ;;  %3361 = vmatpush3.bf16.msra.mxu1 %v4599_v52 }
 0x940   :  { %2154 = vmatprep.subr.bf16.mxu0 %v4563_v35  ;;  %3362 = vmatprep.subr.bf16.mxu1 %v5052_v51 }
 0x941   :  { %2184 = vmatprep.mubr.bf16.mxu0 %v5053_v59  ;;  %3376 = vmatprep.mubr.msk.bf16.mxu1 %vm3969_vm1, %v5052_v51 }
 0x943   :  { %2155 = vmatpush1.bf16.msra.mxu0 %v4565_v50  ;;  %3363 = vmatpush3.bf16.msra.mxu1 %v4609_v53 }
 0x944   :  { %2156 = vmatprep.subr.bf16.mxu0 %v4569_v55  ;;  %3364 = vmatprep.subr.bf16.mxu1 %v5052_v51 }
 0x947   :  { %2157 = vmatpush1.bf16.msra.mxu0 %v4571_v57  ;;  %3365 = vmatpush3.bf16.msra.mxu1 %v4613_v61 }
 0x948   :  { %2158 = vmatprep.subr.bf16.mxu0 %v4575_v16  ;;  %3366 = vmatprep.subr.bf16.mxu1 %v5052_v51 }
 0x94b   :  { %2159 = vmatpush1.bf16.msra.mxu0 %v4577_v2  ;;  %3367 = vmatpush3.bf16.msra.mxu1 %v4617_v62 }
 0x94c   :  { %2160 = vmatprep.subr.bf16.mxu0 %v4581_v63  ;;  %3368 = vmatprep.subr.bf16.mxu1 %v5052_v51 }
 0x94f   :  { %2161 = vmatpush1.bf16.msra.mxu0 %v4583_v43  ;;  %3369 = vmatpush3.bf16.msra.mxu1 %v4621_v32 }
 0x950   :  { %2162 = vmatprep.subr.bf16.mxu0 %v4587_v36  ;;  %3370 = vmatprep.subr.bf16.mxu1 %v5052_v51 }
 0x953   :  { %2163 = vmatpush1.bf16.msra.mxu0 %v4589_v49  ;;  %3371 = vmatpush3.bf16.msra.mxu1 %v4625_v25 }
 0x954   :  { %2164 = vmatprep.subr.bf16.mxu0 %v4593_v41  ;;  %3372 = vmatprep.subr.bf16.mxu1 %v5052_v51 }
 0x957   :  { %2165 = vmatpush1.bf16.msra.mxu0 %v4595_v4  ;;  %3373 = vmatpush3.bf16.msra.mxu1 %v4629_v45 }
 0x958   :  { %2166 = vmatprep.subr.bf16.mxu0 %v4597_v58  ;;  %3374 = vmatprep.subr.bf16.mxu1 %v5052_v51 }
 0x95b   :  { %2167 = vmatpush1.bf16.msra.mxu0 %v4604_v48  ;;  %3375 = vmatpush3.bf16.msra.mxu1 %v4633_v27 }
 0x95c   :  { %2260 = vmatprep.subr.bf16.mxu0 %v4557_v34  ;;  %3380 = vmatprep.subr.bf16.mxu1 %v5052_v51 }
 0x9fe   :  { %v2078_v40 = vpop.f32.mrf.mxu0  ;;  %v2119_v19 = vpop.f32.mrf.mxu1 }
 0x9ff   :  { %v2128_v54 = vadd.f32 %v2078_v40, %v1646_v29  ;;  %v2142_v26 = vadd.f32 %v4744_v9, %v2119_v19  ;;  %v1718_v29 = vadd.f32 %v4708_v56, %v4749_v21  ;;  %v1652_v56 = vadd.f32 %v4690_v5, %v4725_v14 }
 0xa00   :  { %v2080_v13 = vpop.f32.mrf.mxu0  ;;  %v3358_v8 = vpop.f32.mrf.mxu1 }
 0xa01   :  { %v2947_v22 = vmul.f32 -1.442695, %v2128_v54  ;;  %v2135_v15 = vadd.f32 %v2080_v13, %v1648_v6 }
 0xa02   :  { %v2082_v20 = vpop.f32.mrf.mxu0  ;;  %v2122_v33 = vpop.f32.mrf.mxu1 }
 0xa03   :  { %3690 = vpow2.f32 %v2947_v22  ;;  %v2948_v7 = vmul.f32 -1.442695, %v2135_v15 }
 0xa04   :  { %v2083_v10 = vpop.f32.mrf.mxu0  ;;  %v3359_v11 = vpop.f32.mrf.mxu1 }
 0xa05   :  { %3692 = vpow2.f32 %v2948_v7 }
 0xa10   :  { %v3691_v18 = vpop.eup %3690 }
 0xa11   :  { %v2132_v23 = vadd.f32 1.0, %v3691_v18 }
 0xa12   :  { %v3693_v44 = vpop.eup %3692 }
 0xa13   :  { %3694 = vrcp.f32 %v2132_v23  ;;  %v2139_v24 = vadd.f32 1.0, %v3693_v44  ;;  %v1654_v44 = vadd.f32 %v4692_v60, %v4738_v46 }
 0xa15   :  { %3696 = vrcp.f32 %v2139_v24 }
 0xa20   :  { %v3695_v38 = vpop.eup %3694 }
 0xa21   :  { %v2143_v40 = vmul.f32 %v3695_v38, %v2142_v26 }
 0xa22   :  { %v3697_v54 = vpop.eup %3696 }
 0xa23   :  { %v2144_v3 = vadd.f32 %v2143_v40, %v1718_v29  ;;  %v2146_v8 = vsub.f32 1.0, %v3697_v54  ;;  %v2148_v20 = vmul.f32 %v3697_v54, %v4752_v1 }
 0xa25   :  { %3698 = vtanh.f32 %v2144_v3 }
 0xa32   :  { %v3699_v13 = vpop.eup %3698 }
 0xa33   :  { %v2147_v22 = vmul.f32 %v3699_v13, %v2146_v8 }
 0xa35   :  { %v4800_v33 = vadd.f32 %v2148_v20, %v2147_v22  ;;  %v1723_v22 = vadd.f32 %v4698_v37, %v4749_v21  ;;  %v1656_v37 = vadd.f32 %v4694_v17, %v4725_v14 }
 0xa37   :  { %2150 = vst [vmem:[#allocation12 + $0x8] sm:$0xff] %v4800_v33  ;;  %v2151_v19 = vpack.c.bf16 %v4800_v33, %v4800_v33 }
 0xa39   :  { %2185 = vmatmul.mubr.bf16.vlgmr.msra.gmra.mxu0 %v2151_v19  ;;  %3377 = vmatmul.mubr.bf16.vlgmr.msra.gmra.mxu1 %v2151_v19 }
 0xa3a   :  { %2261 = vmatpush1.bf16.msra.mxu0 %v4559_v42  ;;  %3381 = vmatpush3.bf16.msra.mxu1 %v4599_v52 }
 0xa3b   :  { %2262 = vmatprep.subr.bf16.mxu0 %v4563_v35  ;;  %3382 = vmatprep.subr.bf16.mxu1 %v5052_v51 }
 0xa3c   :  { %2292 = vmatprep.mubr.bf16.mxu0 %v5053_v59  ;;  %3396 = vmatprep.mubr.msk.bf16.mxu1 %vm3969_vm1, %v5052_v51 }
 0xa3e   :  { %2263 = vmatpush1.bf16.msra.mxu0 %v4565_v50  ;;  %3383 = vmatpush3.bf16.msra.mxu1 %v4609_v53 }
 0xa3f   :  { %2264 = vmatprep.subr.bf16.mxu0 %v4569_v55  ;;  %3384 = vmatprep.subr.bf16.mxu1 %v5052_v51 }
 0xa42   :  { %2265 = vmatpush1.bf16.msra.mxu0 %v4571_v57  ;;  %3385 = vmatpush3.bf16.msra.mxu1 %v4613_v61 }
 0xa43   :  { %2266 = vmatprep.subr.bf16.mxu0 %v4575_v16  ;;  %3386 = vmatprep.subr.bf16.mxu1 %v5052_v51 }
 0xa46   :  { %2267 = vmatpush1.bf16.msra.mxu0 %v4577_v2  ;;  %3387 = vmatpush3.bf16.msra.mxu1 %v4617_v62 }
 0xa47   :  { %2268 = vmatprep.subr.bf16.mxu0 %v4581_v63  ;;  %3388 = vmatprep.subr.bf16.mxu1 %v5052_v51 }
 0xa4a   :  { %2269 = vmatpush1.bf16.msra.mxu0 %v4583_v43  ;;  %3389 = vmatpush3.bf16.msra.mxu1 %v4621_v32 }
 0xa4b   :  { %2270 = vmatprep.subr.bf16.mxu0 %v4587_v36  ;;  %3390 = vmatprep.subr.bf16.mxu1 %v5052_v51 }
 0xa4e   :  { %2271 = vmatpush1.bf16.msra.mxu0 %v4589_v49  ;;  %3391 = vmatpush3.bf16.msra.mxu1 %v4625_v25 }
 0xa4f   :  { %2272 = vmatprep.subr.bf16.mxu0 %v4593_v41  ;;  %3392 = vmatprep.subr.bf16.mxu1 %v5052_v51 }
 0xa52   :  { %2273 = vmatpush1.bf16.msra.mxu0 %v4595_v4  ;;  %3393 = vmatpush3.bf16.msra.mxu1 %v4629_v45 }
 0xa53   :  { %2274 = vmatprep.subr.bf16.mxu0 %v4597_v58  ;;  %3394 = vmatprep.subr.bf16.mxu1 %v5052_v51 }
 0xa56   :  { %2275 = vmatpush1.bf16.msra.mxu0 %v4604_v48  ;;  %3395 = vmatpush3.bf16.msra.mxu1 %v4633_v27 }
 0xa57   :  { %2368 = vmatprep.subr.bf16.mxu0 %v4557_v34  ;;  %3400 = vmatprep.subr.bf16.mxu1 %v5052_v51 }
 0xaf9   :  { %v2186_v1 = vpop.f32.mrf.mxu0  ;;  %v2227_v6 = vpop.f32.mrf.mxu1 }
 0xafa   :  { %v2236_v10 = vadd.f32 %v2186_v1, %v1652_v56  ;;  %v2250_v8 = vadd.f32 %v4744_v9, %v2227_v6 }
 0xafb   :  { %v2188_v11 = vpop.f32.mrf.mxu0  ;;  %v3378_v15 = vpop.f32.mrf.mxu1 }
 0xafc   :  { %v2949_v7 = vmul.f32 -1.442695, %v2236_v10  ;;  %v2243_v38 = vadd.f32 %v2188_v11, %v1654_v44 }
 0xafd   :  { %v2190_v18 = vpop.f32.mrf.mxu0  ;;  %v2230_v23 = vpop.f32.mrf.mxu1 }
 0xafe   :  { %3700 = vpow2.f32 %v2949_v7  ;;  %v2950_v29 = vmul.f32 -1.442695, %v2243_v38 }
 0xaff   :  { %v2191_v24 = vpop.f32.mrf.mxu0  ;;  %v3379_v26 = vpop.f32.mrf.mxu1 }
 0xb00   :  { %3702 = vpow2.f32 %v2950_v29  ;;  %v1658_v29 = vadd.f32 %v4696_v39, %v4738_v46 }
 0xb0b   :  { %v3701_v40 = vpop.eup %3700 }
 0xb0c   :  { %v2240_v3 = vadd.f32 1.0, %v3701_v40 }
 0xb0d   :  { %v3703_v5 = vpop.eup %3702 }
 0xb0e   :  { %3704 = vrcp.f32 %v2240_v3  ;;  %v2247_v54 = vadd.f32 1.0, %v3703_v5 }
 0xb10   :  { %3706 = vrcp.f32 %v2247_v54 }
 0xb1b   :  { %v3705_v13 = vpop.eup %3704 }
 0xb1c   :  { %v2251_v20 = vmul.f32 %v3705_v13, %v2250_v8 }
 0xb1d   :  { %v3707_v19 = vpop.eup %3706 }
 0xb1e   :  { %v2252_v60 = vadd.f32 %v2251_v20, %v1723_v22  ;;  %v2254_v56 = vsub.f32 1.0, %v3707_v19  ;;  %v2256_v11 = vmul.f32 %v3707_v19, %v4800_v33  ;;  %v1726_v19 = vadd.f32 %v4704_v12, %v4749_v21 }
 0xb1f   :  { %v1662_v12 = vadd.f32 %v4700_v47, %v4725_v14 }
 0xb20   :  { %3708 = vtanh.f32 %v2252_v60 }
 0xb2d   :  { %v3709_v1 = vpop.eup %3708 }
 0xb2e   :  { %v2255_v10 = vmul.f32 %v3709_v1, %v2254_v56 }
 0xb30   :  { %v4848_v15 = vadd.f32 %v2256_v11, %v2255_v10 }
 0xb32   :  { %2258 = vst [vmem:[#allocation12 + $0x10] sm:$0xff] %v4848_v15  ;;  %v2259_v6 = vpack.c.bf16 %v4848_v15, %v4848_v15 }
 0xb34   :  { %2293 = vmatmul.mubr.bf16.vlgmr.msra.gmra.mxu0 %v2259_v6  ;;  %3397 = vmatmul.mubr.bf16.vlgmr.msra.gmra.mxu1 %v2259_v6 }
 0xb35   :  { %2369 = vmatpush1.bf16.msra.mxu0 %v4559_v42  ;;  %3401 = vmatpush3.bf16.msra.mxu1 %v4599_v52 }
 0xb36   :  { %2370 = vmatprep.subr.bf16.mxu0 %v4563_v35  ;;  %3402 = vmatprep.subr.bf16.mxu1 %v5052_v51 }
 0xb37   :  { %2400 = vmatprep.mubr.bf16.mxu0 %v5053_v59  ;;  %3416 = vmatprep.mubr.msk.bf16.mxu1 %vm3969_vm1, %v5052_v51 }
 0xb39   :  { %2371 = vmatpush1.bf16.msra.mxu0 %v4565_v50  ;;  %3403 = vmatpush3.bf16.msra.mxu1 %v4609_v53 }
 0xb3a   :  { %2372 = vmatprep.subr.bf16.mxu0 %v4569_v55  ;;  %3404 = vmatprep.subr.bf16.mxu1 %v5052_v51 }
 0xb3d   :  { %2373 = vmatpush1.bf16.msra.mxu0 %v4571_v57  ;;  %3405 = vmatpush3.bf16.msra.mxu1 %v4613_v61 }
 0xb3e   :  { %2374 = vmatprep.subr.bf16.mxu0 %v4575_v16  ;;  %3406 = vmatprep.subr.bf16.mxu1 %v5052_v51 }
 0xb41   :  { %2375 = vmatpush1.bf16.msra.mxu0 %v4577_v2  ;;  %3407 = vmatpush3.bf16.msra.mxu1 %v4617_v62 }
 0xb42   :  { %2376 = vmatprep.subr.bf16.mxu0 %v4581_v63  ;;  %3408 = vmatprep.subr.bf16.mxu1 %v5052_v51 }
 0xb45   :  { %2377 = vmatpush1.bf16.msra.mxu0 %v4583_v43  ;;  %3409 = vmatpush3.bf16.msra.mxu1 %v4621_v32 }
 0xb46   :  { %2378 = vmatprep.subr.bf16.mxu0 %v4587_v36  ;;  %3410 = vmatprep.subr.bf16.mxu1 %v5052_v51 }
 0xb49   :  { %2379 = vmatpush1.bf16.msra.mxu0 %v4589_v49  ;;  %3411 = vmatpush3.bf16.msra.mxu1 %v4625_v25 }
 0xb4a   :  { %2380 = vmatprep.subr.bf16.mxu0 %v4593_v41  ;;  %3412 = vmatprep.subr.bf16.mxu1 %v5052_v51 }
 0xb4d   :  { %2381 = vmatpush1.bf16.msra.mxu0 %v4595_v4  ;;  %3413 = vmatpush3.bf16.msra.mxu1 %v4629_v45 }
 0xb4e   :  { %2382 = vmatprep.subr.bf16.mxu0 %v4597_v58  ;;  %3414 = vmatprep.subr.bf16.mxu1 %v5052_v51 }
 0xb51   :  { %2383 = vmatpush1.bf16.msra.mxu0 %v4604_v48  ;;  %3415 = vmatpush3.bf16.msra.mxu1 %v4633_v27 }
 0xb52   :  { %2476 = vmatprep.subr.bf16.mxu0 %v4557_v34  ;;  %3420 = vmatprep.subr.bf16.mxu1 %v5052_v51 }
 0xbf4   :  { %v2294_v33 = vpop.f32.mrf.mxu0  ;;  %v2335_v7 = vpop.f32.mrf.mxu1 }
 0xbf5   :  { %v2344_v18 = vadd.f32 %v2294_v33, %v1656_v37  ;;  %v2358_v20 = vadd.f32 %v4744_v9, %v2335_v7 }
 0xbf6   :  { %v2296_v23 = vpop.f32.mrf.mxu0  ;;  %v3398_v44 = vpop.f32.mrf.mxu1 }
 0xbf7   :  { %v2951_v24 = vmul.f32 -1.442695, %v2344_v18  ;;  %v2351_v5 = vadd.f32 %v2296_v23, %v1658_v29 }
 0xbf8   :  { %v2298_v26 = vpop.f32.mrf.mxu0  ;;  %v2338_v38 = vpop.f32.mrf.mxu1 }
 0xbf9   :  { %3710 = vpow2.f32 %v2951_v24  ;;  %v2952_v54 = vmul.f32 -1.442695, %v2351_v5 }
 0xbfa   :  { %v2299_v40 = vpop.f32.mrf.mxu0  ;;  %v3399_v3 = vpop.f32.mrf.mxu1 }
 0xbfb   :  { %3712 = vpow2.f32 %v2952_v54  ;;  %v1664_v40 = vadd.f32 %v4702_v30, %v4738_v46 }
 0xc06   :  { %v3711_v8 = vpop.eup %3710 }
 0xc07   :  { %v2348_v13 = vadd.f32 1.0, %v3711_v8 }
 0xc08   :  { %v3713_v17 = vpop.eup %3712 }
 0xc09   :  { %3714 = vrcp.f32 %v2348_v13  ;;  %v2355_v22 = vadd.f32 1.0, %v3713_v17 }
 0xc0b   :  { %3716 = vrcp.f32 %v2355_v22 }
 0xc16   :  { %v3715_v60 = vpop.eup %3714 }
 0xc17   :  { %v2359_v56 = vmul.f32 %v3715_v60, %v2358_v20  ;;  %v1731_v60 = vadd.f32 %v4721_v28, %v4749_v21 }
 0xc18   :  { %v3717_v1 = vpop.eup %3716 }
 0xc19   :  { %v2360_v39 = vadd.f32 %v2359_v56, %v1726_v19  ;;  %v2362_v10 = vsub.f32 1.0, %v3717_v1  ;;  %v2364_v37 = vmul.f32 %v3717_v1, %v4848_v15 }
 0xc1b   :  { %3718 = vtanh.f32 %v2360_v39 }
 0xc28   :  { %v3719_v11 = vpop.eup %3718 }
 0xc29   :  { %v2363_v6 = vmul.f32 %v3719_v11, %v2362_v10 }
 0xc2b   :  { %v4896_v33 = vadd.f32 %v2364_v37, %v2363_v6 }
 0xc2d   :  { %2366 = vst [vmem:[#allocation12 + $0x18] sm:$0xff] %v4896_v33  ;;  %v2367_v7 = vpack.c.bf16 %v4896_v33, %v4896_v33 }
 0xc2f   :  { %2401 = vmatmul.mubr.bf16.vlgmr.msra.gmra.mxu0 %v2367_v7  ;;  %3417 = vmatmul.mubr.bf16.vlgmr.msra.gmra.mxu1 %v2367_v7 }
 0xc30   :  { %2477 = vmatpush1.bf16.msra.mxu0 %v4559_v42  ;;  %3421 = vmatpush3.bf16.msra.mxu1 %v4599_v52 }
 0xc31   :  { %2478 = vmatprep.subr.bf16.mxu0 %v4563_v35  ;;  %3422 = vmatprep.subr.bf16.mxu1 %v5052_v51 }
 0xc32   :  { %2508 = vmatprep.mubr.bf16.mxu0 %v5053_v59  ;;  %3436 = vmatprep.mubr.msk.bf16.mxu1 %vm3969_vm1, %v5052_v51 }
 0xc34   :  { %2479 = vmatpush1.bf16.msra.mxu0 %v4565_v50  ;;  %3423 = vmatpush3.bf16.msra.mxu1 %v4609_v53 }
 0xc35   :  { %2480 = vmatprep.subr.bf16.mxu0 %v4569_v55  ;;  %3424 = vmatprep.subr.bf16.mxu1 %v5052_v51 }
 0xc38   :  { %2481 = vmatpush1.bf16.msra.mxu0 %v4571_v57  ;;  %3425 = vmatpush3.bf16.msra.mxu1 %v4613_v61 }
 0xc39   :  { %2482 = vmatprep.subr.bf16.mxu0 %v4575_v16  ;;  %3426 = vmatprep.subr.bf16.mxu1 %v5052_v51 }
 0xc3c   :  { %2483 = vmatpush1.bf16.msra.mxu0 %v4577_v2  ;;  %3427 = vmatpush3.bf16.msra.mxu1 %v4617_v62 }
 0xc3d   :  { %2484 = vmatprep.subr.bf16.mxu0 %v4581_v63  ;;  %3428 = vmatprep.subr.bf16.mxu1 %v5052_v51 }
 0xc40   :  { %2485 = vmatpush1.bf16.msra.mxu0 %v4583_v43  ;;  %3429 = vmatpush3.bf16.msra.mxu1 %v4621_v32 }
 0xc41   :  { %2486 = vmatprep.subr.bf16.mxu0 %v4587_v36  ;;  %3430 = vmatprep.subr.bf16.mxu1 %v5052_v51 }
 0xc44   :  { %2487 = vmatpush1.bf16.msra.mxu0 %v4589_v49  ;;  %3431 = vmatpush3.bf16.msra.mxu1 %v4625_v25 }
 0xc45   :  { %2488 = vmatprep.subr.bf16.mxu0 %v4593_v41  ;;  %3432 = vmatprep.subr.bf16.mxu1 %v5052_v51 }
 0xc48   :  { %2489 = vmatpush1.bf16.msra.mxu0 %v4595_v4  ;;  %3433 = vmatpush3.bf16.msra.mxu1 %v4629_v45 }
 0xc49   :  { %2490 = vmatprep.subr.bf16.mxu0 %v4597_v58  ;;  %3434 = vmatprep.subr.bf16.mxu1 %v5052_v51 }
 0xc4c   :  { %2491 = vmatpush1.bf16.msra.mxu0 %v4604_v48  ;;  %3435 = vmatpush3.bf16.msra.mxu1 %v4633_v27 }
 0xc4d   :  { %2584 = vmatprep.subr.bf16.mxu0 %v4557_v34  ;;  %3440 = vmatprep.subr.bf16.mxu1 %v5052_v51 }
 0xcef   :  { %v2402_v15 = vpop.f32.mrf.mxu0  ;;  %v2443_v18 = vpop.f32.mrf.mxu1 }
 0xcf0   :  { %v2452_v23 = vadd.f32 %v2402_v15, %v1662_v12  ;;  %v2466_v22 = vadd.f32 %v4744_v9, %v2443_v18 }
 0xcf1   :  { %v2404_v44 = vpop.f32.mrf.mxu0  ;;  %v3418_v24 = vpop.f32.mrf.mxu1 }
 0xcf2   :  { %v2953_v26 = vmul.f32 -1.442695, %v2452_v23  ;;  %v2459_v34 = vadd.f32 %v2404_v44, %v1664_v40  ;;  %v3785_v44 = vld [vmem:[#allocation11 + $0xa8] ss:$12 sps:$4 sm:$0xff]   ;;  %v3786_v24 = vld [vmem:[#allocation11 + $0xb0] ss:$12 sps:$4 sm:$0xff]  }
 0xcf3   :  { %v2406_v38 = vpop.f32.mrf.mxu0  ;;  %v2446_v29 = vpop.f32.mrf.mxu1  ;;  %v3790_v40 = vld [vmem:[#allocation11 + $0x7c] ss:$12 sps:$4 sm:$0xff]  }
 0xcf4   :  { %3720 = vpow2.f32 %v2953_v26  ;;  %v2954_v54 = vmul.f32 -1.442695, %v2459_v34  ;;  %v3787_v26 = vld [vmem:[#allocation11 + $0x94] ss:$12 sps:$4 sm:$0xff]   ;;  %v3788_v38 = vld [vmem:[#allocation11 + $0x90] ss:$12 sps:$4 sm:$0xff]  }
 0xcf5   :  { %v2407_v3 = vpop.f32.mrf.mxu0  ;;  %v3419_v5 = vpop.f32.mrf.mxu1  ;;  %v3789_v29 = vld [vmem:[#allocation11 + $0x98] ss:$12 sps:$4 sm:$0xff]  }
 0xcf6   :  { %3722 = vpow2.f32 %v2954_v54  ;;  %v3791_v3 = vld [vmem:[#allocation11 + $0x78] ss:$12 sps:$4 sm:$0xff]   ;;  %v3792_v5 = vld [vmem:[#allocation11 + $0x80] ss:$12 sps:$4 sm:$0xff]   ;;  %v3795_v54 = vld [vmem:[#allocation11 + $0x68] ss:$12 sps:$4 sm:$0xff]  }
 0xcf7   :  { %v3793_v34 = vld [vmem:[#allocation11 + $0x64] ss:$12 sps:$4 sm:$0xff]  }
 0xd01   :  { %v3721_v8 = vpop.eup %3720 }
 0xd02   :  { %v2456_v13 = vadd.f32 1.0, %v3721_v8  ;;  %v3796_v8 = vld [vmem:[#allocation11 + $0x4c] ss:$12 sps:$4 sm:$0xff]  }
 0xd03   :  { %v3723_v47 = vpop.eup %3722 }
 0xd04   :  { %3724 = vrcp.f32 %v2456_v13  ;;  %v2463_v17 = vadd.f32 1.0, %v3723_v47  ;;  %v3797_v13 = vld [vmem:[#allocation11 + $0x48] ss:$12 sps:$4 sm:$0xff]   ;;  %v3798_v47 = vld [vmem:[#allocation11 + $0x50] ss:$12 sps:$4 sm:$0xff]  }
 0xd06   :  { %3726 = vrcp.f32 %v2463_v17  ;;  %v3799_v17 = vld [vmem:[#allocation11 + $0x34] ss:$12 sps:$4 sm:$0xff]  }
 0xd11   :  { %v3725_v20 = vpop.eup %3724 }
 0xd12   :  { %v2467_v19 = vmul.f32 %v3725_v20, %v2466_v22  ;;  %v3800_v22 = vld [vmem:[#allocation11 + $0x30] ss:$12 sps:$4 sm:$0xff]   ;;  %v3801_v20 = vld [vmem:[#allocation11 + $0x38] ss:$12 sps:$4 sm:$0xff]  }
 0xd13   :  { %v3727_v56 = vpop.eup %3726 }
 0xd14   :  { %v2468_v30 = vadd.f32 %v2467_v19, %v1731_v60  ;;  %v2470_v39 = vsub.f32 1.0, %v3727_v56  ;;  %v2472_v11 = vmul.f32 %v3727_v56, %v4896_v33  ;;  %v3802_v60 = vld [vmem:[#allocation11 + $0x1c] ss:$12 sps:$4 sm:$0xff]   ;;  %v3803_v19 = vld [vmem:[#allocation11 + $0x18] ss:$12 sps:$4 sm:$0xff]  }
 0xd15   :  { %v3805_v56 = vld [vmem:[#allocation11 + $0x4] ss:$12 sps:$4 sm:$0xff]  }
 0xd16   :  { %3728 = vtanh.f32 %v2468_v30  ;;  %v3804_v30 = vld [vmem:[#allocation11 + $0x20] ss:$12 sps:$4 sm:$0xff]  }
 0xd23   :  { %v3729_v1 = vpop.eup %3728 }
 0xd24   :  { %v2471_v10 = vmul.f32 %v3729_v1, %v2470_v39  ;;  %v3806_v39 = vld [vmem:[#allocation11] ss:$12 sps:$4 sm:$0xff]   ;;  %v3807_v1 = vld [vmem:[#allocation11 + $0x8] ss:$12 sps:$4 sm:$0xff]  }
 0xd26   :  { %v4944_v6 = vadd.f32 %v2472_v11, %v2471_v10  ;;  %v5070_v10 = vld [vmem:[#allocation22_spill] sm:$0xff] }
 0xd27   :  { %v1672_v11 = vadd.f32 %v5070_v10, %v4725_v14 }
 0xd28   :  { %2474 = vst [vmem:[#allocation12 + $0x20] sm:$0xff] %v4944_v6  ;;  %v2475_v37 = vpack.c.bf16 %v4944_v6, %v4944_v6 }
 0xd2a   :  { %2509 = vmatmul.mubr.bf16.vlgmr.msra.gmra.mxu0 %v2475_v37  ;;  %3437 = vmatmul.mubr.bf16.vlgmr.msra.gmra.mxu1 %v2475_v37 }
 0xd2b   :  { %2585 = vmatpush1.bf16.msra.mxu0 %v4559_v42  ;;  %3441 = vmatpush3.bf16.msra.mxu1 %v4599_v52  ;;  %v3784_v42 = vld [vmem:[#allocation11 + $0xac] ss:$12 sps:$4 sm:$0xff]  }
 0xd2c   :  { %2586 = vmatprep.subr.bf16.mxu0 %v4563_v35  ;;  %3442 = vmatprep.subr.bf16.mxu1 %v5052_v51  ;;  %v1666_v35 = vadd.f32 %v4706_v0, %v4725_v14 }
 0xd2d   :  { %2616 = vmatprep.mubr.bf16.mxu0 %v5053_v59  ;;  %3456 = vmatprep.mubr.msk.bf16.mxu1 %vm3969_vm1, %v5052_v51 }
 0xd2f   :  { %2587 = vmatpush1.bf16.msra.mxu0 %v4565_v50  ;;  %3443 = vmatpush3.bf16.msra.mxu1 %v4609_v53 }
 0xd30   :  { %2588 = vmatprep.subr.bf16.mxu0 %v4569_v55  ;;  %3444 = vmatprep.subr.bf16.mxu1 %v5052_v51 }
 0xd33   :  { %2589 = vmatpush1.bf16.msra.mxu0 %v4571_v57  ;;  %3445 = vmatpush3.bf16.msra.mxu1 %v4613_v61 }
 0xd34   :  { %2590 = vmatprep.subr.bf16.mxu0 %v4575_v16  ;;  %3446 = vmatprep.subr.bf16.mxu1 %v5052_v51 }
 0xd37   :  { %2591 = vmatpush1.bf16.msra.mxu0 %v4577_v2  ;;  %3447 = vmatpush3.bf16.msra.mxu1 %v4617_v62 }
 0xd38   :  { %2592 = vmatprep.subr.bf16.mxu0 %v4581_v63  ;;  %3448 = vmatprep.subr.bf16.mxu1 %v5052_v51 }
 0xd3b   :  { %2593 = vmatpush1.bf16.msra.mxu0 %v4583_v43  ;;  %3449 = vmatpush3.bf16.msra.mxu1 %v4621_v32 }
 0xd3c   :  { %2594 = vmatprep.subr.bf16.mxu0 %v4587_v36  ;;  %3450 = vmatprep.subr.bf16.mxu1 %v5052_v51 }
 0xd3f   :  { %2595 = vmatpush1.bf16.msra.mxu0 %v4589_v49  ;;  %3451 = vmatpush3.bf16.msra.mxu1 %v4625_v25  ;;  %v1668_v49 = vadd.f32 %v4710_v31, %v4738_v46 }
 0xd40   :  { %2596 = vmatprep.subr.bf16.mxu0 %v4593_v41  ;;  %3452 = vmatprep.subr.bf16.mxu1 %v5052_v51 }
 0xd43   :  { %2597 = vmatpush1.bf16.msra.mxu0 %v4595_v4  ;;  %3453 = vmatpush3.bf16.msra.mxu1 %v4629_v45  ;;  %v5069_v45 = vld [vmem:[#allocation26_spill] sm:$0xff] }
 0xd44   :  { %2598 = vmatprep.subr.bf16.mxu0 %v4597_v58  ;;  %3454 = vmatprep.subr.bf16.mxu1 %v5052_v51 }
 0xd47   :  { %2599 = vmatpush1.bf16.msra.mxu0 %v4604_v48  ;;  %3455 = vmatpush3.bf16.msra.mxu1 %v4633_v27  ;;  %v1734_v27 = vadd.f32 %v5069_v45, %v4749_v21 }
 0xd48   :  { %2692 = vmatprep.subr.bf16.mxu0 %v3784_v42  ;;  %3460 = vmatprep.subr.bf16.mxu1 %v5052_v51 }
 0xdea   :  { %v2510_v50 = vpop.f32.mrf.mxu0  ;;  %v2551_v55 = vpop.f32.mrf.mxu1 }
 0xdeb   :  { %v2560_v57 = vadd.f32 %v2510_v50, %v1666_v35  ;;  %v2574_v32 = vadd.f32 %v4744_v9, %v2551_v55 }
 0xdec   :  { %v2512_v16 = vpop.f32.mrf.mxu0  ;;  %v3438_v2 = vpop.f32.mrf.mxu1 }
 0xded   :  { %v2955_v63 = vmul.f32 -1.442695, %v2560_v57  ;;  %v2567_v58 = vadd.f32 %v2512_v16, %v1668_v49  ;;  %v5071_v2 = vld [vmem:[#allocation24_spill] sm:$0xff] }
 0xdee   :  { %v2514_v43 = vpop.f32.mrf.mxu0  ;;  %v2554_v36 = vpop.f32.mrf.mxu1 }
 0xdef   :  { %3730 = vpow2.f32 %v2955_v63  ;;  %v2956_v52 = vmul.f32 -1.442695, %v2567_v58  ;;  %v1674_v63 = vadd.f32 %v5071_v2, %v4738_v46 }
 0xdf0   :  { %v2515_v41 = vpop.f32.mrf.mxu0  ;;  %v3439_v4 = vpop.f32.mrf.mxu1 }
 0xdf1   :  { %3732 = vpow2.f32 %v2956_v52 }
 0xdfc   :  { %v3731_v48 = vpop.eup %3730 }
 0xdfd   :  { %v2564_v53 = vadd.f32 1.0, %v3731_v48 }
 0xdfe   :  { %v3733_v61 = vpop.eup %3732 }
 0xdff   :  { %3734 = vrcp.f32 %v2564_v53  ;;  %v2571_v62 = vadd.f32 1.0, %v3733_v61  ;;  %v5072_v61 = vld [vmem:[#allocation21_spill] sm:$0xff] }
 0xe01   :  { %3736 = vrcp.f32 %v2571_v62  ;;  %v1739_v62 = vadd.f32 %v5072_v61, %v4749_v21 }
 0xe0c   :  { %v3735_v25 = vpop.eup %3734 }
 0xe0d   :  { %v2575_v0 = vmul.f32 %v3735_v25, %v2574_v32 }
 0xe0e   :  { %v3737_v28 = vpop.eup %3736 }
 0xe0f   :  { %v2576_v31 = vadd.f32 %v2575_v0, %v1734_v27  ;;  %v2578_v33 = vsub.f32 1.0, %v3737_v28  ;;  %v2580_v15 = vmul.f32 %v3737_v28, %v4944_v6 }
 0xe11   :  { %3738 = vtanh.f32 %v2576_v31 }
 0xe1e   :  { %v3739_v7 = vpop.eup %3738 }
 0xe1f   :  { %v2579_v12 = vmul.f32 %v3739_v7, %v2578_v33 }
 0xe21   :  { %v4991_v18 = vadd.f32 %v2580_v15, %v2579_v12  ;;  %v5073_v12 = vld [vmem:[#allocation23_spill] sm:$0xff] }
 0xe22   :  { %v1676_v15 = vadd.f32 %v5073_v12, %v4725_v14 }
 0xe23   :  { %2582 = vst [vmem:[#allocation12 + $0x28] sm:$0xff] %v4991_v18  ;;  %v2583_v23 = vpack.c.bf16 %v4991_v18, %v4991_v18 }
 0xe25   :  { %2617 = vmatmul.mubr.bf16.vlgmr.msra.gmra.mxu0 %v2583_v23  ;;  %3457 = vmatmul.mubr.bf16.vlgmr.msra.gmra.mxu1 %v2583_v23 }
 0xe26   :  { %2693 = vmatpush1.bf16.msra.mxu0 %v3785_v44  ;;  %3461 = vmatpush3.bf16.msra.mxu1 %v3786_v24 }
 0xe27   :  { %2694 = vmatprep.subr.bf16.mxu0 %v3787_v26  ;;  %3462 = vmatprep.subr.bf16.mxu1 %v5052_v51 }
 0xe28   :  { %2724 = vmatprep.mubr.bf16.mxu0 %v5053_v59  ;;  %3476 = vmatprep.mubr.msk.bf16.mxu1 %vm3969_vm1, %v5052_v51  ;;  %v3794_v59 = vld [vmem:[#allocation11 + $0x60] ss:$12 sps:$4 sm:$0xff]  }
 0xe2a   :  { %2695 = vmatpush1.bf16.msra.mxu0 %v3788_v38  ;;  %3463 = vmatpush3.bf16.msra.mxu1 %v3789_v29 }
 0xe2b   :  { %2696 = vmatprep.subr.bf16.mxu0 %v3790_v40  ;;  %3464 = vmatprep.subr.bf16.mxu1 %v5052_v51 }
 0xe2e   :  { %2697 = vmatpush1.bf16.msra.mxu0 %v3791_v3  ;;  %3465 = vmatpush3.bf16.msra.mxu1 %v3792_v5  ;;  %v5074_v5 = vld [vmem:[#allocation25_spill] sm:$0xff] }
 0xe2f   :  { %2698 = vmatprep.subr.bf16.mxu0 %v3793_v34  ;;  %3466 = vmatprep.subr.bf16.mxu1 %v5052_v51  ;;  %v1678_v34 = vadd.f32 %v5074_v5, %v4738_v46 }
 0xe32   :  { %2699 = vmatpush1.bf16.msra.mxu0 %v3794_v59  ;;  %3467 = vmatpush3.bf16.msra.mxu1 %v3795_v54 }
 0xe33   :  { %2700 = vmatprep.subr.bf16.mxu0 %v3796_v8  ;;  %3468 = vmatprep.subr.bf16.mxu1 %v5052_v51 }
 0xe36   :  { %2701 = vmatpush1.bf16.msra.mxu0 %v3797_v13  ;;  %3469 = vmatpush3.bf16.msra.mxu1 %v3798_v47 }
 0xe37   :  { %2702 = vmatprep.subr.bf16.mxu0 %v3799_v17  ;;  %3470 = vmatprep.subr.bf16.mxu1 %v5052_v51 }
 0xe3a   :  { %2703 = vmatpush1.bf16.msra.mxu0 %v3800_v22  ;;  %3471 = vmatpush3.bf16.msra.mxu1 %v3801_v20 }
 0xe3b   :  { %2704 = vmatprep.subr.bf16.mxu0 %v3802_v60  ;;  %3472 = vmatprep.subr.bf16.mxu1 %v5052_v51  ;;  %v5075_v60 = vld [vmem:[#allocation20_spill] sm:$0xff] }
 0xe3e   :  { %2705 = vmatpush1.bf16.msra.mxu0 %v3803_v19  ;;  %3473 = vmatpush3.bf16.msra.mxu1 %v3804_v30  ;;  %v1742_v19 = vadd.f32 %v5075_v60, %v4749_v21 }
 0xe3f   :  { %2706 = vmatprep.subr.bf16.mxu0 %v3805_v56  ;;  %3474 = vmatprep.subr.bf16.mxu1 %v5052_v51 }
 0xe42   :  { %2707 = vmatpush1.bf16.msra.mxu0 %v3806_v39  ;;  %3475 = vmatpush3.bf16.msra.mxu1 %v3807_v1 }
 0xee5   :  { %v2618_v6 = vpop.f32.mrf.mxu0  ;;  %v2659_v37 = vpop.f32.mrf.mxu1 }
 0xee6   :  { %v2668_v42 = vadd.f32 %v2618_v6, %v1672_v11  ;;  %v2682_v48 = vadd.f32 %v4744_v9, %v2659_v37 }
 0xee7   :  { %v2620_v35 = vpop.f32.mrf.mxu0  ;;  %v3458_v50 = vpop.f32.mrf.mxu1 }
 0xee8   :  { %v2957_v55 = vmul.f32 -1.442695, %v2668_v42  ;;  %v2675_v36 = vadd.f32 %v2620_v35, %v1674_v63 }
 0xee9   :  { %v2622_v57 = vpop.f32.mrf.mxu0  ;;  %v2662_v16 = vpop.f32.mrf.mxu1 }
 0xeea   :  { %3740 = vpow2.f32 %v2957_v55  ;;  %v2958_v49 = vmul.f32 -1.442695, %v2675_v36 }
 0xeeb   :  { %v2623_v51 = vpop.f32.mrf.mxu0  ;;  %v3459_v43 = vpop.f32.mrf.mxu1 }
 0xeec   :  { %3742 = vpow2.f32 %v2958_v49 }
 0xef7   :  { %v3741_v41 = vpop.eup %3740 }
 0xef8   :  { %v2672_v4 = vadd.f32 1.0, %v3741_v41 }
 0xef9   :  { %v3743_v58 = vpop.eup %3742 }
 0xefa   :  { %3744 = vrcp.f32 %v2672_v4  ;;  %v2679_v52 = vadd.f32 1.0, %v3743_v58 }
 0xefc   :  { %3746 = vrcp.f32 %v2679_v52 }
 0xf07   :  { %v3745_v53 = vpop.eup %3744 }
 0xf08   :  { %v2683_v32 = vmul.f32 %v3745_v53, %v2682_v48 }
 0xf09   :  { %v3747_v45 = vpop.eup %3746 }
 0xf0a   :  { %v2684_v25 = vadd.f32 %v2683_v32, %v1739_v62  ;;  %v2686_v27 = vsub.f32 1.0, %v3747_v45  ;;  %v2688_v28 = vmul.f32 %v3747_v45, %v4991_v18 }
 0xf0c   :  { %3748 = vtanh.f32 %v2684_v25 }
 0xf19   :  { %v3749_v0 = vpop.eup %3748 }
 0xf1a   :  { %v2687_v31 = vmul.f32 %v3749_v0, %v2686_v27 }
 0xf1c   :  { %v2689_v33 = vadd.f32 %v2688_v28, %v2687_v31 }
 0xf1e   :  { %2690 = vst [vmem:[#allocation12 + $0x30] sm:$0xff] %v2689_v33  ;;  %v2691_v7 = vpack.c.bf16 %v2689_v33, %v2689_v33 }
 0xf20   :  { %2725 = vmatmul.mubr.bf16.vlgmr.msra.gmra.mxu0 %v2691_v7  ;;  %3477 = vmatmul.mubr.bf16.vlgmr.msra.gmra.mxu1 %v2691_v7 }
 0xfe0   :  { %v2726_v23 = vpop.f32.mrf.mxu0  ;;  %v2767_v44 = vpop.f32.mrf.mxu1 }
 0xfe1   :  { %v2776_v24 = vadd.f32 %v2726_v23, %v1676_v15  ;;  %v2790_v22 = vadd.f32 %v4744_v9, %v2767_v44 }
 0xfe2   :  { %v2728_v26 = vpop.f32.mrf.mxu0  ;;  %v3478_v38 = vpop.f32.mrf.mxu1 }
 0xfe3   :  { %v2959_v29 = vmul.f32 -1.442695, %v2776_v24  ;;  %v2783_v54 = vadd.f32 %v2728_v26, %v1678_v34 }
 0xfe4   :  { %v2730_v40 = vpop.f32.mrf.mxu0  ;;  %v2770_v3 = vpop.f32.mrf.mxu1 }
 0xfe5   :  { %3750 = vpow2.f32 %v2959_v29  ;;  %v2960_v8 = vmul.f32 -1.442695, %v2783_v54 }
 0xfe6   :  { %v2731_v18 = vpop.f32.mrf.mxu0  ;;  %v3479_v59 = vpop.f32.mrf.mxu1 }
 0xfe7   :  { %3752 = vpow2.f32 %v2960_v8 }
 0xff2   :  { %v3751_v13 = vpop.eup %3750 }
 0xff3   :  { %v2780_v47 = vadd.f32 1.0, %v3751_v13 }
 0xff4   :  { %v3753_v14 = vpop.eup %3752 }
 0xff5   :  { %3754 = vrcp.f32 %v2780_v47  ;;  %v2787_v17 = vadd.f32 1.0, %v3753_v14 }
 0xff7   :  { %3756 = vrcp.f32 %v2787_v17 }
0x1002   :  { %v3755_v20 = vpop.eup %3754 }
0x1003   :  { %v2791_v30 = vmul.f32 %v3755_v20, %v2790_v22 }
0x1004   :  { %v3757_v56 = vpop.eup %3756 }
0x1005   :  { %v2792_v46 = vadd.f32 %v2791_v30, %v1742_v19  ;;  %v2794_v39 = vsub.f32 1.0, %v3757_v56  ;;  %v2796_v11 = vmul.f32 %v3757_v56, %v2689_v33 }
0x1007   :  { %3758 = vtanh.f32 %v2792_v46 }
0x1014   :  { %v3759_v1 = vpop.eup %3758 }
0x1015   :  { %v2795_v10 = vmul.f32 %v3759_v1, %v2794_v39 }
0x1017   :  { %v2797_v6 = vadd.f32 %v2796_v11, %v2795_v10 }
0x1019   :  { %2798 = vst [vmem:[#allocation12 + $0x38] sm:$0xff] %v2797_v6  ;;  %2800 = vst [vmem:[#allocation13 + $0x8] sm:$0xff] %v2797_v6 }
0x101a   :  { %3919 = shalt.err (!%p3916_p1)
}
0x101b   :  { %s3972_s27 = smov 128   ;;  %s3973_s28 = smov 8  }
0x101c   :  { %2812 = dma.vmem_to_hbm [thread:$0]  %s2807_s24, 1024, %s5036_s9, [#allocation5], %s3972_s27, %s3972_s27, %s3973_s28  }
0x101d   :  { %s3928_s11 = scalar_lea.vmem %s2819_s26, 256  ;;  %p3933_p3 = scmp.lt.s32.totalorder %s2819_s26, %s2819_s26 }
0x101e   :  { %p3929_p2 = scmp.ne.s32.totalorder %s2819_s26, %s3928_s11  ;;  %p3934_p4 = scmp.lt.s32.totalorder %s3928_s11, %s3928_s11 }
0x1020   :  { %p3935_p5 = por %p3934_p4, %p3933_p3 }
0x1022   :  { %p3936_p6 = pnand %p3935_p5, %p3929_p2 }
0x1024   :  { %3939 = shalt.err (!%p3936_p6)
}
0x1025   :  { %2824 = dma.vmem_to_hbm [thread:$0]  %s2819_s26, 256, %s5037_s10, [#allocation14], %s3972_s27, %s3972_s27, %s3973_s28  }
0x1026   :  { %3954 = dma.done.wait [#allocation5], 1024  }
0x1027   :  { %3955 = vsyncadd [#allocation5], 4294966272 }
0x1028   :  { %3956 = dma.done.wait [#allocation14], 256  }
0x1029   :  { %3957 = vsyncadd [#allocation14], 4294967040 }
0x102a   :  { %2831 = vsyncpa [#allocation4], 1 }
0x102b   :  { %2832 = vsyncpa [#allocation7], 1 }
0x102c   :  { %2833 = vsyncpa [#allocation10], 1 }
0x102d   :  { %2834 = vsyncpa [#allocation5], 1 }
0x102e   :  { %2835 = vsyncpa [#allocation14], 1 }

</bundles_post_ra>
